<compile_context>
chip_gen: v7x
topology: tpu7x:2x2x1
jax: 0.10.0
libtpu: 0.0.40
codegen_flags: <defaults>
</compile_context>

<pallas_src>
import functools

import jax
import jax.numpy as jnp
from jax.experimental import pallas as pl
from jax.experimental.pallas import tpu as pltpu


# ----------------------------------------------------------------------------
# Pallas kernel: out = epilogue( x @ w + bias [+ residual] )
# epilogue = relu | per-column-masked relu | identity (static specialisation).
# x, w are bf16 (native MXU dtype); accumulation and epilogue stay f32.
# ----------------------------------------------------------------------------
def _fused_kernel(x_ref, w_ref, b_ref, *rest, relu_mode, has_residual):
    o_ref = rest[-1]
    acc = jnp.dot(x_ref[...], w_ref[...], preferred_element_type=jnp.float32)
    acc = acc + b_ref[...]
    i = 0
    if has_residual:
        acc = acc + rest[i][...]
        i += 1
    if relu_mode == "all":
        acc = jnp.maximum(acc, 0.0)
    elif relu_mode == "mask":
        acc = jnp.where(rest[i][...] > 0.0, jnp.maximum(acc, 0.0), acc)
    o_ref[...] = acc.astype(o_ref.dtype)


def _pick_tm(M):
    # Two grid steps on large-M calls: both v7x TensorCores get half the rows,
    # while single-TC v5e/v6e pay only ~2 per-step overheads instead of 8+.
    if M >= 512 and (M // 2) % 8 == 0:
        return M // 2
    return M


def fused_matmul(x, w_scaled, bias, residual=None, relu=False, relu_mask=None):
    """x: (M, K) f32, w_scaled: (K, N) f32 (BN scale pre-folded), bias: (N,).

    residual: optional (M, N) f32 added before the activation (kept f32).
    relu_mask: optional (N,) — columns with mask>0 get ReLU, others stay linear.
    """
    M, K = x.shape
    N = w_scaled.shape[1]
    tm = _pick_tm(M)
    grid = (M // tm,)

    args = [x.astype(jnp.bfloat16), w_scaled.astype(jnp.bfloat16),
            bias.reshape(1, N).astype(jnp.float32)]
    in_specs = [
        pl.BlockSpec((tm, K), lambda i: (i, 0)),    # activation tile (bf16)
        pl.BlockSpec((K, N), lambda i: (0, 0)),     # scaled weights (resident)
        pl.BlockSpec((1, N), lambda i: (0, 0)),     # folded BN bias
    ]
    has_residual = residual is not None
    if has_residual:
        args.append(residual.astype(jnp.float32))
        in_specs.append(pl.BlockSpec((tm, N), lambda i: (i, 0)))
    if relu_mask is not None:
        relu_mode = "mask"
        args.append(relu_mask.reshape(1, N).astype(jnp.float32))
        in_specs.append(pl.BlockSpec((1, N), lambda i: (0, 0)))
    else:
        relu_mode = "all" if relu else "none"

    kern = functools.partial(_fused_kernel, relu_mode=relu_mode,
                             has_residual=has_residual)
    return pl.pallas_call(
        kern,
        out_shape=jax.ShapeDtypeStruct((M, N), jnp.float32),
        grid_spec=pltpu.PrefetchScalarGridSpec(
            num_scalar_prefetch=0,
            grid=grid,
            in_specs=in_specs,
            out_specs=pl.BlockSpec((tm, N), lambda i: (i, 0)),
        ),
        compiler_params=pltpu.CompilerParams(dimension_semantics=("parallel",)),
    )(*args)


# ----------------------------------------------------------------------------
# JAX-side glue (weight prep + im2col + pooling); hot path stays in the kernel.
# ----------------------------------------------------------------------------
def bn_fold(gamma, beta, mean, var, eps=1e-5):
    scale = gamma / jnp.sqrt(var + eps)
    bias = beta - mean * scale
    return scale, bias


def im2col_3x3(x_nhwc, stride):
    # TODO(synk): move this halo gather into the kernel (manual DMA) so the
    # 9x-expanded patches never round-trip through HBM.
    B, H, W, C = x_nhwc.shape
    Ho, Wo = H // stride, W // stride
    xp = jnp.pad(x_nhwc, ((0, 0), (1, 1), (1, 1), (0, 0)))
    taps = []
    for kh in range(3):
        for kw in range(3):
            taps.append(xp[:, kh:kh + (Ho - 1) * stride + 1:stride,
                              kw:kw + (Wo - 1) * stride + 1:stride, :])
    patches = jnp.stack(taps, axis=3).reshape(B * Ho * Wo, 9 * C)
    return patches, (B, Ho, Wo)


def conv3x3_weight_mat(w_oihw):
    # (Cout, Cin, kh, kw) -> (kh, kw, Cin, Cout) -> (9*Cin, Cout); matches the
    # tap-major-then-channel patch layout produced by im2col_3x3.
    return jnp.transpose(w_oihw, (2, 3, 1, 0)).reshape(-1, w_oihw.shape[0])


# ----------------------------------------------------------------------------
# Net forward (conv1 -> ResidualBlock(64, 64, stride=2) -> avgpool(4) -> fc)
# ----------------------------------------------------------------------------
def net_forward(x_nchw, params):
    x = jnp.transpose(x_nchw, (0, 2, 3, 1))                        # NCHW -> NHWC
    C = 64

    # ---- conv1: 3x3 s1 p1 + BN + ReLU --------------------------------------
    s1, b1 = bn_fold(*params["bn1"])
    w1 = conv3x3_weight_mat(params["conv1_w"]) * s1[None, :]       # (9*Cin, 64)
    patches, (B, H1, W1) = im2col_3x3(x, stride=1)                 # (B*32*32, 9)
    k = patches.shape[1]
    kp = 16                                    # pad tiny K=9 to sublane-friendly 16
    patches = jnp.pad(patches, ((0, 0), (0, kp - k)))
    w1 = jnp.pad(w1, ((0, kp - k), (0, 0)))
    y = fused_matmul(patches, w1, b1, relu=True).reshape(B, H1, W1, C)

    # ---- layer1 block: fuse left conv1 (3x3 s2) + 1x1 s2 shortcut into one
    # N=128 matmul (1x1 weight embedded as the centre 3x3 tap). ---------------
    sl1, bl1 = bn_fold(*params["blk_bn1"])
    ss, bs = bn_fold(*params["blk_bns"])
    wl1 = conv3x3_weight_mat(params["blk_conv1_w"]) * sl1[None, :]     # (576, 64)
    ws = params["blk_convs_w"].reshape(C, C).T * ss[None, :]           # (Cin, Cout)
    ws_embed = jnp.zeros((9 * C, C), jnp.float32).at[4 * C:5 * C, :].set(ws)
    w_fused = jnp.concatenate([wl1, ws_embed], axis=1)                 # (576, 128)
    b_fused = jnp.concatenate([bl1, bs])
    relu_mask = jnp.concatenate([jnp.ones((C,), jnp.float32),          # left: ReLU
                                 jnp.zeros((C,), jnp.float32)])        # shortcut: linear
    patches, (B, H2, W2) = im2col_3x3(y, stride=2)                     # (B*16*16, 576)
    fused = fused_matmul(patches, w_fused, b_fused, relu_mask=relu_mask)
    fused = fused.reshape(B, H2, W2, 2 * C)
    left, shortcut = fused[..., :C], fused[..., C:]

    # ---- left conv2 (3x3 s1) + BN + shortcut add + ReLU, all in one kernel --
    sl2, bl2 = bn_fold(*params["blk_bn2"])
    wl2 = conv3x3_weight_mat(params["blk_conv2_w"]) * sl2[None, :]     # (576, 64)
    patches2, _ = im2col_3x3(left, stride=1)
    blk = fused_matmul(patches2, wl2, bl2,
                       residual=shortcut.reshape(B * H2 * W2, C),
                       relu=True).reshape(B, H2, W2, C)

    # ---- avg_pool2d(4) + flatten (PyTorch C,ph,pw order) + fc ---------------
    pooled = blk.reshape(B, H2 // 4, 4, W2 // 4, 4, C).mean(axis=(2, 4))  # (B,4,4,C)
    x_flat = jnp.transpose(pooled, (0, 3, 1, 2)).reshape(B, -1)           # (B, 1024)
    logits = fused_matmul(x_flat, params["fc_w"].T, params["fc_b"])
    return logits


# ----------------------------------------------------------------------------
# Deterministic synthetic parameters
# ----------------------------------------------------------------------------
def init_params(key):
    ks = jax.random.split(key, 10)

    def conv_w(k, cout, cin, kh, kw):
        return 0.1 * jax.random.normal(k, (cout, cin, kh, kw), jnp.float32)

    def bn(k, c):
        k1, k2, k3, k4 = jax.random.split(k, 4)
        gamma = 1.0 + 0.1 * jax.random.normal(k1, (c,), jnp.float32)
        beta = 0.1 * jax.random.normal(k2, (c,), jnp.float32)
        mean = 0.1 * jax.random.normal(k3, (c,), jnp.float32)
        var = jax.random.uniform(k4, (c,), jnp.float32, minval=0.5, maxval=1.5)
        return (gamma, beta, mean, var)

    return {
        "conv1_w": conv_w(ks[0], 64, 1, 3, 3),
        "bn1": bn(ks[1], 64),
        "blk_conv1_w": conv_w(ks[2], 64, 64, 3, 3),
        "blk_bn1": bn(ks[3], 64),
        "blk_conv2_w": conv_w(ks[4], 64, 64, 3, 3),
        "blk_bn2": bn(ks[5], 64),
        "blk_convs_w": conv_w(ks[6], 64, 64, 1, 1),
        "blk_bns": bn(ks[7], 64),
        "fc_w": 0.02 * jax.random.normal(ks[8], (10, 1024), jnp.float32),
        "fc_b": 0.01 * jax.random.normal(ks[9], (10,), jnp.float32),
    }


if __name__ == "__main__":
    key = jax.random.PRNGKey(0)
    kp, kx = jax.random.split(key)
    params = init_params(kp)
    # Input must be 32x32 so the fc sees 64*4*4 = 1024 features (as in the module).
    x = jax.random.normal(kx, (2, 1, 32, 32), jnp.float32)  # NCHW, num_in_channel=1
    net = jax.jit(net_forward)
    out = jax.block_until_ready(net(x, params))
    assert out.shape == (2, 10), out.shape
    print("KERNEL_OK")
</pallas_src>

<mosaic_0001>
module attributes {stable_mosaic.version = 11 : i64} {
  func.func @_fused_kernel(%arg0: i32, %arg1: memref<1024x16xbf16, #tpu.memory_space<vmem>>, %arg2: memref<16x64xbf16, #tpu.memory_space<vmem>>, %arg3: memref<1x64xf32, #tpu.memory_space<vmem>>, %arg4: memref<1024x64xf32, #tpu.memory_space<vmem>>) attributes {dimension_semantics = [#tpu.dimension_semantics<parallel>], iteration_bounds = array<i64: 2>, scalar_prefetch = 0 : i64, scratch_operands = 0 : i64, tpu.core_type = #tpu.core_type<tc>, window_params = [{transform_indices = @transform_0, window_bounds = array<i64: 1024, 16>}, {pipeline_mode = #tpu.pipeline_mode<synchronous>, transform_indices = @transform_1, window_bounds = array<i64: 16, 64>}, {pipeline_mode = #tpu.pipeline_mode<synchronous>, transform_indices = @transform_2, window_bounds = array<i64: 1, 64>}, {transform_indices = @transform_3, window_bounds = array<i64: 1024, 64>}]} {
    %c0 = arith.constant 0 : index
    %c0_0 = arith.constant 0 : index
    %0 = vector.load %arg1[%c0, %c0_0] : memref<1024x16xbf16, #tpu.memory_space<vmem>>, vector<1024x16xbf16>
    %c0_1 = arith.constant 0 : index
    %c0_2 = arith.constant 0 : index
    %1 = vector.load %arg2[%c0_1, %c0_2] : memref<16x64xbf16, #tpu.memory_space<vmem>>, vector<16x64xbf16>
    %cst = arith.constant dense<0.000000e+00> : vector<1024x64xf32>
    %2 = tpu.matmul %0, %1, %cst {dimension_numbers = #tpu.dot_dimension_numbers<[1], [0], [0], [1], [0, 0, 1, 1], [], []>} : vector<1024x16xbf16>, vector<16x64xbf16>, vector<1024x64xf32> -> vector<1024x64xf32>
    %c0_3 = arith.constant 0 : index
    %c0_4 = arith.constant 0 : index
    %3 = vector.load %arg3[%c0_3, %c0_4] : memref<1x64xf32, #tpu.memory_space<vmem>>, vector<1x64xf32>
    %4 = vector.broadcast %3 : vector<1x64xf32> to vector<1024x64xf32>
    %5 = arith.addf %2, %4 : vector<1024x64xf32>
    %cst_5 = arith.constant 0.000000e+00 : f32
    %6 = vector.broadcast %cst_5 : f32 to vector<1024x64xf32>
    %7 = arith.maximumf %5, %6 : vector<1024x64xf32>
    %c0_6 = arith.constant 0 : index
    %c0_7 = arith.constant 0 : index
    %8 = vector.load %arg4[%c0_6, %c0_7] : memref<1024x64xf32, #tpu.memory_space<vmem>>, vector<1024x64xf32>
    tpu.vector_store %arg4[%c0_6, %c0_7], %7 {strides = array<i32>} : memref<1024x64xf32, #tpu.memory_space<vmem>>, vector<1024x64xf32>,
    return
  }
  func.func @transform_0(%arg0: i32) -> (i32, i32) {
    %c0_i32 = arith.constant 0 : i32
    %c0_i32_0 = arith.constant 0 : i32
    return %arg0, %c0_i32 : i32, i32
  }
  func.func @transform_1(%arg0: i32) -> (i32, i32) {
    %c0_i32 = arith.constant 0 : i32
    %c0_i32_0 = arith.constant 0 : i32
    %c0_i32_1 = arith.constant 0 : i32
    return %c0_i32, %c0_i32_0 : i32, i32
  }
  func.func @transform_2(%arg0: i32) -> (i32, i32) {
    %c0_i32 = arith.constant 0 : i32
    %c0_i32_0 = arith.constant 0 : i32
    %c0_i32_1 = arith.constant 0 : i32
    return %c0_i32, %c0_i32_0 : i32, i32
  }
  func.func @transform_3(%arg0: i32) -> (i32, i32) {
    %c0_i32 = arith.constant 0 : i32
    %c0_i32_0 = arith.constant 0 : i32
    return %arg0, %c0_i32 : i32, i32
  }
}

module attributes {stable_mosaic.version = 11 : i64} {
  func.func @_fused_kernel(%arg0: i32, %arg1: memref<256x576xbf16, #tpu.memory_space<vmem>>, %arg2: memref<576x128xbf16, #tpu.memory_space<vmem>>, %arg3: memref<1x128xf32, #tpu.memory_space<vmem>>, %arg4: memref<1x128xf32, #tpu.memory_space<vmem>>, %arg5: memref<256x128xf32, #tpu.memory_space<vmem>>) attributes {dimension_semantics = [#tpu.dimension_semantics<parallel>], iteration_bounds = array<i64: 2>, scalar_prefetch = 0 : i64, scratch_operands = 0 : i64, tpu.core_type = #tpu.core_type<tc>, window_params = [{transform_indices = @transform_0, window_bounds = array<i64: 256, 576>}, {pipeline_mode = #tpu.pipeline_mode<synchronous>, transform_indices = @transform_1, window_bounds = array<i64: 576, 128>}, {pipeline_mode = #tpu.pipeline_mode<synchronous>, transform_indices = @transform_2, window_bounds = array<i64: 1, 128>}, {pipeline_mode = #tpu.pipeline_mode<synchronous>, transform_indices = @transform_3, window_bounds = array<i64: 1, 128>}, {transform_indices = @transform_4, window_bounds = array<i64: 256, 128>}]} {
    %c0 = arith.constant 0 : index
    %c0_0 = arith.constant 0 : index
    %0 = vector.load %arg1[%c0, %c0_0] : memref<256x576xbf16, #tpu.memory_space<vmem>>, vector<256x576xbf16>
    %c0_1 = arith.constant 0 : index
    %c0_2 = arith.constant 0 : index
    %1 = vector.load %arg2[%c0_1, %c0_2] : memref<576x128xbf16, #tpu.memory_space<vmem>>, vector<576x128xbf16>
    %cst = arith.constant dense<0.000000e+00> : vector<256x128xf32>
    %2 = tpu.matmul %0, %1, %cst {dimension_numbers = #tpu.dot_dimension_numbers<[1], [0], [0], [1], [0, 0, 1, 1], [], []>} : vector<256x576xbf16>, vector<576x128xbf16>, vector<256x128xf32> -> vector<256x128xf32>
    %c0_3 = arith.constant 0 : index
    %c0_4 = arith.constant 0 : index
    %3 = vector.load %arg3[%c0_3, %c0_4] : memref<1x128xf32, #tpu.memory_space<vmem>>, vector<1x128xf32>
    %4 = vector.broadcast %3 : vector<1x128xf32> to vector<256x128xf32>
    %5 = arith.addf %2, %4 : vector<256x128xf32>
    %c0_5 = arith.constant 0 : index
    %c0_6 = arith.constant 0 : index
    %6 = vector.load %arg4[%c0_5, %c0_6] : memref<1x128xf32, #tpu.memory_space<vmem>>, vector<1x128xf32>
    %cst_7 = arith.constant 0.000000e+00 : f32
    %7 = vector.broadcast %cst_7 : f32 to vector<1x128xf32>
    %8 = arith.cmpf ogt, %6, %7 : vector<1x128xf32>
    %cst_8 = arith.constant 0.000000e+00 : f32
    %9 = vector.broadcast %cst_8 : f32 to vector<256x128xf32>
    %10 = arith.maximumf %5, %9 : vector<256x128xf32>
    %11 = vector.shape_cast %8 : vector<1x128xi1> to vector<1x128xi1>
    %12 = vector.broadcast %11 : vector<1x128xi1> to vector<256x128xi1>
    %13 = arith.select %12, %10, %5 : vector<256x128xi1>, vector<256x128xf32>
    %c0_9 = arith.constant 0 : index
    %c0_10 = arith.constant 0 : index
    %14 = vector.load %arg5[%c0_9, %c0_10] : memref<256x128xf32, #tpu.memory_space<vmem>>, vector<256x128xf32>
    tpu.vector_store %arg5[%c0_9, %c0_10], %13 {strides = array<i32>} : memref<256x128xf32, #tpu.memory_space<vmem>>, vector<256x128xf32>,
    return
  }
  func.func @transform_0(%arg0: i32) -> (i32, i32) {
    %c0_i32 = arith.constant 0 : i32
    %c0_i32_0 = arith.constant 0 : i32
    return %arg0, %c0_i32 : i32, i32
  }
  func.func @transform_1(%arg0: i32) -> (i32, i32) {
    %c0_i32 = arith.constant 0 : i32
    %c0_i32_0 = arith.constant 0 : i32
    %c0_i32_1 = arith.constant 0 : i32
    return %c0_i32, %c0_i32_0 : i32, i32
  }
  func.func @transform_2(%arg0: i32) -> (i32, i32) {
    %c0_i32 = arith.constant 0 : i32
    %c0_i32_0 = arith.constant 0 : i32
    %c0_i32_1 = arith.constant 0 : i32
    return %c0_i32, %c0_i32_0 : i32, i32
  }
  func.func @transform_3(%arg0: i32) -> (i32, i32) {
    %c0_i32 = arith.constant 0 : i32
    %c0_i32_0 = arith.constant 0 : i32
    %c0_i32_1 = arith.constant 0 : i32
    return %c0_i32, %c0_i32_0 : i32, i32
  }
  func.func @transform_4(%arg0: i32) -> (i32, i32) {
    %c0_i32 = arith.constant 0 : i32
    %c0_i32_0 = arith.constant 0 : i32
    return %arg0, %c0_i32 : i32, i32
  }
}

module attributes {stable_mosaic.version = 11 : i64} {
  func.func @_fused_kernel(%arg0: i32, %arg1: memref<256x576xbf16, #tpu.memory_space<vmem>>, %arg2: memref<576x64xbf16, #tpu.memory_space<vmem>>, %arg3: memref<1x64xf32, #tpu.memory_space<vmem>>, %arg4: memref<256x64xf32, #tpu.memory_space<vmem>>, %arg5: memref<256x64xf32, #tpu.memory_space<vmem>>) attributes {dimension_semantics = [#tpu.dimension_semantics<parallel>], iteration_bounds = array<i64: 2>, scalar_prefetch = 0 : i64, scratch_operands = 0 : i64, tpu.core_type = #tpu.core_type<tc>, window_params = [{transform_indices = @transform_0, window_bounds = array<i64: 256, 576>}, {pipeline_mode = #tpu.pipeline_mode<synchronous>, transform_indices = @transform_1, window_bounds = array<i64: 576, 64>}, {pipeline_mode = #tpu.pipeline_mode<synchronous>, transform_indices = @transform_2, window_bounds = array<i64: 1, 64>}, {transform_indices = @transform_3, window_bounds = array<i64: 256, 64>}, {transform_indices = @transform_4, window_bounds = array<i64: 256, 64>}]} {
    %c0 = arith.constant 0 : index
    %c0_0 = arith.constant 0 : index
    %0 = vector.load %arg1[%c0, %c0_0] : memref<256x576xbf16, #tpu.memory_space<vmem>>, vector<256x576xbf16>
    %c0_1 = arith.constant 0 : index
    %c0_2 = arith.constant 0 : index
    %1 = vector.load %arg2[%c0_1, %c0_2] : memref<576x64xbf16, #tpu.memory_space<vmem>>, vector<576x64xbf16>
    %cst = arith.constant dense<0.000000e+00> : vector<256x64xf32>
    %2 = tpu.matmul %0, %1, %cst {dimension_numbers = #tpu.dot_dimension_numbers<[1], [0], [0], [1], [0, 0, 1, 1], [], []>} : vector<256x576xbf16>, vector<576x64xbf16>, vector<256x64xf32> -> vector<256x64xf32>
    %c0_3 = arith.constant 0 : index
    %c0_4 = arith.constant 0 : index
    %3 = vector.load %arg3[%c0_3, %c0_4] : memref<1x64xf32, #tpu.memory_space<vmem>>, vector<1x64xf32>
    %4 = vector.broadcast %3 : vector<1x64xf32> to vector<256x64xf32>
    %5 = arith.addf %2, %4 : vector<256x64xf32>
    %c0_5 = arith.constant 0 : index
    %c0_6 = arith.constant 0 : index
    %6 = vector.load %arg4[%c0_5, %c0_6] : memref<256x64xf32, #tpu.memory_space<vmem>>, vector<256x64xf32>
    %7 = arith.addf %5, %6 : vector<256x64xf32>
    %cst_7 = arith.constant 0.000000e+00 : f32
    %8 = vector.broadcast %cst_7 : f32 to vector<256x64xf32>
    %9 = arith.maximumf %7, %8 : vector<256x64xf32>
    %c0_8 = arith.constant 0 : index
    %c0_9 = arith.constant 0 : index
    %10 = vector.load %arg5[%c0_8, %c0_9] : memref<256x64xf32, #tpu.memory_space<vmem>>, vector<256x64xf32>
    tpu.vector_store %arg5[%c0_8, %c0_9], %9 {strides = array<i32>} : memref<256x64xf32, #tpu.memory_space<vmem>>, vector<256x64xf32>,
    return
  }
  func.func @transform_0(%arg0: i32) -> (i32, i32) {
    %c0_i32 = arith.constant 0 : i32
    %c0_i32_0 = arith.constant 0 : i32
    return %arg0, %c0_i32 : i32, i32
  }
  func.func @transform_1(%arg0: i32) -> (i32, i32) {
    %c0_i32 = arith.constant 0 : i32
    %c0_i32_0 = arith.constant 0 : i32
    %c0_i32_1 = arith.constant 0 : i32
    return %c0_i32, %c0_i32_0 : i32, i32
  }
  func.func @transform_2(%arg0: i32) -> (i32, i32) {
    %c0_i32 = arith.constant 0 : i32
    %c0_i32_0 = arith.constant 0 : i32
    %c0_i32_1 = arith.constant 0 : i32
    return %c0_i32, %c0_i32_0 : i32, i32
  }
  func.func @transform_3(%arg0: i32) -> (i32, i32) {
    %c0_i32 = arith.constant 0 : i32
    %c0_i32_0 = arith.constant 0 : i32
    return %arg0, %c0_i32 : i32, i32
  }
  func.func @transform_4(%arg0: i32) -> (i32, i32) {
    %c0_i32 = arith.constant 0 : i32
    %c0_i32_0 = arith.constant 0 : i32
    return %arg0, %c0_i32 : i32, i32
  }
}

module attributes {stable_mosaic.version = 11 : i64} {
  func.func @_fused_kernel(%arg0: i32, %arg1: memref<2x1024xbf16, #tpu.memory_space<vmem>>, %arg2: memref<1024x10xbf16, #tpu.memory_space<vmem>>, %arg3: memref<1x10xf32, #tpu.memory_space<vmem>>, %arg4: memref<2x10xf32, #tpu.memory_space<vmem>>) attributes {dimension_semantics = [#tpu.dimension_semantics<parallel>], iteration_bounds = array<i64: 1>, scalar_prefetch = 0 : i64, scratch_operands = 0 : i64, tpu.core_type = #tpu.core_type<tc>, window_params = [{transform_indices = @transform_0, window_bounds = array<i64: 2, 1024>}, {pipeline_mode = #tpu.pipeline_mode<synchronous>, transform_indices = @transform_1, window_bounds = array<i64: 1024, 10>}, {pipeline_mode = #tpu.pipeline_mode<synchronous>, transform_indices = @transform_2, window_bounds = array<i64: 1, 10>}, {transform_indices = @transform_3, window_bounds = array<i64: 2, 10>}]} {
    %c0 = arith.constant 0 : index
    %c0_0 = arith.constant 0 : index
    %0 = vector.load %arg1[%c0, %c0_0] : memref<2x1024xbf16, #tpu.memory_space<vmem>>, vector<2x1024xbf16>
    %c0_1 = arith.constant 0 : index
    %c0_2 = arith.constant 0 : index
    %1 = vector.load %arg2[%c0_1, %c0_2] : memref<1024x10xbf16, #tpu.memory_space<vmem>>, vector<1024x10xbf16>
    %cst = arith.constant dense<0.000000e+00> : vector<2x10xf32>
    %2 = tpu.matmul %0, %1, %cst {dimension_numbers = #tpu.dot_dimension_numbers<[1], [0], [0], [1], [0, 0, 1, 1], [], []>} : vector<2x1024xbf16>, vector<1024x10xbf16>, vector<2x10xf32> -> vector<2x10xf32>
    %c0_3 = arith.constant 0 : index
    %c0_4 = arith.constant 0 : index
    %3 = vector.load %arg3[%c0_3, %c0_4] : memref<1x10xf32, #tpu.memory_space<vmem>>, vector<1x10xf32>
    %4 = vector.broadcast %3 : vector<1x10xf32> to vector<2x10xf32>
    %5 = arith.addf %2, %4 : vector<2x10xf32>
    %c0_5 = arith.constant 0 : index
    %c0_6 = arith.constant 0 : index
    %6 = vector.load %arg4[%c0_5, %c0_6] : memref<2x10xf32, #tpu.memory_space<vmem>>, vector<2x10xf32>
    tpu.vector_store %arg4[%c0_5, %c0_6], %5 {strides = array<i32>} : memref<2x10xf32, #tpu.memory_space<vmem>>, vector<2x10xf32>,
    return
  }
  func.func @transform_0(%arg0: i32) -> (i32, i32) {
    %c0_i32 = arith.constant 0 : i32
    %c0_i32_0 = arith.constant 0 : i32
    return %arg0, %c0_i32 : i32, i32
  }
  func.func @transform_1(%arg0: i32) -> (i32, i32) {
    %c0_i32 = arith.constant 0 : i32
    %c0_i32_0 = arith.constant 0 : i32
    %c0_i32_1 = arith.constant 0 : i32
    return %c0_i32, %c0_i32_0 : i32, i32
  }
  func.func @transform_2(%arg0: i32) -> (i32, i32) {
    %c0_i32 = arith.constant 0 : i32
    %c0_i32_0 = arith.constant 0 : i32
    %c0_i32_1 = arith.constant 0 : i32
    return %c0_i32, %c0_i32_0 : i32, i32
  }
  func.func @transform_3(%arg0: i32) -> (i32, i32) {
    %c0_i32 = arith.constant 0 : i32
    %c0_i32_0 = arith.constant 0 : i32
    return %arg0, %c0_i32 : i32, i32
  }
}

</mosaic_0001>

<bundles_post_ra>
// kernel: net_forward.4
= control target key start
LH: loop header
LB: loop body
LE: loop exit
PB: predicated region body
PF: predicated region fallthrough
CT: control target
= control target key end

     0   :  { %s2128_s12 = smov 0   ;;  %s2673_s0 = inlined_call_operand.vmem [shape: bf16[2048,16], index: 0, kind: input, shape index: {}]   ;;  %s2674_s1 = inlined_call_operand.vmem [shape: bf16[16,64], index: 1, kind: input, shape index: {}]   ;;  %s2675_s2 = inlined_call_operand.vmem [shape: f32[1,64], index: 2, kind: input, shape index: {}]   ;;  %s2676_s3 = inlined_call_operand.vmem [shape: f32[2048,64], index: 3, kind: output, shape index: {}]  }
   0x1 LB: > { %s1689_s13 = sadd.s32 4294967295, %s2106_s12   ;;  %p1693_p0 = scmp.ge.s32.totalorder %s2106_s12, 1  ;;  %s2106_s12 = sphi %s2128_s12, %s13_s12  }
   0x2   : > { %p138_p1 = scmp.lt.s32.totalorder %s2106_s12, 3 }
   0x4   : > { %p139_p2 = pnand %p1693_p0, %p138_p1 }
   0x5   : > { %v2035_v0 = vld [vmem:[%s2674_s1] sm:$0xff] (!%p139_p2)   ;;  %s1694_s16 = sshll.u32 (!%p139_p2), %s1689_s13, 7  ;;  %vm638_vm0 = vcmask (!%p139_p2), 130048   ;;  %vm1504_vm1 = vcmask (!%p139_p2), 523264  }
   0x6   : > { %142 = sbr.rel (%p139_p2) target bundleno = 359 (0x167), region = 32  ;;  %p163_p3 = scmp.lt.s32.totalorder (!%p139_p2), %s1694_s16, 255  ;;  %1895 = vmatprep.subr.bf16.mxu0 (!%p139_p2), %v2035_v0  ;;  %2025 = vmatprep.subr.bf16.mxu1 (!%p139_p2), %v2035_v0 }
   0x7   : > { %1896 = vmatpush3.bf16.msra.mxu0 (!%p139_p2), %v2035_v0  ;;  %2026 = vmatpush3.bf16.msra.mxu1 (!%p139_p2), %v2035_v0 }
   0xd   : > { %s2678_s16 = smov (!%p163_p3, %s1694_s16), 255 }
   0xe   : > { %s1695_s17 = sshll.u32 %s2678_s16, 2  ;;  %s1697_s23 = sshll.u32 %s2678_s16, 3 }
   0xf   : > { %s2145_s20 = scalar_lea.vmem %s2673_s0, %s1695_s17  ;;  %s2285_s26 = scalar_lea.vmem %s2676_s3, %s1697_s23 }
  0x10   : > { %v2036_v1 = vld [vmem:[%s2145_s20] sm:$0xff]   ;;  %v2038_v3 = vld [vmem:[%s2145_s20 + $0x8] sm:$0xff]   ;;  %v2040_v5 = vld [vmem:[%s2145_s20 + $0x10] sm:$0xff]  }
  0x11   : > { %v2037_v2 = vld [vmem:[%s2145_s20 + $0x100] sm:$0xff]   ;;  %1897 = vmatprep.mubr.msk.bf16.mxu0 %vm638_vm0, %v2036_v1  ;;  %v2039_v4 = vld [vmem:[%s2145_s20 + $0x108] sm:$0xff]   ;;  %v2041_v6 = vld [vmem:[%s2145_s20 + $0x110] sm:$0xff]  }
  0x12   : > { %1961 = vmatprep.mubr.msk.bf16.mxu1 %vm638_vm0, %v2037_v2  ;;  %1898 = vmatmul.mubr.msk.bf16.vlgmr.msra.gmra.mrb[0].mxu0 %vm638_vm0, %v2038_v3  ;;  %v2042_v7 = vld [vmem:[%s2145_s20 + $0x18] sm:$0xff]   ;;  %v2044_v9 = vld [vmem:[%s2145_s20 + $0x20] sm:$0xff]   ;;  %v2046_v11 = vld [vmem:[%s2145_s20 + $0x28] sm:$0xff]  }
  0x13   : > { %1962 = vmatmul.mubr.msk.bf16.vlgmr.msra.gmra.mrb[0].mxu1 %vm638_vm0, %v2039_v4  ;;  %1901 = vmatprep.mubr.msk.bf16.mxu0 %vm638_vm0, %v2040_v5  ;;  %v2043_v8 = vld [vmem:[%s2145_s20 + $0x118] sm:$0xff]   ;;  %v2045_v10 = vld [vmem:[%s2145_s20 + $0x120] sm:$0xff]   ;;  %v2047_v12 = vld [vmem:[%s2145_s20 + $0x128] sm:$0xff]  }
  0x14   : > { %1965 = vmatprep.mubr.msk.bf16.mxu1 %vm638_vm0, %v2041_v6  ;;  %v2048_v13 = vld [vmem:[%s2145_s20 + $0x30] sm:$0xff]   ;;  %v2050_v15 = vld [vmem:[%s2145_s20 + $0x38] sm:$0xff]   ;;  %v2052_v17 = vld [vmem:[%s2145_s20 + $0x40] sm:$0xff]  }
  0x15   : > { %v2049_v14 = vld [vmem:[%s2145_s20 + $0x130] sm:$0xff]   ;;  %v2051_v16 = vld [vmem:[%s2145_s20 + $0x138] sm:$0xff]   ;;  %v2053_v18 = vld [vmem:[%s2145_s20 + $0x140] sm:$0xff]  }
  0x16   : > { %v2054_v19 = vld [vmem:[%s2145_s20 + $0x48] sm:$0xff]   ;;  %v2056_v21 = vld [vmem:[%s2145_s20 + $0x50] sm:$0xff]   ;;  %v2058_v23 = vld [vmem:[%s2145_s20 + $0x58] sm:$0xff]  }
  0x17   : > { %v2055_v20 = vld [vmem:[%s2145_s20 + $0x148] sm:$0xff]   ;;  %v2057_v22 = vld [vmem:[%s2145_s20 + $0x150] sm:$0xff]   ;;  %v2059_v24 = vld [vmem:[%s2145_s20 + $0x158] sm:$0xff]  }
  0x18   : > { %v2060_v25 = vld [vmem:[%s2145_s20 + $0x60] sm:$0xff]   ;;  %v2062_v27 = vld [vmem:[%s2145_s20 + $0x68] sm:$0xff]   ;;  %v2064_v29 = vld [vmem:[%s2145_s20 + $0x70] sm:$0xff]  }
  0x19   : > { %v2061_v26 = vld [vmem:[%s2145_s20 + $0x160] sm:$0xff]   ;;  %v2063_v28 = vld [vmem:[%s2145_s20 + $0x168] sm:$0xff]   ;;  %v2065_v30 = vld [vmem:[%s2145_s20 + $0x170] sm:$0xff]  }
  0x1a   : > { %1902 = vmatmul.mubr.msk.bf16.gmra.mrb[4].mxu0 %vm638_vm0, %v2042_v7  ;;  %v2066_v31 = vld [vmem:[%s2145_s20 + $0x78] sm:$0xff]   ;;  %v2068_v33 = vld [vmem:[%s2145_s20 + $0x80] sm:$0xff]   ;;  %v2070_v35 = vld [vmem:[%s2145_s20 + $0x88] sm:$0xff]  }
  0x1b   : > { %1966 = vmatmul.mubr.msk.bf16.gmra.mrb[4].mxu1 %vm638_vm0, %v2043_v8  ;;  %1905 = vmatprep.mubr.msk.bf16.mxu0 %vm638_vm0, %v2044_v9  ;;  %v2067_v32 = vld [vmem:[%s2145_s20 + $0x178] sm:$0xff]   ;;  %v2069_v34 = vld [vmem:[%s2145_s20 + $0x180] sm:$0xff]   ;;  %v2071_v36 = vld [vmem:[%s2145_s20 + $0x188] sm:$0xff]  }
  0x1c   : > { %1969 = vmatprep.mubr.msk.bf16.mxu1 %vm638_vm0, %v2045_v10  ;;  %v2072_v37 = vld [vmem:[%s2145_s20 + $0x90] sm:$0xff]   ;;  %v2074_v39 = vld [vmem:[%s2145_s20 + $0x98] sm:$0xff]   ;;  %v2076_v41 = vld [vmem:[%s2145_s20 + $0xa0] sm:$0xff]  }
  0x1d   : > { %v2073_v38 = vld [vmem:[%s2145_s20 + $0x190] sm:$0xff]   ;;  %v2075_v40 = vld [vmem:[%s2145_s20 + $0x198] sm:$0xff]   ;;  %v2077_v42 = vld [vmem:[%s2145_s20 + $0x1a0] sm:$0xff]  }
  0x1e   : > { %v2078_v43 = vld [vmem:[%s2145_s20 + $0xa8] sm:$0xff]   ;;  %v2080_v45 = vld [vmem:[%s2145_s20 + $0xb0] sm:$0xff]   ;;  %v2082_v47 = vld [vmem:[%s2145_s20 + $0xb8] sm:$0xff]  }
  0x1f   : > { %v2079_v44 = vld [vmem:[%s2145_s20 + $0x1a8] sm:$0xff]   ;;  %v2081_v46 = vld [vmem:[%s2145_s20 + $0x1b0] sm:$0xff]   ;;  %v2083_v48 = vld [vmem:[%s2145_s20 + $0x1b8] sm:$0xff]  }
  0x20   : > { %v2084_v49 = vld [vmem:[%s2145_s20 + $0xc0] sm:$0xff]   ;;  %v2086_v51 = vld [vmem:[%s2145_s20 + $0xc8] sm:$0xff]   ;;  %v2088_v53 = vld [vmem:[%s2145_s20 + $0xd0] sm:$0xff]  }
  0x21   : > { %v2085_v50 = vld [vmem:[%s2145_s20 + $0x1c0] sm:$0xff]   ;;  %v2087_v52 = vld [vmem:[%s2145_s20 + $0x1c8] sm:$0xff]   ;;  %v2089_v54 = vld [vmem:[%s2145_s20 + $0x1d0] sm:$0xff]  }
  0x22   : > { %1906 = vmatmul.mubr.msk.bf16.gmra.mrb[8].mxu0 %vm638_vm0, %v2046_v11  ;;  %v2090_v55 = vld [vmem:[%s2145_s20 + $0xd8] sm:$0xff]   ;;  %v2092_v57 = vld [vmem:[%s2145_s20 + $0xe0] sm:$0xff]   ;;  %v2094_v59 = vld [vmem:[%s2145_s20 + $0xe8] sm:$0xff]  }
  0x23   : > { %1970 = vmatmul.mubr.msk.bf16.gmra.mrb[8].mxu1 %vm638_vm0, %v2047_v12  ;;  %1909 = vmatprep.mubr.msk.bf16.mxu0 %vm638_vm0, %v2048_v13  ;;  %v2091_v56 = vld [vmem:[%s2145_s20 + $0x1d8] sm:$0xff]   ;;  %v2093_v58 = vld [vmem:[%s2145_s20 + $0x1e0] sm:$0xff]   ;;  %v2095_v60 = vld [vmem:[%s2145_s20 + $0x1e8] sm:$0xff]  }
  0x24   : > { %1973 = vmatprep.mubr.msk.bf16.mxu1 %vm638_vm0, %v2049_v14  ;;  %v2096_v61 = vld [vmem:[%s2145_s20 + $0xf0] sm:$0xff]   ;;  %v2098_v63 = vld [vmem:[%s2145_s20 + $0xf8] sm:$0xff]   ;;  %v2278_v1 = vld [vmem:[%s2675_s2] ss:$0 sm:$0xff] }
  0x25   : > { %v2097_v62 = vld [vmem:[%s2145_s20 + $0x1f0] sm:$0xff]   ;;  %v2099_v0 = vld [vmem:[%s2145_s20 + $0x1f8] sm:$0xff]  }
  0x2a   : > { %1910 = vmatmul.mubr.msk.bf16.gmra.mrb[12].mxu0 %vm638_vm0, %v2050_v15 }
  0x2b   : > { %1974 = vmatmul.mubr.msk.bf16.gmra.mrb[12].mxu1 %vm638_vm0, %v2051_v16  ;;  %1913 = vmatprep.mubr.msk.bf16.mxu0 %vm638_vm0, %v2052_v17 }
  0x2c   : > { %1977 = vmatprep.mubr.msk.bf16.mxu1 %vm638_vm0, %v2053_v18 }
  0x32   : > { %1914 = vmatmul.mubr.msk.bf16.gmra.mrb[16].mxu0 %vm638_vm0, %v2054_v19 }
  0x33   : > { %1978 = vmatmul.mubr.msk.bf16.gmra.mrb[16].mxu1 %vm638_vm0, %v2055_v20  ;;  %1917 = vmatprep.mubr.msk.bf16.mxu0 %vm638_vm0, %v2056_v21 }
  0x34   : > { %1981 = vmatprep.mubr.msk.bf16.mxu1 %vm638_vm0, %v2057_v22 }
  0x3a   : > { %1918 = vmatmul.mubr.msk.bf16.gmra.mrb[20].mxu0 %vm638_vm0, %v2058_v23 }
  0x3b   : > { %1982 = vmatmul.mubr.msk.bf16.gmra.mrb[20].mxu1 %vm638_vm0, %v2059_v24  ;;  %1921 = vmatprep.mubr.msk.bf16.mxu0 %vm638_vm0, %v2060_v25 }
  0x3c   : > { %1985 = vmatprep.mubr.msk.bf16.mxu1 %vm638_vm0, %v2061_v26 }
  0x42   : > { %1922 = vmatmul.mubr.msk.bf16.gmra.mrb[24].mxu0 %vm638_vm0, %v2062_v27 }
  0x43   : > { %1986 = vmatmul.mubr.msk.bf16.gmra.mrb[24].mxu1 %vm638_vm0, %v2063_v28  ;;  %1925 = vmatprep.mubr.msk.bf16.mxu0 %vm638_vm0, %v2064_v29 }
  0x44   : > { %1989 = vmatprep.mubr.msk.bf16.mxu1 %vm638_vm0, %v2065_v30 }
  0x4a   : > { %1926 = vmatmul.mubr.msk.bf16.gmra.mrb[28].mxu0 %vm638_vm0, %v2066_v31 }
  0x4b   : > { %1990 = vmatmul.mubr.msk.bf16.gmra.mrb[28].mxu1 %vm638_vm0, %v2067_v32  ;;  %1929 = vmatprep.mubr.msk.bf16.mxu0 %vm638_vm0, %v2068_v33 }
  0x4c   : > { %1993 = vmatprep.mubr.msk.bf16.mxu1 %vm638_vm0, %v2069_v34 }
  0x52   : > { %1930 = vmatmul.mubr.msk.bf16.gmra.mrb[32].mxu0 %vm638_vm0, %v2070_v35 }
  0x53   : > { %1994 = vmatmul.mubr.msk.bf16.gmra.mrb[32].mxu1 %vm638_vm0, %v2071_v36  ;;  %1933 = vmatprep.mubr.msk.bf16.mxu0 %vm638_vm0, %v2072_v37 }
  0x54   : > { %1997 = vmatprep.mubr.msk.bf16.mxu1 %vm638_vm0, %v2073_v38 }
  0x5a   : > { %1934 = vmatmul.mubr.msk.bf16.gmra.mrb[36].mxu0 %vm638_vm0, %v2074_v39 }
  0x5b   : > { %1998 = vmatmul.mubr.msk.bf16.gmra.mrb[36].mxu1 %vm638_vm0, %v2075_v40  ;;  %1937 = vmatprep.mubr.msk.bf16.mxu0 %vm638_vm0, %v2076_v41 }
  0x5c   : > { %2001 = vmatprep.mubr.msk.bf16.mxu1 %vm638_vm0, %v2077_v42 }
  0x62   : > { %1938 = vmatmul.mubr.msk.bf16.gmra.mrb[40].mxu0 %vm638_vm0, %v2078_v43 }
  0x63   : > { %2002 = vmatmul.mubr.msk.bf16.gmra.mrb[40].mxu1 %vm638_vm0, %v2079_v44  ;;  %1941 = vmatprep.mubr.msk.bf16.mxu0 %vm638_vm0, %v2080_v45 }
  0x64   : > { %2005 = vmatprep.mubr.msk.bf16.mxu1 %vm638_vm0, %v2081_v46 }
  0x6a   : > { %1942 = vmatmul.mubr.msk.bf16.gmra.mrb[44].mxu0 %vm638_vm0, %v2082_v47 }
  0x6b   : > { %2006 = vmatmul.mubr.msk.bf16.gmra.mrb[44].mxu1 %vm638_vm0, %v2083_v48  ;;  %1945 = vmatprep.mubr.msk.bf16.mxu0 %vm638_vm0, %v2084_v49 }
  0x6c   : > { %2009 = vmatprep.mubr.msk.bf16.mxu1 %vm638_vm0, %v2085_v50 }
  0x72   : > { %1946 = vmatmul.mubr.msk.bf16.gmra.mrb[48].mxu0 %vm638_vm0, %v2086_v51 }
  0x73   : > { %2010 = vmatmul.mubr.msk.bf16.gmra.mrb[48].mxu1 %vm638_vm0, %v2087_v52  ;;  %1949 = vmatprep.mubr.msk.bf16.mxu0 %vm638_vm0, %v2088_v53 }
  0x74   : > { %2013 = vmatprep.mubr.msk.bf16.mxu1 %vm638_vm0, %v2089_v54 }
  0x7a   : > { %1950 = vmatmul.mubr.msk.bf16.gmra.mrb[52].mxu0 %vm638_vm0, %v2090_v55 }
  0x7b   : > { %2014 = vmatmul.mubr.msk.bf16.gmra.mrb[52].mxu1 %vm638_vm0, %v2091_v56  ;;  %1953 = vmatprep.mubr.msk.bf16.mxu0 %vm638_vm0, %v2092_v57 }
  0x7c   : > { %2017 = vmatprep.mubr.msk.bf16.mxu1 %vm638_vm0, %v2093_v58 }
  0x82   : > { %1954 = vmatmul.mubr.msk.bf16.gmra.mrb[56].mxu0 %vm638_vm0, %v2094_v59 }
  0x83   : > { %2018 = vmatmul.mubr.msk.bf16.gmra.mrb[56].mxu1 %vm638_vm0, %v2095_v60  ;;  %1957 = vmatprep.mubr.msk.bf16.mxu0 %vm638_vm0, %v2096_v61 }
  0x84   : > { %2021 = vmatprep.mubr.msk.bf16.mxu1 %vm638_vm0, %v2097_v62 }
  0x8a   : > { %1958 = vmatmul.mubr.msk.bf16.gmra.mrb[60].mxu0 %vm638_vm0, %v2098_v63 }
  0x8b   : > { %2022 = vmatmul.mubr.msk.bf16.gmra.mrb[60].mxu1 %vm638_vm0, %v2099_v0 }
  0xe5   : > { %v1899_v2 = vpop.f32.mrb[0].mxu0 }
  0xe6   : > { %v874_v3 = vadd.f32 %v1899_v2, %v2278_v1  ;;  %v1963_v4 = vpop.f32.mrb[0].mxu1  ;;  %v865_v5 = vpop.f32.mrb[1].mxu0 }
  0xe7   : > { %v1130_v6 = vadd.f32 %v1963_v4, %v2278_v1  ;;  %v866_v7 = vadd.f32 %v2278_v1, %v865_v5  ;;  %v1121_v8 = vpop.f32.mrb[1].mxu1  ;;  %v1900_v9 = vpop.f32.mrb[2].mxu0 }
  0xe8   : > { %v1378_v10 = vmax.f32 %v874_v3, 0.0  ;;  %v1122_v11 = vadd.f32 %v2278_v1, %v1121_v8  ;;  %v877_v12 = vadd.f32 %v1900_v9, %v2278_v1  ;;  %v1964_v13 = vpop.f32.mrb[2].mxu1  ;;  %v868_v14 = vpop.f32.mrb[3].mxu0 }
  0xe9   : > { %v1442_v15 = vmax.f32 %v1130_v6, 0.0  ;;  %v1376_v16 = vmax.f32 %v866_v7, 0.0  ;;  %v1133_v17 = vadd.f32 %v1964_v13, %v2278_v1  ;;  %v869_v18 = vadd.f32 %v2278_v1, %v868_v14  ;;  %v1124_v19 = vpop.f32.mrb[3].mxu1 }
  0xea   : > { %1507 = vst.msk [vmem:[%s2285_s26 + $0x10] sm:$0xff] %vm1504_vm1, %v1378_v10  ;;  %v1440_v20 = vmax.f32 %v1122_v11, 0.0  ;;  %v1379_v21 = vmax.f32 %v877_v12, 0.0  ;;  %v1125_v22 = vadd.f32 %v2278_v1, %v1124_v19 }
  0xeb   : > { %1571 = vst.msk [vmem:[%s2285_s26 + $0x210] sm:$0xff] %vm1504_vm1, %v1442_v15  ;;  %1505 = vst.msk [vmem:[%s2285_s26] sm:$0xff] %vm1504_vm1, %v1376_v16  ;;  %v1443_v23 = vmax.f32 %v1133_v17, 0.0  ;;  %v1377_v24 = vmax.f32 %v869_v18, 0.0 }
  0xec   : > { %1569 = vst.msk [vmem:[%s2285_s26 + $0x200] sm:$0xff] %vm1504_vm1, %v1440_v20  ;;  %1508 = vst.msk [vmem:[%s2285_s26 + $0x18] sm:$0xff] %vm1504_vm1, %v1379_v21  ;;  %v1441_v25 = vmax.f32 %v1125_v22, 0.0 }
  0xed   : > { %1572 = vst.msk [vmem:[%s2285_s26 + $0x218] sm:$0xff] %vm1504_vm1, %v1443_v23  ;;  %1506 = vst.msk [vmem:[%s2285_s26 + $0x8] sm:$0xff] %vm1504_vm1, %v1377_v24  ;;  %v1903_v26 = vpop.f32.mrb[4].mxu0 }
  0xee   : > { %1570 = vst.msk [vmem:[%s2285_s26 + $0x208] sm:$0xff] %vm1504_vm1, %v1441_v25  ;;  %v890_v27 = vadd.f32 %v1903_v26, %v2278_v1  ;;  %v1967_v28 = vpop.f32.mrb[4].mxu1  ;;  %v881_v29 = vpop.f32.mrb[5].mxu0 }
  0xef   : > { %v1146_v30 = vadd.f32 %v1967_v28, %v2278_v1  ;;  %v882_v31 = vadd.f32 %v2278_v1, %v881_v29  ;;  %v1137_v32 = vpop.f32.mrb[5].mxu1  ;;  %v1904_v33 = vpop.f32.mrb[6].mxu0 }
  0xf0   : > { %v1382_v34 = vmax.f32 %v890_v27, 0.0  ;;  %v1138_v35 = vadd.f32 %v2278_v1, %v1137_v32  ;;  %v893_v36 = vadd.f32 %v1904_v33, %v2278_v1  ;;  %v1968_v37 = vpop.f32.mrb[6].mxu1  ;;  %v884_v38 = vpop.f32.mrb[7].mxu0 }
  0xf1   : > { %v1446_v39 = vmax.f32 %v1146_v30, 0.0  ;;  %v1380_v40 = vmax.f32 %v882_v31, 0.0  ;;  %v1149_v41 = vadd.f32 %v1968_v37, %v2278_v1  ;;  %v885_v42 = vadd.f32 %v2278_v1, %v884_v38  ;;  %v1140_v43 = vpop.f32.mrb[7].mxu1 }
  0xf2   : > { %1511 = vst.msk [vmem:[%s2285_s26 + $0x30] sm:$0xff] %vm1504_vm1, %v1382_v34  ;;  %v1444_v44 = vmax.f32 %v1138_v35, 0.0  ;;  %v1383_v45 = vmax.f32 %v893_v36, 0.0  ;;  %v1141_v46 = vadd.f32 %v2278_v1, %v1140_v43 }
  0xf3   : > { %1575 = vst.msk [vmem:[%s2285_s26 + $0x230] sm:$0xff] %vm1504_vm1, %v1446_v39  ;;  %1509 = vst.msk [vmem:[%s2285_s26 + $0x20] sm:$0xff] %vm1504_vm1, %v1380_v40  ;;  %v1447_v47 = vmax.f32 %v1149_v41, 0.0  ;;  %v1381_v48 = vmax.f32 %v885_v42, 0.0 }
  0xf4   : > { %1573 = vst.msk [vmem:[%s2285_s26 + $0x220] sm:$0xff] %vm1504_vm1, %v1444_v44  ;;  %1512 = vst.msk [vmem:[%s2285_s26 + $0x38] sm:$0xff] %vm1504_vm1, %v1383_v45  ;;  %v1445_v49 = vmax.f32 %v1141_v46, 0.0 }
  0xf5   : > { %1576 = vst.msk [vmem:[%s2285_s26 + $0x238] sm:$0xff] %vm1504_vm1, %v1447_v47  ;;  %1510 = vst.msk [vmem:[%s2285_s26 + $0x28] sm:$0xff] %vm1504_vm1, %v1381_v48  ;;  %v1907_v50 = vpop.f32.mrb[8].mxu0 }
  0xf6   : > { %1574 = vst.msk [vmem:[%s2285_s26 + $0x228] sm:$0xff] %vm1504_vm1, %v1445_v49  ;;  %v906_v51 = vadd.f32 %v1907_v50, %v2278_v1  ;;  %v1971_v52 = vpop.f32.mrb[8].mxu1  ;;  %v897_v53 = vpop.f32.mrb[9].mxu0 }
  0xf7   : > { %v1162_v54 = vadd.f32 %v1971_v52, %v2278_v1  ;;  %v898_v55 = vadd.f32 %v2278_v1, %v897_v53  ;;  %v1153_v56 = vpop.f32.mrb[9].mxu1  ;;  %v1908_v57 = vpop.f32.mrb[10].mxu0 }
  0xf8   : > { %v1386_v58 = vmax.f32 %v906_v51, 0.0  ;;  %v1154_v59 = vadd.f32 %v2278_v1, %v1153_v56  ;;  %v909_v60 = vadd.f32 %v1908_v57, %v2278_v1  ;;  %v1972_v61 = vpop.f32.mrb[10].mxu1  ;;  %v900_v62 = vpop.f32.mrb[11].mxu0 }
  0xf9   : > { %v1450_v63 = vmax.f32 %v1162_v54, 0.0  ;;  %v1384_v0 = vmax.f32 %v898_v55, 0.0  ;;  %v1165_v2 = vadd.f32 %v1972_v61, %v2278_v1  ;;  %v901_v3 = vadd.f32 %v2278_v1, %v900_v62  ;;  %v1156_v4 = vpop.f32.mrb[11].mxu1 }
  0xfa   : > { %1515 = vst.msk [vmem:[%s2285_s26 + $0x50] sm:$0xff] %vm1504_vm1, %v1386_v58  ;;  %v1448_v5 = vmax.f32 %v1154_v59, 0.0  ;;  %v1387_v6 = vmax.f32 %v909_v60, 0.0  ;;  %v1157_v7 = vadd.f32 %v2278_v1, %v1156_v4 }
  0xfb   : > { %1579 = vst.msk [vmem:[%s2285_s26 + $0x250] sm:$0xff] %vm1504_vm1, %v1450_v63  ;;  %1513 = vst.msk [vmem:[%s2285_s26 + $0x40] sm:$0xff] %vm1504_vm1, %v1384_v0  ;;  %v1451_v8 = vmax.f32 %v1165_v2, 0.0  ;;  %v1385_v9 = vmax.f32 %v901_v3, 0.0 }
  0xfc   : > { %1577 = vst.msk [vmem:[%s2285_s26 + $0x240] sm:$0xff] %vm1504_vm1, %v1448_v5  ;;  %1516 = vst.msk [vmem:[%s2285_s26 + $0x58] sm:$0xff] %vm1504_vm1, %v1387_v6  ;;  %v1449_v10 = vmax.f32 %v1157_v7, 0.0 }
  0xfd   : > { %1580 = vst.msk [vmem:[%s2285_s26 + $0x258] sm:$0xff] %vm1504_vm1, %v1451_v8  ;;  %1514 = vst.msk [vmem:[%s2285_s26 + $0x48] sm:$0xff] %vm1504_vm1, %v1385_v9  ;;  %v1911_v11 = vpop.f32.mrb[12].mxu0 }
  0xfe   : > { %1578 = vst.msk [vmem:[%s2285_s26 + $0x248] sm:$0xff] %vm1504_vm1, %v1449_v10  ;;  %v922_v12 = vadd.f32 %v1911_v11, %v2278_v1  ;;  %v1975_v13 = vpop.f32.mrb[12].mxu1  ;;  %v913_v14 = vpop.f32.mrb[13].mxu0 }
  0xff   : > { %v1178_v15 = vadd.f32 %v1975_v13, %v2278_v1  ;;  %v914_v16 = vadd.f32 %v2278_v1, %v913_v14  ;;  %v1169_v17 = vpop.f32.mrb[13].mxu1  ;;  %v1912_v18 = vpop.f32.mrb[14].mxu0 }
 0x100   : > { %v1390_v19 = vmax.f32 %v922_v12, 0.0  ;;  %v1170_v20 = vadd.f32 %v2278_v1, %v1169_v17  ;;  %v925_v21 = vadd.f32 %v1912_v18, %v2278_v1  ;;  %v1976_v22 = vpop.f32.mrb[14].mxu1  ;;  %v916_v23 = vpop.f32.mrb[15].mxu0 }
 0x101   : > { %v1454_v24 = vmax.f32 %v1178_v15, 0.0  ;;  %v1388_v25 = vmax.f32 %v914_v16, 0.0  ;;  %v1181_v26 = vadd.f32 %v1976_v22, %v2278_v1  ;;  %v917_v27 = vadd.f32 %v2278_v1, %v916_v23  ;;  %v1172_v28 = vpop.f32.mrb[15].mxu1 }
 0x102   : > { %1519 = vst.msk [vmem:[%s2285_s26 + $0x70] sm:$0xff] %vm1504_vm1, %v1390_v19  ;;  %v1452_v29 = vmax.f32 %v1170_v20, 0.0  ;;  %v1391_v30 = vmax.f32 %v925_v21, 0.0  ;;  %v1173_v31 = vadd.f32 %v2278_v1, %v1172_v28 }
 0x103   : > { %1583 = vst.msk [vmem:[%s2285_s26 + $0x270] sm:$0xff] %vm1504_vm1, %v1454_v24  ;;  %1517 = vst.msk [vmem:[%s2285_s26 + $0x60] sm:$0xff] %vm1504_vm1, %v1388_v25  ;;  %v1455_v32 = vmax.f32 %v1181_v26, 0.0  ;;  %v1389_v33 = vmax.f32 %v917_v27, 0.0 }
 0x104   : > { %1581 = vst.msk [vmem:[%s2285_s26 + $0x260] sm:$0xff] %vm1504_vm1, %v1452_v29  ;;  %1520 = vst.msk [vmem:[%s2285_s26 + $0x78] sm:$0xff] %vm1504_vm1, %v1391_v30  ;;  %v1453_v34 = vmax.f32 %v1173_v31, 0.0 }
 0x105   : > { %1584 = vst.msk [vmem:[%s2285_s26 + $0x278] sm:$0xff] %vm1504_vm1, %v1455_v32  ;;  %1518 = vst.msk [vmem:[%s2285_s26 + $0x68] sm:$0xff] %vm1504_vm1, %v1389_v33  ;;  %v1915_v35 = vpop.f32.mrb[16].mxu0 }
 0x106   : > { %1582 = vst.msk [vmem:[%s2285_s26 + $0x268] sm:$0xff] %vm1504_vm1, %v1453_v34  ;;  %v938_v36 = vadd.f32 %v1915_v35, %v2278_v1  ;;  %v1979_v37 = vpop.f32.mrb[16].mxu1  ;;  %v929_v38 = vpop.f32.mrb[17].mxu0 }
 0x107   : > { %v1194_v39 = vadd.f32 %v1979_v37, %v2278_v1  ;;  %v930_v40 = vadd.f32 %v2278_v1, %v929_v38  ;;  %v1185_v41 = vpop.f32.mrb[17].mxu1  ;;  %v1916_v42 = vpop.f32.mrb[18].mxu0 }
 0x108   : > { %v1394_v43 = vmax.f32 %v938_v36, 0.0  ;;  %v1186_v44 = vadd.f32 %v2278_v1, %v1185_v41  ;;  %v941_v45 = vadd.f32 %v1916_v42, %v2278_v1  ;;  %v1980_v46 = vpop.f32.mrb[18].mxu1  ;;  %v932_v47 = vpop.f32.mrb[19].mxu0 }
 0x109   : > { %v1458_v48 = vmax.f32 %v1194_v39, 0.0  ;;  %v1392_v49 = vmax.f32 %v930_v40, 0.0  ;;  %v1197_v50 = vadd.f32 %v1980_v46, %v2278_v1  ;;  %v933_v51 = vadd.f32 %v2278_v1, %v932_v47  ;;  %v1188_v52 = vpop.f32.mrb[19].mxu1 }
 0x10a   : > { %1523 = vst.msk [vmem:[%s2285_s26 + $0x90] sm:$0xff] %vm1504_vm1, %v1394_v43  ;;  %v1456_v53 = vmax.f32 %v1186_v44, 0.0  ;;  %v1395_v54 = vmax.f32 %v941_v45, 0.0  ;;  %v1189_v55 = vadd.f32 %v2278_v1, %v1188_v52 }
 0x10b   : > { %1587 = vst.msk [vmem:[%s2285_s26 + $0x290] sm:$0xff] %vm1504_vm1, %v1458_v48  ;;  %1521 = vst.msk [vmem:[%s2285_s26 + $0x80] sm:$0xff] %vm1504_vm1, %v1392_v49  ;;  %v1459_v56 = vmax.f32 %v1197_v50, 0.0  ;;  %v1393_v57 = vmax.f32 %v933_v51, 0.0 }
 0x10c   : > { %1585 = vst.msk [vmem:[%s2285_s26 + $0x280] sm:$0xff] %vm1504_vm1, %v1456_v53  ;;  %1524 = vst.msk [vmem:[%s2285_s26 + $0x98] sm:$0xff] %vm1504_vm1, %v1395_v54  ;;  %v1457_v58 = vmax.f32 %v1189_v55, 0.0 }
 0x10d   : > { %1588 = vst.msk [vmem:[%s2285_s26 + $0x298] sm:$0xff] %vm1504_vm1, %v1459_v56  ;;  %1522 = vst.msk [vmem:[%s2285_s26 + $0x88] sm:$0xff] %vm1504_vm1, %v1393_v57  ;;  %v1919_v59 = vpop.f32.mrb[20].mxu0 }
 0x10e   : > { %1586 = vst.msk [vmem:[%s2285_s26 + $0x288] sm:$0xff] %vm1504_vm1, %v1457_v58  ;;  %v954_v60 = vadd.f32 %v1919_v59, %v2278_v1  ;;  %v1983_v61 = vpop.f32.mrb[20].mxu1  ;;  %v945_v62 = vpop.f32.mrb[21].mxu0 }
 0x10f   : > { %v1210_v63 = vadd.f32 %v1983_v61, %v2278_v1  ;;  %v946_v0 = vadd.f32 %v2278_v1, %v945_v62  ;;  %v1201_v2 = vpop.f32.mrb[21].mxu1  ;;  %v1920_v3 = vpop.f32.mrb[22].mxu0 }
 0x110   : > { %v1398_v4 = vmax.f32 %v954_v60, 0.0  ;;  %v1202_v5 = vadd.f32 %v2278_v1, %v1201_v2  ;;  %v957_v6 = vadd.f32 %v1920_v3, %v2278_v1  ;;  %v1984_v7 = vpop.f32.mrb[22].mxu1  ;;  %v948_v8 = vpop.f32.mrb[23].mxu0 }
 0x111   : > { %v1462_v9 = vmax.f32 %v1210_v63, 0.0  ;;  %v1396_v10 = vmax.f32 %v946_v0, 0.0  ;;  %v1213_v11 = vadd.f32 %v1984_v7, %v2278_v1  ;;  %v949_v12 = vadd.f32 %v2278_v1, %v948_v8  ;;  %v1204_v13 = vpop.f32.mrb[23].mxu1 }
 0x112   : > { %1527 = vst.msk [vmem:[%s2285_s26 + $0xb0] sm:$0xff] %vm1504_vm1, %v1398_v4  ;;  %v1460_v14 = vmax.f32 %v1202_v5, 0.0  ;;  %v1399_v15 = vmax.f32 %v957_v6, 0.0  ;;  %v1205_v16 = vadd.f32 %v2278_v1, %v1204_v13 }
 0x113   : > { %1591 = vst.msk [vmem:[%s2285_s26 + $0x2b0] sm:$0xff] %vm1504_vm1, %v1462_v9  ;;  %1525 = vst.msk [vmem:[%s2285_s26 + $0xa0] sm:$0xff] %vm1504_vm1, %v1396_v10  ;;  %v1463_v17 = vmax.f32 %v1213_v11, 0.0  ;;  %v1397_v18 = vmax.f32 %v949_v12, 0.0 }
 0x114   : > { %1589 = vst.msk [vmem:[%s2285_s26 + $0x2a0] sm:$0xff] %vm1504_vm1, %v1460_v14  ;;  %1528 = vst.msk [vmem:[%s2285_s26 + $0xb8] sm:$0xff] %vm1504_vm1, %v1399_v15  ;;  %v1461_v19 = vmax.f32 %v1205_v16, 0.0 }
 0x115   : > { %1592 = vst.msk [vmem:[%s2285_s26 + $0x2b8] sm:$0xff] %vm1504_vm1, %v1463_v17  ;;  %1526 = vst.msk [vmem:[%s2285_s26 + $0xa8] sm:$0xff] %vm1504_vm1, %v1397_v18  ;;  %v1923_v20 = vpop.f32.mrb[24].mxu0 }
 0x116   : > { %1590 = vst.msk [vmem:[%s2285_s26 + $0x2a8] sm:$0xff] %vm1504_vm1, %v1461_v19  ;;  %v970_v21 = vadd.f32 %v1923_v20, %v2278_v1  ;;  %v1987_v22 = vpop.f32.mrb[24].mxu1  ;;  %v961_v23 = vpop.f32.mrb[25].mxu0 }
 0x117   : > { %v1226_v24 = vadd.f32 %v1987_v22, %v2278_v1  ;;  %v962_v25 = vadd.f32 %v2278_v1, %v961_v23  ;;  %v1217_v26 = vpop.f32.mrb[25].mxu1  ;;  %v1924_v27 = vpop.f32.mrb[26].mxu0 }
 0x118   : > { %v1402_v28 = vmax.f32 %v970_v21, 0.0  ;;  %v1218_v29 = vadd.f32 %v2278_v1, %v1217_v26  ;;  %v973_v30 = vadd.f32 %v1924_v27, %v2278_v1  ;;  %v1988_v31 = vpop.f32.mrb[26].mxu1  ;;  %v964_v32 = vpop.f32.mrb[27].mxu0 }
 0x119   : > { %v1466_v33 = vmax.f32 %v1226_v24, 0.0  ;;  %v1400_v34 = vmax.f32 %v962_v25, 0.0  ;;  %v1229_v35 = vadd.f32 %v1988_v31, %v2278_v1  ;;  %v965_v36 = vadd.f32 %v2278_v1, %v964_v32  ;;  %v1220_v37 = vpop.f32.mrb[27].mxu1 }
 0x11a   : > { %1531 = vst.msk [vmem:[%s2285_s26 + $0xd0] sm:$0xff] %vm1504_vm1, %v1402_v28  ;;  %v1464_v38 = vmax.f32 %v1218_v29, 0.0  ;;  %v1403_v39 = vmax.f32 %v973_v30, 0.0  ;;  %v1221_v40 = vadd.f32 %v2278_v1, %v1220_v37 }
 0x11b   : > { %1595 = vst.msk [vmem:[%s2285_s26 + $0x2d0] sm:$0xff] %vm1504_vm1, %v1466_v33  ;;  %1529 = vst.msk [vmem:[%s2285_s26 + $0xc0] sm:$0xff] %vm1504_vm1, %v1400_v34  ;;  %v1467_v41 = vmax.f32 %v1229_v35, 0.0  ;;  %v1401_v42 = vmax.f32 %v965_v36, 0.0 }
 0x11c   : > { %1593 = vst.msk [vmem:[%s2285_s26 + $0x2c0] sm:$0xff] %vm1504_vm1, %v1464_v38  ;;  %1532 = vst.msk [vmem:[%s2285_s26 + $0xd8] sm:$0xff] %vm1504_vm1, %v1403_v39  ;;  %v1465_v43 = vmax.f32 %v1221_v40, 0.0 }
 0x11d   : > { %1596 = vst.msk [vmem:[%s2285_s26 + $0x2d8] sm:$0xff] %vm1504_vm1, %v1467_v41  ;;  %1530 = vst.msk [vmem:[%s2285_s26 + $0xc8] sm:$0xff] %vm1504_vm1, %v1401_v42  ;;  %v1927_v44 = vpop.f32.mrb[28].mxu0 }
 0x11e   : > { %1594 = vst.msk [vmem:[%s2285_s26 + $0x2c8] sm:$0xff] %vm1504_vm1, %v1465_v43  ;;  %v986_v45 = vadd.f32 %v1927_v44, %v2278_v1  ;;  %v1991_v46 = vpop.f32.mrb[28].mxu1  ;;  %v977_v47 = vpop.f32.mrb[29].mxu0 }
 0x11f   : > { %v1242_v48 = vadd.f32 %v1991_v46, %v2278_v1  ;;  %v978_v49 = vadd.f32 %v2278_v1, %v977_v47  ;;  %v1233_v50 = vpop.f32.mrb[29].mxu1  ;;  %v1928_v51 = vpop.f32.mrb[30].mxu0 }
 0x120   : > { %v1406_v52 = vmax.f32 %v986_v45, 0.0  ;;  %v1234_v53 = vadd.f32 %v2278_v1, %v1233_v50  ;;  %v989_v54 = vadd.f32 %v1928_v51, %v2278_v1  ;;  %v1992_v55 = vpop.f32.mrb[30].mxu1  ;;  %v980_v56 = vpop.f32.mrb[31].mxu0 }
 0x121   : > { %v1470_v57 = vmax.f32 %v1242_v48, 0.0  ;;  %v1404_v58 = vmax.f32 %v978_v49, 0.0  ;;  %v1245_v59 = vadd.f32 %v1992_v55, %v2278_v1  ;;  %v981_v60 = vadd.f32 %v2278_v1, %v980_v56  ;;  %v1236_v61 = vpop.f32.mrb[31].mxu1 }
 0x122   : > { %1535 = vst.msk [vmem:[%s2285_s26 + $0xf0] sm:$0xff] %vm1504_vm1, %v1406_v52  ;;  %v1468_v62 = vmax.f32 %v1234_v53, 0.0  ;;  %v1407_v63 = vmax.f32 %v989_v54, 0.0  ;;  %v1237_v0 = vadd.f32 %v2278_v1, %v1236_v61 }
 0x123   : > { %1599 = vst.msk [vmem:[%s2285_s26 + $0x2f0] sm:$0xff] %vm1504_vm1, %v1470_v57  ;;  %1533 = vst.msk [vmem:[%s2285_s26 + $0xe0] sm:$0xff] %vm1504_vm1, %v1404_v58  ;;  %v1471_v2 = vmax.f32 %v1245_v59, 0.0  ;;  %v1405_v3 = vmax.f32 %v981_v60, 0.0 }
 0x124   : > { %1597 = vst.msk [vmem:[%s2285_s26 + $0x2e0] sm:$0xff] %vm1504_vm1, %v1468_v62  ;;  %1536 = vst.msk [vmem:[%s2285_s26 + $0xf8] sm:$0xff] %vm1504_vm1, %v1407_v63  ;;  %v1469_v4 = vmax.f32 %v1237_v0, 0.0 }
 0x125   : > { %1600 = vst.msk [vmem:[%s2285_s26 + $0x2f8] sm:$0xff] %vm1504_vm1, %v1471_v2  ;;  %1534 = vst.msk [vmem:[%s2285_s26 + $0xe8] sm:$0xff] %vm1504_vm1, %v1405_v3  ;;  %v1931_v5 = vpop.f32.mrb[32].mxu0 }
 0x126   : > { %1598 = vst.msk [vmem:[%s2285_s26 + $0x2e8] sm:$0xff] %vm1504_vm1, %v1469_v4  ;;  %v1002_v6 = vadd.f32 %v1931_v5, %v2278_v1  ;;  %v1995_v7 = vpop.f32.mrb[32].mxu1  ;;  %v993_v8 = vpop.f32.mrb[33].mxu0 }
 0x127   : > { %v1258_v9 = vadd.f32 %v1995_v7, %v2278_v1  ;;  %v994_v10 = vadd.f32 %v2278_v1, %v993_v8  ;;  %v1249_v11 = vpop.f32.mrb[33].mxu1  ;;  %v1932_v12 = vpop.f32.mrb[34].mxu0 }
 0x128   : > { %v1410_v13 = vmax.f32 %v1002_v6, 0.0  ;;  %v1250_v14 = vadd.f32 %v2278_v1, %v1249_v11  ;;  %v1005_v15 = vadd.f32 %v1932_v12, %v2278_v1  ;;  %v1996_v16 = vpop.f32.mrb[34].mxu1  ;;  %v996_v17 = vpop.f32.mrb[35].mxu0 }
 0x129   : > { %v1474_v18 = vmax.f32 %v1258_v9, 0.0  ;;  %v1408_v19 = vmax.f32 %v994_v10, 0.0  ;;  %v1261_v20 = vadd.f32 %v1996_v16, %v2278_v1  ;;  %v997_v21 = vadd.f32 %v2278_v1, %v996_v17  ;;  %v1252_v22 = vpop.f32.mrb[35].mxu1 }
 0x12a   : > { %1539 = vst.msk [vmem:[%s2285_s26 + $0x110] sm:$0xff] %vm1504_vm1, %v1410_v13  ;;  %v1472_v23 = vmax.f32 %v1250_v14, 0.0  ;;  %v1411_v24 = vmax.f32 %v1005_v15, 0.0  ;;  %v1253_v25 = vadd.f32 %v2278_v1, %v1252_v22 }
 0x12b   : > { %1603 = vst.msk [vmem:[%s2285_s26 + $0x310] sm:$0xff] %vm1504_vm1, %v1474_v18  ;;  %1537 = vst.msk [vmem:[%s2285_s26 + $0x100] sm:$0xff] %vm1504_vm1, %v1408_v19  ;;  %v1475_v26 = vmax.f32 %v1261_v20, 0.0  ;;  %v1409_v27 = vmax.f32 %v997_v21, 0.0 }
 0x12c   : > { %1601 = vst.msk [vmem:[%s2285_s26 + $0x300] sm:$0xff] %vm1504_vm1, %v1472_v23  ;;  %1540 = vst.msk [vmem:[%s2285_s26 + $0x118] sm:$0xff] %vm1504_vm1, %v1411_v24  ;;  %v1473_v28 = vmax.f32 %v1253_v25, 0.0 }
 0x12d   : > { %1604 = vst.msk [vmem:[%s2285_s26 + $0x318] sm:$0xff] %vm1504_vm1, %v1475_v26  ;;  %1538 = vst.msk [vmem:[%s2285_s26 + $0x108] sm:$0xff] %vm1504_vm1, %v1409_v27  ;;  %v1935_v29 = vpop.f32.mrb[36].mxu0 }
 0x12e   : > { %1602 = vst.msk [vmem:[%s2285_s26 + $0x308] sm:$0xff] %vm1504_vm1, %v1473_v28  ;;  %v1018_v30 = vadd.f32 %v1935_v29, %v2278_v1  ;;  %v1999_v31 = vpop.f32.mrb[36].mxu1  ;;  %v1009_v32 = vpop.f32.mrb[37].mxu0 }
 0x12f   : > { %v1274_v33 = vadd.f32 %v1999_v31, %v2278_v1  ;;  %v1010_v34 = vadd.f32 %v2278_v1, %v1009_v32  ;;  %v1265_v35 = vpop.f32.mrb[37].mxu1  ;;  %v1936_v36 = vpop.f32.mrb[38].mxu0 }
 0x130   : > { %v1414_v37 = vmax.f32 %v1018_v30, 0.0  ;;  %v1266_v38 = vadd.f32 %v2278_v1, %v1265_v35  ;;  %v1021_v39 = vadd.f32 %v1936_v36, %v2278_v1  ;;  %v2000_v40 = vpop.f32.mrb[38].mxu1  ;;  %v1012_v41 = vpop.f32.mrb[39].mxu0 }
 0x131   : > { %v1478_v42 = vmax.f32 %v1274_v33, 0.0  ;;  %v1412_v43 = vmax.f32 %v1010_v34, 0.0  ;;  %v1277_v44 = vadd.f32 %v2000_v40, %v2278_v1  ;;  %v1013_v45 = vadd.f32 %v2278_v1, %v1012_v41  ;;  %v1268_v46 = vpop.f32.mrb[39].mxu1 }
 0x132   : > { %1543 = vst.msk [vmem:[%s2285_s26 + $0x130] sm:$0xff] %vm1504_vm1, %v1414_v37  ;;  %v1476_v47 = vmax.f32 %v1266_v38, 0.0  ;;  %v1415_v48 = vmax.f32 %v1021_v39, 0.0  ;;  %v1269_v49 = vadd.f32 %v2278_v1, %v1268_v46 }
 0x133   : > { %1607 = vst.msk [vmem:[%s2285_s26 + $0x330] sm:$0xff] %vm1504_vm1, %v1478_v42  ;;  %1541 = vst.msk [vmem:[%s2285_s26 + $0x120] sm:$0xff] %vm1504_vm1, %v1412_v43  ;;  %v1479_v50 = vmax.f32 %v1277_v44, 0.0  ;;  %v1413_v51 = vmax.f32 %v1013_v45, 0.0 }
 0x134   : > { %1605 = vst.msk [vmem:[%s2285_s26 + $0x320] sm:$0xff] %vm1504_vm1, %v1476_v47  ;;  %1544 = vst.msk [vmem:[%s2285_s26 + $0x138] sm:$0xff] %vm1504_vm1, %v1415_v48  ;;  %v1477_v52 = vmax.f32 %v1269_v49, 0.0 }
 0x135   : > { %1608 = vst.msk [vmem:[%s2285_s26 + $0x338] sm:$0xff] %vm1504_vm1, %v1479_v50  ;;  %1542 = vst.msk [vmem:[%s2285_s26 + $0x128] sm:$0xff] %vm1504_vm1, %v1413_v51  ;;  %v1939_v53 = vpop.f32.mrb[40].mxu0 }
 0x136   : > { %1606 = vst.msk [vmem:[%s2285_s26 + $0x328] sm:$0xff] %vm1504_vm1, %v1477_v52  ;;  %v1034_v54 = vadd.f32 %v1939_v53, %v2278_v1  ;;  %v2003_v55 = vpop.f32.mrb[40].mxu1  ;;  %v1025_v56 = vpop.f32.mrb[41].mxu0 }
 0x137   : > { %v1290_v57 = vadd.f32 %v2003_v55, %v2278_v1  ;;  %v1026_v58 = vadd.f32 %v2278_v1, %v1025_v56  ;;  %v1281_v59 = vpop.f32.mrb[41].mxu1  ;;  %v1940_v60 = vpop.f32.mrb[42].mxu0 }
 0x138   : > { %v1418_v61 = vmax.f32 %v1034_v54, 0.0  ;;  %v1282_v62 = vadd.f32 %v2278_v1, %v1281_v59  ;;  %v1037_v63 = vadd.f32 %v1940_v60, %v2278_v1  ;;  %v2004_v0 = vpop.f32.mrb[42].mxu1  ;;  %v1028_v2 = vpop.f32.mrb[43].mxu0 }
 0x139   : > { %v1482_v3 = vmax.f32 %v1290_v57, 0.0  ;;  %v1416_v4 = vmax.f32 %v1026_v58, 0.0  ;;  %v1293_v5 = vadd.f32 %v2004_v0, %v2278_v1  ;;  %v1029_v6 = vadd.f32 %v2278_v1, %v1028_v2  ;;  %v1284_v7 = vpop.f32.mrb[43].mxu1 }
 0x13a   : > { %1547 = vst.msk [vmem:[%s2285_s26 + $0x150] sm:$0xff] %vm1504_vm1, %v1418_v61  ;;  %v1480_v8 = vmax.f32 %v1282_v62, 0.0  ;;  %v1419_v9 = vmax.f32 %v1037_v63, 0.0  ;;  %v1285_v10 = vadd.f32 %v2278_v1, %v1284_v7 }
 0x13b   : > { %1611 = vst.msk [vmem:[%s2285_s26 + $0x350] sm:$0xff] %vm1504_vm1, %v1482_v3  ;;  %1545 = vst.msk [vmem:[%s2285_s26 + $0x140] sm:$0xff] %vm1504_vm1, %v1416_v4  ;;  %v1483_v11 = vmax.f32 %v1293_v5, 0.0  ;;  %v1417_v12 = vmax.f32 %v1029_v6, 0.0 }
 0x13c   : > { %1609 = vst.msk [vmem:[%s2285_s26 + $0x340] sm:$0xff] %vm1504_vm1, %v1480_v8  ;;  %1548 = vst.msk [vmem:[%s2285_s26 + $0x158] sm:$0xff] %vm1504_vm1, %v1419_v9  ;;  %v1481_v13 = vmax.f32 %v1285_v10, 0.0 }
 0x13d   : > { %1612 = vst.msk [vmem:[%s2285_s26 + $0x358] sm:$0xff] %vm1504_vm1, %v1483_v11  ;;  %1546 = vst.msk [vmem:[%s2285_s26 + $0x148] sm:$0xff] %vm1504_vm1, %v1417_v12  ;;  %v1943_v14 = vpop.f32.mrb[44].mxu0 }
 0x13e   : > { %1610 = vst.msk [vmem:[%s2285_s26 + $0x348] sm:$0xff] %vm1504_vm1, %v1481_v13  ;;  %v1050_v15 = vadd.f32 %v1943_v14, %v2278_v1  ;;  %v2007_v16 = vpop.f32.mrb[44].mxu1  ;;  %v1041_v17 = vpop.f32.mrb[45].mxu0 }
 0x13f   : > { %v1306_v18 = vadd.f32 %v2007_v16, %v2278_v1  ;;  %v1042_v19 = vadd.f32 %v2278_v1, %v1041_v17  ;;  %v1297_v20 = vpop.f32.mrb[45].mxu1  ;;  %v1944_v21 = vpop.f32.mrb[46].mxu0 }
 0x140   : > { %v1422_v22 = vmax.f32 %v1050_v15, 0.0  ;;  %v1298_v23 = vadd.f32 %v2278_v1, %v1297_v20  ;;  %v1053_v24 = vadd.f32 %v1944_v21, %v2278_v1  ;;  %v2008_v25 = vpop.f32.mrb[46].mxu1  ;;  %v1044_v26 = vpop.f32.mrb[47].mxu0 }
 0x141   : > { %v1486_v27 = vmax.f32 %v1306_v18, 0.0  ;;  %v1420_v28 = vmax.f32 %v1042_v19, 0.0  ;;  %v1309_v29 = vadd.f32 %v2008_v25, %v2278_v1  ;;  %v1045_v30 = vadd.f32 %v2278_v1, %v1044_v26  ;;  %v1300_v31 = vpop.f32.mrb[47].mxu1 }
 0x142   : > { %1551 = vst.msk [vmem:[%s2285_s26 + $0x170] sm:$0xff] %vm1504_vm1, %v1422_v22  ;;  %v1484_v32 = vmax.f32 %v1298_v23, 0.0  ;;  %v1423_v33 = vmax.f32 %v1053_v24, 0.0  ;;  %v1301_v34 = vadd.f32 %v2278_v1, %v1300_v31 }
 0x143   : > { %1615 = vst.msk [vmem:[%s2285_s26 + $0x370] sm:$0xff] %vm1504_vm1, %v1486_v27  ;;  %1549 = vst.msk [vmem:[%s2285_s26 + $0x160] sm:$0xff] %vm1504_vm1, %v1420_v28  ;;  %v1487_v35 = vmax.f32 %v1309_v29, 0.0  ;;  %v1421_v36 = vmax.f32 %v1045_v30, 0.0 }
 0x144   : > { %1613 = vst.msk [vmem:[%s2285_s26 + $0x360] sm:$0xff] %vm1504_vm1, %v1484_v32  ;;  %1552 = vst.msk [vmem:[%s2285_s26 + $0x178] sm:$0xff] %vm1504_vm1, %v1423_v33  ;;  %v1485_v37 = vmax.f32 %v1301_v34, 0.0 }
 0x145   : > { %1616 = vst.msk [vmem:[%s2285_s26 + $0x378] sm:$0xff] %vm1504_vm1, %v1487_v35  ;;  %1550 = vst.msk [vmem:[%s2285_s26 + $0x168] sm:$0xff] %vm1504_vm1, %v1421_v36  ;;  %v1947_v38 = vpop.f32.mrb[48].mxu0 }
 0x146   : > { %1614 = vst.msk [vmem:[%s2285_s26 + $0x368] sm:$0xff] %vm1504_vm1, %v1485_v37  ;;  %v1066_v39 = vadd.f32 %v1947_v38, %v2278_v1  ;;  %v2011_v40 = vpop.f32.mrb[48].mxu1  ;;  %v1057_v41 = vpop.f32.mrb[49].mxu0 }
 0x147   : > { %v1322_v42 = vadd.f32 %v2011_v40, %v2278_v1  ;;  %v1058_v43 = vadd.f32 %v2278_v1, %v1057_v41  ;;  %v1313_v44 = vpop.f32.mrb[49].mxu1  ;;  %v1948_v45 = vpop.f32.mrb[50].mxu0 }
 0x148   : > { %v1426_v46 = vmax.f32 %v1066_v39, 0.0  ;;  %v1314_v47 = vadd.f32 %v2278_v1, %v1313_v44  ;;  %v1069_v48 = vadd.f32 %v1948_v45, %v2278_v1  ;;  %v2012_v49 = vpop.f32.mrb[50].mxu1  ;;  %v1060_v50 = vpop.f32.mrb[51].mxu0 }
 0x149   : > { %v1490_v51 = vmax.f32 %v1322_v42, 0.0  ;;  %v1424_v52 = vmax.f32 %v1058_v43, 0.0  ;;  %v1325_v53 = vadd.f32 %v2012_v49, %v2278_v1  ;;  %v1061_v54 = vadd.f32 %v2278_v1, %v1060_v50  ;;  %v1316_v55 = vpop.f32.mrb[51].mxu1 }
 0x14a   : > { %1555 = vst.msk [vmem:[%s2285_s26 + $0x190] sm:$0xff] %vm1504_vm1, %v1426_v46  ;;  %v1488_v56 = vmax.f32 %v1314_v47, 0.0  ;;  %v1427_v57 = vmax.f32 %v1069_v48, 0.0  ;;  %v1317_v58 = vadd.f32 %v2278_v1, %v1316_v55 }
 0x14b   : > { %1619 = vst.msk [vmem:[%s2285_s26 + $0x390] sm:$0xff] %vm1504_vm1, %v1490_v51  ;;  %1553 = vst.msk [vmem:[%s2285_s26 + $0x180] sm:$0xff] %vm1504_vm1, %v1424_v52  ;;  %v1491_v59 = vmax.f32 %v1325_v53, 0.0  ;;  %v1425_v60 = vmax.f32 %v1061_v54, 0.0 }
 0x14c   : > { %1617 = vst.msk [vmem:[%s2285_s26 + $0x380] sm:$0xff] %vm1504_vm1, %v1488_v56  ;;  %1556 = vst.msk [vmem:[%s2285_s26 + $0x198] sm:$0xff] %vm1504_vm1, %v1427_v57  ;;  %v1489_v61 = vmax.f32 %v1317_v58, 0.0 }
 0x14d   : > { %1620 = vst.msk [vmem:[%s2285_s26 + $0x398] sm:$0xff] %vm1504_vm1, %v1491_v59  ;;  %1554 = vst.msk [vmem:[%s2285_s26 + $0x188] sm:$0xff] %vm1504_vm1, %v1425_v60  ;;  %v1951_v62 = vpop.f32.mrb[52].mxu0 }
 0x14e   : > { %1618 = vst.msk [vmem:[%s2285_s26 + $0x388] sm:$0xff] %vm1504_vm1, %v1489_v61  ;;  %v1082_v63 = vadd.f32 %v1951_v62, %v2278_v1  ;;  %v2015_v0 = vpop.f32.mrb[52].mxu1  ;;  %v1073_v2 = vpop.f32.mrb[53].mxu0 }
 0x14f   : > { %v1338_v3 = vadd.f32 %v2015_v0, %v2278_v1  ;;  %v1074_v4 = vadd.f32 %v2278_v1, %v1073_v2  ;;  %v1329_v5 = vpop.f32.mrb[53].mxu1  ;;  %v1952_v6 = vpop.f32.mrb[54].mxu0 }
 0x150   : > { %v1430_v7 = vmax.f32 %v1082_v63, 0.0  ;;  %v1330_v8 = vadd.f32 %v2278_v1, %v1329_v5  ;;  %v1085_v9 = vadd.f32 %v1952_v6, %v2278_v1  ;;  %v2016_v10 = vpop.f32.mrb[54].mxu1  ;;  %v1076_v11 = vpop.f32.mrb[55].mxu0 }
 0x151   : > { %v1494_v12 = vmax.f32 %v1338_v3, 0.0  ;;  %v1428_v13 = vmax.f32 %v1074_v4, 0.0  ;;  %v1341_v14 = vadd.f32 %v2016_v10, %v2278_v1  ;;  %v1077_v15 = vadd.f32 %v2278_v1, %v1076_v11  ;;  %v1332_v16 = vpop.f32.mrb[55].mxu1 }
 0x152   : > { %1559 = vst.msk [vmem:[%s2285_s26 + $0x1b0] sm:$0xff] %vm1504_vm1, %v1430_v7  ;;  %v1492_v17 = vmax.f32 %v1330_v8, 0.0  ;;  %v1431_v18 = vmax.f32 %v1085_v9, 0.0  ;;  %v1333_v19 = vadd.f32 %v2278_v1, %v1332_v16 }
 0x153   : > { %1623 = vst.msk [vmem:[%s2285_s26 + $0x3b0] sm:$0xff] %vm1504_vm1, %v1494_v12  ;;  %1557 = vst.msk [vmem:[%s2285_s26 + $0x1a0] sm:$0xff] %vm1504_vm1, %v1428_v13  ;;  %v1495_v20 = vmax.f32 %v1341_v14, 0.0  ;;  %v1429_v21 = vmax.f32 %v1077_v15, 0.0 }
 0x154   : > { %1621 = vst.msk [vmem:[%s2285_s26 + $0x3a0] sm:$0xff] %vm1504_vm1, %v1492_v17  ;;  %1560 = vst.msk [vmem:[%s2285_s26 + $0x1b8] sm:$0xff] %vm1504_vm1, %v1431_v18  ;;  %v1493_v22 = vmax.f32 %v1333_v19, 0.0 }
 0x155   : > { %1624 = vst.msk [vmem:[%s2285_s26 + $0x3b8] sm:$0xff] %vm1504_vm1, %v1495_v20  ;;  %1558 = vst.msk [vmem:[%s2285_s26 + $0x1a8] sm:$0xff] %vm1504_vm1, %v1429_v21  ;;  %v1955_v23 = vpop.f32.mrb[56].mxu0 }
 0x156   : > { %1622 = vst.msk [vmem:[%s2285_s26 + $0x3a8] sm:$0xff] %vm1504_vm1, %v1493_v22  ;;  %v1098_v24 = vadd.f32 %v1955_v23, %v2278_v1  ;;  %v2019_v25 = vpop.f32.mrb[56].mxu1  ;;  %v1089_v26 = vpop.f32.mrb[57].mxu0 }
 0x157   : > { %v1354_v27 = vadd.f32 %v2019_v25, %v2278_v1  ;;  %v1090_v28 = vadd.f32 %v2278_v1, %v1089_v26  ;;  %v1345_v29 = vpop.f32.mrb[57].mxu1  ;;  %v1956_v30 = vpop.f32.mrb[58].mxu0 }
 0x158   : > { %v1434_v31 = vmax.f32 %v1098_v24, 0.0  ;;  %v1346_v32 = vadd.f32 %v2278_v1, %v1345_v29  ;;  %v1101_v33 = vadd.f32 %v1956_v30, %v2278_v1  ;;  %v2020_v34 = vpop.f32.mrb[58].mxu1  ;;  %v1092_v35 = vpop.f32.mrb[59].mxu0 }
 0x159   : > { %v1498_v36 = vmax.f32 %v1354_v27, 0.0  ;;  %v1432_v37 = vmax.f32 %v1090_v28, 0.0  ;;  %v1357_v38 = vadd.f32 %v2020_v34, %v2278_v1  ;;  %v1093_v39 = vadd.f32 %v2278_v1, %v1092_v35  ;;  %v1348_v40 = vpop.f32.mrb[59].mxu1 }
 0x15a   : > { %1563 = vst.msk [vmem:[%s2285_s26 + $0x1d0] sm:$0xff] %vm1504_vm1, %v1434_v31  ;;  %v1496_v41 = vmax.f32 %v1346_v32, 0.0  ;;  %v1435_v42 = vmax.f32 %v1101_v33, 0.0  ;;  %v1349_v43 = vadd.f32 %v2278_v1, %v1348_v40 }
 0x15b   : > { %1627 = vst.msk [vmem:[%s2285_s26 + $0x3d0] sm:$0xff] %vm1504_vm1, %v1498_v36  ;;  %1561 = vst.msk [vmem:[%s2285_s26 + $0x1c0] sm:$0xff] %vm1504_vm1, %v1432_v37  ;;  %v1499_v44 = vmax.f32 %v1357_v38, 0.0  ;;  %v1433_v45 = vmax.f32 %v1093_v39, 0.0 }
 0x15c   : > { %1625 = vst.msk [vmem:[%s2285_s26 + $0x3c0] sm:$0xff] %vm1504_vm1, %v1496_v41  ;;  %1564 = vst.msk [vmem:[%s2285_s26 + $0x1d8] sm:$0xff] %vm1504_vm1, %v1435_v42  ;;  %v1497_v46 = vmax.f32 %v1349_v43, 0.0 }
 0x15d   : > { %1628 = vst.msk [vmem:[%s2285_s26 + $0x3d8] sm:$0xff] %vm1504_vm1, %v1499_v44  ;;  %1562 = vst.msk [vmem:[%s2285_s26 + $0x1c8] sm:$0xff] %vm1504_vm1, %v1433_v45  ;;  %v1959_v47 = vpop.f32.mrb[60].mxu0 }
 0x15e   : > { %1626 = vst.msk [vmem:[%s2285_s26 + $0x3c8] sm:$0xff] %vm1504_vm1, %v1497_v46  ;;  %v1114_v48 = vadd.f32 %v1959_v47, %v2278_v1  ;;  %v2023_v49 = vpop.f32.mrb[60].mxu1  ;;  %v1105_v50 = vpop.f32.mrb[61].mxu0 }
 0x15f   : > { %v1370_v51 = vadd.f32 %v2023_v49, %v2278_v1  ;;  %v1106_v52 = vadd.f32 %v2278_v1, %v1105_v50  ;;  %v1361_v53 = vpop.f32.mrb[61].mxu1  ;;  %v1960_v54 = vpop.f32.mrb[62].mxu0 }
 0x160   : > { %v1438_v55 = vmax.f32 %v1114_v48, 0.0  ;;  %v1362_v56 = vadd.f32 %v2278_v1, %v1361_v53  ;;  %v1117_v57 = vadd.f32 %v1960_v54, %v2278_v1  ;;  %v2024_v58 = vpop.f32.mrb[62].mxu1  ;;  %v1108_v59 = vpop.f32.mrb[63].mxu0 }
 0x161   : > { %v1502_v60 = vmax.f32 %v1370_v51, 0.0  ;;  %v1436_v61 = vmax.f32 %v1106_v52, 0.0  ;;  %v1373_v62 = vadd.f32 %v2024_v58, %v2278_v1  ;;  %v1109_v63 = vadd.f32 %v2278_v1, %v1108_v59  ;;  %v1364_v0 = vpop.f32.mrb[63].mxu1 }
 0x162   : > { %1567 = vst.msk [vmem:[%s2285_s26 + $0x1f0] sm:$0xff] %vm1504_vm1, %v1438_v55  ;;  %v1500_v2 = vmax.f32 %v1362_v56, 0.0  ;;  %v1439_v3 = vmax.f32 %v1117_v57, 0.0  ;;  %v1365_v4 = vadd.f32 %v2278_v1, %v1364_v0 }
 0x163   : > { %1631 = vst.msk [vmem:[%s2285_s26 + $0x3f0] sm:$0xff] %vm1504_vm1, %v1502_v60  ;;  %1565 = vst.msk [vmem:[%s2285_s26 + $0x1e0] sm:$0xff] %vm1504_vm1, %v1436_v61  ;;  %v1503_v5 = vmax.f32 %v1373_v62, 0.0  ;;  %v1437_v6 = vmax.f32 %v1109_v63, 0.0 }
 0x164   : > { %1629 = vst.msk [vmem:[%s2285_s26 + $0x3e0] sm:$0xff] %vm1504_vm1, %v1500_v2  ;;  %1568 = vst.msk [vmem:[%s2285_s26 + $0x1f8] sm:$0xff] %vm1504_vm1, %v1439_v3  ;;  %v1501_v7 = vmax.f32 %v1365_v4, 0.0 }
 0x165   : > { %1632 = vst.msk [vmem:[%s2285_s26 + $0x3f8] sm:$0xff] %vm1504_vm1, %v1503_v5  ;;  %1566 = vst.msk [vmem:[%s2285_s26 + $0x1e8] sm:$0xff] %vm1504_vm1, %v1437_v6 }
 0x166   : > { %1630 = vst.msk [vmem:[%s2285_s26 + $0x3e8] sm:$0xff] %vm1504_vm1, %v1501_v7 }
 0x167 PF: > { %s13_s12 = sadd.s32 1, %s2106_s12  }
 0x168   : > { %p10_p4 = scmp.ge.s32.totalorder %s13_s12, 4  }
 0x16a   :  { %12 = sbr.rel (!%p10_p4) target bundleno = 1 (0x1), region = 62 }

// kernel: net_forward.5
= control target key start
LH: loop header
LB: loop body
LE: loop exit
PB: predicated region body
PF: predicated region fallthrough
CT: control target
= control target key end

     0   :  { %s2324_s15 = smov 0   ;;  %s2815_s0 = inlined_call_operand.vmem [shape: bf16[512,576], index: 0, kind: input, shape index: {}]   ;;  %s2816_s1 = inlined_call_operand.vmem [shape: bf16[576,128], index: 1, kind: input, shape index: {}]   ;;  %s2817_s2 = inlined_call_operand.vmem [shape: f32[1,128], index: 2, kind: input, shape index: {}]   ;;  %s2818_s3 = inlined_call_operand.vmem [shape: f32[1,128], index: 3, kind: input, shape index: {}]   ;;  %s2819_s4 = inlined_call_operand.vmem [shape: f32[512,128], index: 4, kind: output, shape index: {}]  }
   0x1 LB: > { %s1688_s16 = sadd.s32 4294967295, %s2296_s15   ;;  %p1692_p0 = scmp.ge.s32.totalorder %s2296_s15, 1  ;;  %s2296_s15 = sphi %s2324_s15, %s14_s15  }
   0x2   : > { %p164_p1 = scmp.lt.s32.totalorder %s2296_s15, 3 }
   0x4   : > { %p165_p2 = pnand %p1692_p0, %p164_p1 }
   0x5   : > { %v2142_v0 = vld [vmem:[%s2816_s1 + $0x40] sm:$0xff] (!%p165_p2)   ;;  %s1693_s19 = sshll.u32 (!%p165_p2), %s1688_s16, 5  ;;  %v2144_v2 = vld [vmem:[%s2816_s1 + $0x48] sm:$0xff] (!%p165_p2)   ;;  %v2146_v4 = vld [vmem:[%s2816_s1 + $0x50] sm:$0xff] (!%p165_p2)   ;;  %vm996_vm0 = vcmask (!%p165_p2), 523264  }
   0x6   : > { %168 = sbr.rel (%p165_p2) target bundleno = 415 (0x19f), region = 36  ;;  %v2143_v1 = vld [vmem:[%s2816_s1] sm:$0xff] (!%p165_p2)   ;;  %1832 = vmatprep.subr.bf16.mxu0 (!%p165_p2), %v2142_v0  ;;  %2116 = vmatprep.subr.bf16.mxu1 (!%p165_p2), %v2142_v0  ;;  %p192_p3 = scmp.lt.s32.totalorder (!%p165_p2), %s1693_s19, 63  ;;  %v2145_v3 = vld [vmem:[%s2816_s1 + $0x8] sm:$0xff] (!%p165_p2)   ;;  %v2147_v5 = vld [vmem:[%s2816_s1 + $0x10] sm:$0xff] (!%p165_p2)  }
   0x7   : > { %1833 = vmatpush3.bf16.msra.mxu0 (!%p165_p2), %v2143_v1  ;;  %2124 = vmatpush3.bf16.msra.mxu1 (!%p165_p2), %v2143_v1  ;;  %v2148_v6 = vld [vmem:[%s2816_s1 + $0x58] sm:$0xff] (!%p165_p2)   ;;  %v2150_v8 = vld [vmem:[%s2816_s1 + $0x60] sm:$0xff] (!%p165_p2)   ;;  %v2152_v10 = vld [vmem:[%s2816_s1 + $0x68] sm:$0xff] (!%p165_p2)  }
   0x8   : > { %1834 = vmatprep.subr.bf16.mxu0 (!%p165_p2), %v2144_v2  ;;  %2117 = vmatprep.subr.bf16.mxu1 (!%p165_p2), %v2144_v2  ;;  %v2149_v7 = vld [vmem:[%s2816_s1 + $0x18] sm:$0xff] (!%p165_p2)   ;;  %v2151_v9 = vld [vmem:[%s2816_s1 + $0x20] sm:$0xff] (!%p165_p2)   ;;  %v2153_v13 = vld [vmem:[%s2816_s1 + $0x28] sm:$0xff] (!%p165_p2)  }
   0x9   : > { %v2154_v14 = vld [vmem:[%s2816_s1 + $0x70] sm:$0xff] (!%p165_p2)   ;;  %v2156_v16 = vld [vmem:[%s2816_s1 + $0x78] sm:$0xff] (!%p165_p2)   ;;  %v2164_v18 = vld [vmem:[%s2816_s1 + $0xc0] sm:$0xff] (!%p165_p2)  }
   0xa   : > { %v2155_v15 = vld [vmem:[%s2816_s1 + $0x30] sm:$0xff] (!%p165_p2)   ;;  %v2157_v17 = vld [vmem:[%s2816_s1 + $0x38] sm:$0xff] (!%p165_p2)   ;;  %v2167_v19 = vld [vmem:[%s2816_s1 + $0x100] sm:$0xff] (!%p165_p2)  }
   0xb   : > { %1835 = vmatpush3.bf16.msra.mxu0 (!%p165_p2), %v2145_v3  ;;  %2125 = vmatpush3.bf16.msra.mxu1 (!%p165_p2), %v2145_v3  ;;  %v2165_v22 = vld [vmem:[%s2816_s1 + $0x80] sm:$0xff] (!%p165_p2)   ;;  %v2166_v23 = vld [vmem:[%s2816_s1 + $0xc8] sm:$0xff] (!%p165_p2)   ;;  %v2175_v28 = vld [vmem:[%s2816_s1 + $0xd0] sm:$0xff] (!%p165_p2)  }
   0xc   : > { %1836 = vmatprep.subr.bf16.mxu0 (!%p165_p2), %v2146_v4  ;;  %2118 = vmatprep.subr.bf16.mxu1 (!%p165_p2), %v2146_v4  ;;  %v2168_v26 = vld [vmem:[%s2816_s1 + $0x88] sm:$0xff] (!%p165_p2)   ;;  %v2176_v30 = vld [vmem:[%s2816_s1 + $0x90] sm:$0xff] (!%p165_p2)   ;;  %v2177_v31 = vld [vmem:[%s2816_s1 + $0xd8] sm:$0xff] (!%p165_p2)  }
   0xd   : > { %s2821_s19 = smov (!%p192_p3, %s1693_s19), 63  ;;  %v2178_v34 = vld [vmem:[%s2816_s1 + $0x98] sm:$0xff]   ;;  %v2198_v35 = vld [vmem:[%s2816_s1 + $0x108] sm:$0xff]   ;;  %v2185_v37 = vld [vmem:[%s2816_s1 + $0xe0] sm:$0xff]  }
   0xe   : > { %s2132_s6 = smul.u32 20, %s2821_s19  ;;  %v2186_v39 = vld [vmem:[%s2816_s1 + $0xa0] sm:$0xff]   ;;  %v2187_v40 = vld [vmem:[%s2816_s1 + $0xe8] sm:$0xff]   ;;  %v2195_v46 = vld [vmem:[%s2816_s1 + $0xf0] sm:$0xff]   ;;  %s1696_s27 = sshll.u32 %s2821_s19, 3 }
   0xf   : > { %1837 = vmatpush3.bf16.msra.mxu0 %v2147_v5  ;;  %2126 = vmatpush3.bf16.msra.mxu1 %v2147_v5  ;;  %v2188_v43 = vld [vmem:[%s2816_s1 + $0xa8] sm:$0xff]   ;;  %v2218_v47 = vld [vmem:[%s2816_s1 + $0x110] sm:$0xff]   ;;  %v2197_v49 = vld [vmem:[%s2816_s1 + $0xf8] sm:$0xff]   ;;  %s2654_s29 = scalar_lea.vmem %s2819_s4, %s1696_s27 }
  0x10   : > { %1838 = vmatprep.subr.bf16.mxu0 %v2148_v6  ;;  %2119 = vmatprep.subr.bf16.mxu1 %v2148_v6  ;;  %s2365_s13 = scalar_lea.vmem %s2815_s0, %s2132_s6  ;;  %v2196_v48 = vld [vmem:[%s2816_s1 + $0xb0] sm:$0xff]   ;;  %v2199_v52 = vld [vmem:[%s2816_s1 + $0xb8] sm:$0xff]  }
  0x11   : > { %v2160_v11 = vld [vmem:[%s2365_s13 + $0x4] ss:$20 sps:$4 sm:$0xff]   ;;  %v2158_v20 = vld [vmem:[%s2365_s13] ss:$20 sps:$4 sm:$0xff]   ;;  %v2173_v27 = vld [vmem:[%s2365_s13 + $0x28] ss:$20 sps:$4 sm:$0xff]  }
  0x12   : > { %v2163_v12 = vld [vmem:[%s2365_s13 + $0x1e4] ss:$20 sps:$4 sm:$0xff]   ;;  %1077 = vmatprep.mubr.bf16.mxu0 %v2160_v11  ;;  %v2161_v21 = vld [vmem:[%s2365_s13 + $0x1e0] ss:$20 sps:$4 sm:$0xff]   ;;  %v2174_v29 = vld [vmem:[%s2365_s13 + $0x208] ss:$20 sps:$4 sm:$0xff]  }
  0x13   : > { %1839 = vmatpush3.bf16.msra.mxu0 %v2149_v7  ;;  %2127 = vmatpush3.bf16.msra.mxu1 %v2149_v7  ;;  %v2169_v24 = vld [vmem:[%s2365_s13 + $0x2c] ss:$20 sps:$4 sm:$0xff]   ;;  %v2179_v32 = vld [vmem:[%s2365_s13 + $0x54] ss:$20 sps:$4 sm:$0xff]   ;;  %v2183_v36 = vld [vmem:[%s2365_s13 + $0x50] ss:$20 sps:$4 sm:$0xff]  }
  0x14   : > { %1840 = vmatprep.subr.bf16.mxu0 %v2150_v8  ;;  %2120 = vmatprep.subr.bf16.mxu1 %v2150_v8  ;;  %v2171_v25 = vld [vmem:[%s2365_s13 + $0x20c] ss:$20 sps:$4 sm:$0xff]   ;;  %v2181_v33 = vld [vmem:[%s2365_s13 + $0x234] ss:$20 sps:$4 sm:$0xff]   ;;  %v2184_v38 = vld [vmem:[%s2365_s13 + $0x230] ss:$20 sps:$4 sm:$0xff]  }
  0x15   : > { %1173 = vmatprep.mubr.bf16.mxu1 %v2163_v12  ;;  %v2189_v41 = vld [vmem:[%s2365_s13 + $0x7c] ss:$20 sps:$4 sm:$0xff]   ;;  %v2193_v44 = vld [vmem:[%s2365_s13 + $0x78] ss:$20 sps:$4 sm:$0xff]   ;;  %v2205_v54 = vld [vmem:[%s2365_s13 + $0xa0] ss:$20 sps:$4 sm:$0xff]  }
  0x16   : > { %v2191_v42 = vld [vmem:[%s2365_s13 + $0x25c] ss:$20 sps:$4 sm:$0xff]   ;;  %v2194_v45 = vld [vmem:[%s2365_s13 + $0x258] ss:$20 sps:$4 sm:$0xff]   ;;  %v2208_v57 = vld [vmem:[%s2365_s13 + $0x34] ss:$20 sps:$4 sm:$0xff]  }
  0x17   : > { %1841 = vmatpush3.bf16.msra.mxu0 %v2151_v9  ;;  %2128 = vmatpush3.bf16.msra.mxu1 %v2151_v9  ;;  %v2200_v50 = vld [vmem:[%s2365_s13 + $0xa4] ss:$20 sps:$4 sm:$0xff]   ;;  %v2204_v51 = vld [vmem:[%s2365_s13 + $0xc] ss:$20 sps:$4 sm:$0xff]   ;;  %v2202_v53 = vld [vmem:[%s2365_s13 + $0x8] ss:$20 sps:$4 sm:$0xff]  }
  0x18   : > { %1842 = vmatprep.subr.bf16.mxu0 %v2152_v10  ;;  %2121 = vmatprep.subr.bf16.mxu1 %v2152_v10  ;;  %v2206_v55 = vld [vmem:[%s2365_s13 + $0xcc] ss:$20 sps:$4 sm:$0xff]   ;;  %v2237_v56 = vld [vmem:[%s2816_s1 + $0x118] sm:$0xff]   ;;  %v2211_v59 = vld [vmem:[%s2365_s13 + $0x30] ss:$20 sps:$4 sm:$0xff]  }
  0x19   : > { %v2210_v58 = vld [vmem:[%s2365_s13 + $0xc8] ss:$20 sps:$4 sm:$0xff]   ;;  %v2216_v62 = vld [vmem:[%s2365_s13 + $0xf0] ss:$20 sps:$4 sm:$0xff]   ;;  %v2217_v63 = vld [vmem:[%s2365_s13 + $0x58] ss:$20 sps:$4 sm:$0xff]  }
  0x1a   : > { %v2212_v60 = vld [vmem:[%s2365_s13 + $0xf4] ss:$20 sps:$4 sm:$0xff]   ;;  %v2214_v61 = vld [vmem:[%s2365_s13 + $0x5c] ss:$20 sps:$4 sm:$0xff]   ;;  %v2221_v1 = vld [vmem:[%s2365_s13 + $0x84] ss:$20 sps:$4 sm:$0xff]  }
  0x1b   : > { %1843 = vmatpush3.bf16.msra.mxu0 %v2153_v13  ;;  %2129 = vmatpush3.bf16.msra.mxu1 %v2153_v13  ;;  %v2219_v0 = vld [vmem:[%s2365_s13 + $0x11c] ss:$20 sps:$4 sm:$0xff]   ;;  %v2223_v2 = vld [vmem:[%s2365_s13 + $0x118] ss:$20 sps:$4 sm:$0xff]   ;;  %v2224_v3 = vld [vmem:[%s2365_s13 + $0x80] ss:$20 sps:$4 sm:$0xff]  }
  0x1c   : > { %1844 = vmatprep.subr.bf16.mxu0 %v2154_v14  ;;  %2122 = vmatprep.subr.bf16.mxu1 %v2154_v14  ;;  %v2225_v4 = vld [vmem:[%s2365_s13 + $0x144] ss:$20 sps:$4 sm:$0xff]   ;;  %v2227_v5 = vld [vmem:[%s2365_s13 + $0xac] ss:$20 sps:$4 sm:$0xff]   ;;  %v2230_v7 = vld [vmem:[%s2365_s13 + $0xa8] ss:$20 sps:$4 sm:$0xff]  }
  0x1d   : > { %v2229_v6 = vld [vmem:[%s2365_s13 + $0x140] ss:$20 sps:$4 sm:$0xff]   ;;  %v2235_v10 = vld [vmem:[%s2365_s13 + $0x168] ss:$20 sps:$4 sm:$0xff]   ;;  %v2236_v11 = vld [vmem:[%s2365_s13 + $0xd0] ss:$20 sps:$4 sm:$0xff]  }
  0x1e   : > { %v2231_v8 = vld [vmem:[%s2365_s13 + $0x16c] ss:$20 sps:$4 sm:$0xff]   ;;  %v2233_v9 = vld [vmem:[%s2365_s13 + $0xd4] ss:$20 sps:$4 sm:$0xff]   ;;  %v2240_v13 = vld [vmem:[%s2365_s13 + $0xfc] ss:$20 sps:$4 sm:$0xff]  }
  0x1f   : > { %1845 = vmatpush3.bf16.msra.mxu0 %v2155_v15  ;;  %2130 = vmatpush3.bf16.msra.mxu1 %v2155_v15  ;;  %v2238_v12 = vld [vmem:[%s2365_s13 + $0x194] ss:$20 sps:$4 sm:$0xff]   ;;  %v2242_v14 = vld [vmem:[%s2365_s13 + $0x190] ss:$20 sps:$4 sm:$0xff]   ;;  %v2243_v15 = vld [vmem:[%s2365_s13 + $0xf8] ss:$20 sps:$4 sm:$0xff]  }
  0x20   : > { %1846 = vmatprep.subr.bf16.mxu0 %v2156_v16  ;;  %2123 = vmatprep.subr.bf16.mxu1 %v2156_v16  ;;  %v2244_v16 = vld [vmem:[%s2365_s13 + $0x1bc] ss:$20 sps:$4 sm:$0xff]  }
  0x23   : > { %1847 = vmatpush3.bf16.msra.mxu0 %v2157_v17  ;;  %2131 = vmatpush3.bf16.msra.mxu1 %v2157_v17  ;;  %v2246_v17 = vld [vmem:[%s2365_s13 + $0x124] ss:$20 sps:$4 sm:$0xff]  }
  0x24   : > { %1944 = vmatprep.subr.bf16.mxu1 %v2164_v18  ;;  %2076 = vmatprep.subr.bf16.mxu0 %v2167_v19  ;;  %v2248_v18 = vld [vmem:[%s2365_s13 + $0x1b8] ss:$20 sps:$4 sm:$0xff]  }
  0x26   : > { %1078 = vmatmul.mubr.bf16.vlgmr.msra.gmra.mrb[0].mxu0 %v2158_v20  ;;  %1174 = vmatmul.mubr.bf16.vlgmr.msra.gmra.mrb[0].mxu1 %v2161_v21  ;;  %v2250_v20 = vld [vmem:[%s2365_s13 + $0x14c] ss:$20 sps:$4 sm:$0xff]   ;;  %v2252_v21 = vld [vmem:[%s2365_s13 + $0x10] ss:$20 sps:$4 sm:$0xff]  }
  0x27   : > { %1945 = vmatpush3.bf16.msra.mxu1 %v2165_v22  ;;  %2077 = vmatpush3.bf16.msra.mxu0 %v2167_v19  ;;  %v2249_v19 = vld [vmem:[%s2365_s13 + $0x120] ss:$20 sps:$4 sm:$0xff]   ;;  %v2253_v22 = vld [vmem:[%s2365_s13 + $0x148] ss:$20 sps:$4 sm:$0xff]  }
  0x28   : > { %1946 = vmatprep.subr.bf16.mxu1 %v2166_v23  ;;  %1085 = vmatprep.mubr.bf16.mxu0 %v2169_v24  ;;  %v2254_v23 = vld [vmem:[%s2365_s13 + $0x38] ss:$20 sps:$4 sm:$0xff]   ;;  %v2255_v24 = vld [vmem:[%s2365_s13 + $0x174] ss:$20 sps:$4 sm:$0xff]  }
  0x29   : > { %1181 = vmatprep.mubr.bf16.mxu1 %v2171_v25  ;;  %2078 = vmatprep.subr.bf16.mxu0 %v2198_v35  ;;  %v2257_v25 = vld [vmem:[%s2365_s13 + $0x60] ss:$20 sps:$4 sm:$0xff]  }
  0x2b   : > { %1947 = vmatpush3.bf16.msra.mxu1 %v2168_v26  ;;  %2079 = vmatpush3.bf16.msra.mxu0 %v2198_v35  ;;  %v2258_v26 = vld [vmem:[%s2365_s13 + $0x170] ss:$20 sps:$4 sm:$0xff]   ;;  %v2269_v35 = vld [vmem:[%s2365_s13 + $0x128] ss:$20 sps:$4 sm:$0xff]  }
  0x2c   : > { %1948 = vmatprep.subr.bf16.mxu1 %v2175_v28  ;;  %2080 = vmatprep.subr.bf16.mxu0 %v2218_v47  ;;  %v2260_v28 = vld [vmem:[%s2365_s13 + $0x19c] ss:$20 sps:$4 sm:$0xff]  }
  0x2e   : > { %1086 = vmatmul.mubr.bf16.gmra.mrb[4].mxu0 %v2173_v27  ;;  %1182 = vmatmul.mubr.bf16.gmra.mrb[4].mxu1 %v2174_v29  ;;  %v2259_v27 = vld [vmem:[%s2365_s13 + $0x88] ss:$20 sps:$4 sm:$0xff]   ;;  %v2262_v29 = vld [vmem:[%s2365_s13 + $0xb0] ss:$20 sps:$4 sm:$0xff]  }
  0x2f   : > { %1949 = vmatpush3.bf16.msra.mxu1 %v2176_v30  ;;  %1093 = vmatprep.mubr.bf16.mxu0 %v2179_v32  ;;  %v2263_v30 = vld [vmem:[%s2365_s13 + $0x198] ss:$20 sps:$4 sm:$0xff]  }
  0x30   : > { %1950 = vmatprep.subr.bf16.mxu1 %v2177_v31  ;;  %1189 = vmatprep.mubr.bf16.mxu1 %v2181_v33  ;;  %v2264_v31 = vld [vmem:[%s2365_s13 + $0xd8] ss:$20 sps:$4 sm:$0xff]   ;;  %v2267_v33 = vld [vmem:[%s2365_s13 + $0x100] ss:$20 sps:$4 sm:$0xff]  }
  0x31   : > { %2081 = vmatpush3.bf16.msra.mxu0 %v2218_v47  ;;  %v2265_v32 = vld [vmem:[%s2365_s13 + $0x1c4] ss:$20 sps:$4 sm:$0xff]  }
  0x32   : > { %2082 = vmatprep.subr.bf16.mxu0 %v2237_v56  ;;  %v2284_v47 = vld [vmem:[%s2365_s13 + $0x218] ss:$20 sps:$4 sm:$0xff]  }
  0x33   : > { %1951 = vmatpush3.bf16.msra.mxu1 %v2178_v34  ;;  %v2268_v34 = vld [vmem:[%s2365_s13 + $0x1c0] ss:$20 sps:$4 sm:$0xff]  }
  0x34   : > { %1952 = vmatprep.subr.bf16.mxu1 %v2185_v37  ;;  %v2272_v37 = vld [vmem:[%s2365_s13 + $0x150] ss:$20 sps:$4 sm:$0xff]  }
  0x35   : > { %2083 = vmatpush3.bf16.msra.mxu0 %v2237_v56 }
  0x36   : > { %1094 = vmatmul.mubr.bf16.gmra.mrb[8].mxu0 %v2183_v36  ;;  %1190 = vmatmul.mubr.bf16.gmra.mrb[8].mxu1 %v2184_v38  ;;  %v2270_v36 = vld [vmem:[%s2365_s13 + $0x1ec] ss:$20 sps:$4 sm:$0xff]   ;;  %v2273_v38 = vld [vmem:[%s2365_s13 + $0x1e8] ss:$20 sps:$4 sm:$0xff]  }
  0x37   : > { %1953 = vmatpush3.bf16.msra.mxu1 %v2186_v39  ;;  %1101 = vmatprep.mubr.bf16.mxu0 %v2189_v41  ;;  %v2274_v39 = vld [vmem:[%s2365_s13 + $0x178] ss:$20 sps:$4 sm:$0xff]   ;;  %v2277_v41 = vld [vmem:[%s2365_s13 + $0x1a0] ss:$20 sps:$4 sm:$0xff]  }
  0x38   : > { %1954 = vmatprep.subr.bf16.mxu1 %v2187_v40  ;;  %1197 = vmatprep.mubr.bf16.mxu1 %v2191_v42  ;;  %v2275_v40 = vld [vmem:[%s2365_s13 + $0x214] ss:$20 sps:$4 sm:$0xff]   ;;  %v2278_v42 = vld [vmem:[%s2365_s13 + $0x210] ss:$20 sps:$4 sm:$0xff]  }
  0x3b   : > { %1955 = vmatpush3.bf16.msra.mxu1 %v2188_v43  ;;  %v2279_v43 = vld [vmem:[%s2365_s13 + $0x1c8] ss:$20 sps:$4 sm:$0xff]  }
  0x3c   : > { %1956 = vmatprep.subr.bf16.mxu1 %v2195_v46  ;;  %v2283_v46 = vld [vmem:[%s2365_s13 + $0x238] ss:$20 sps:$4 sm:$0xff]  }
  0x3e   : > { %1102 = vmatmul.mubr.bf16.gmra.mrb[12].mxu0 %v2193_v44  ;;  %1198 = vmatmul.mubr.bf16.gmra.mrb[12].mxu1 %v2194_v45  ;;  %v2280_v44 = vld [vmem:[%s2365_s13 + $0x23c] ss:$20 sps:$4 sm:$0xff]  }
  0x3f   : > { %1957 = vmatpush3.bf16.msra.mxu1 %v2196_v48  ;;  %1109 = vmatprep.mubr.bf16.mxu0 %v2200_v50  ;;  %v2282_v45 = vld [vmem:[%s2365_s13 + $0x1f0] ss:$20 sps:$4 sm:$0xff]   ;;  %v2288_v50 = vld [vmem:[%s2365_s13 + $0x260] ss:$20 sps:$4 sm:$0xff]  }
  0x40   : > { %1958 = vmatprep.subr.bf16.mxu1 %v2197_v49  ;;  %1238 = vmatprep.mubr.bf16.mxu1 %v2204_v51  ;;  %v2285_v48 = vld [vmem:[%s2365_s13 + $0x264] ss:$20 sps:$4 sm:$0xff]   ;;  %v2287_v49 = vld [vmem:[%s2365_s13 + $0x240] ss:$20 sps:$4 sm:$0xff]   ;;  %v2289_v51 = vld [vmem:[%s2365_s13 + $0x268] ss:$20 sps:$4 sm:$0xff]  }
  0x43   : > { %1959 = vmatpush3.bf16.msra.mxu1 %v2199_v52 }
  0x46   : > { %1110 = vmatmul.mubr.bf16.gmra.mrb[16].mxu0 %v2205_v54  ;;  %1239 = vmatmul.mubr.bf16.vlgmr.msra.gmra.mrb[16].mxu1 %v2202_v53 }
  0x47   : > { %1117 = vmatprep.mubr.bf16.mxu0 %v2206_v55  ;;  %1246 = vmatprep.mubr.bf16.mxu1 %v2208_v57 }
  0x4e   : > { %1118 = vmatmul.mubr.bf16.gmra.mrb[20].mxu0 %v2210_v58  ;;  %1247 = vmatmul.mubr.bf16.gmra.mrb[20].mxu1 %v2211_v59 }
  0x4f   : > { %1125 = vmatprep.mubr.bf16.mxu0 %v2212_v60  ;;  %1254 = vmatprep.mubr.bf16.mxu1 %v2214_v61 }
  0x56   : > { %1126 = vmatmul.mubr.bf16.gmra.mrb[24].mxu0 %v2216_v62  ;;  %1255 = vmatmul.mubr.bf16.gmra.mrb[24].mxu1 %v2217_v63 }
  0x57   : > { %1133 = vmatprep.mubr.bf16.mxu0 %v2219_v0  ;;  %1262 = vmatprep.mubr.bf16.mxu1 %v2221_v1 }
  0x5e   : > { %1134 = vmatmul.mubr.bf16.gmra.mrb[28].mxu0 %v2223_v2  ;;  %1263 = vmatmul.mubr.bf16.gmra.mrb[28].mxu1 %v2224_v3 }
  0x5f   : > { %1141 = vmatprep.mubr.bf16.mxu0 %v2225_v4  ;;  %1270 = vmatprep.mubr.bf16.mxu1 %v2227_v5 }
  0x66   : > { %1142 = vmatmul.mubr.bf16.gmra.mrb[32].mxu0 %v2229_v6  ;;  %1271 = vmatmul.mubr.bf16.gmra.mrb[32].mxu1 %v2230_v7 }
  0x67   : > { %1149 = vmatprep.mubr.bf16.mxu0 %v2231_v8  ;;  %1278 = vmatprep.mubr.bf16.mxu1 %v2233_v9 }
  0x6e   : > { %1150 = vmatmul.mubr.bf16.gmra.mrb[36].mxu0 %v2235_v10  ;;  %1279 = vmatmul.mubr.bf16.gmra.mrb[36].mxu1 %v2236_v11 }
  0x6f   : > { %1157 = vmatprep.mubr.bf16.mxu0 %v2238_v12  ;;  %1286 = vmatprep.mubr.bf16.mxu1 %v2240_v13 }
  0x76   : > { %1158 = vmatmul.mubr.bf16.gmra.mrb[40].mxu0 %v2242_v14  ;;  %1287 = vmatmul.mubr.bf16.gmra.mrb[40].mxu1 %v2243_v15 }
  0x77   : > { %1165 = vmatprep.mubr.bf16.mxu0 %v2244_v16  ;;  %1294 = vmatprep.mubr.bf16.mxu1 %v2246_v17 }
  0x7e   : > { %1166 = vmatmul.mubr.bf16.gmra.mrb[44].mxu0 %v2248_v18  ;;  %1295 = vmatmul.mubr.bf16.gmra.mrb[44].mxu1 %v2249_v19 }
  0x7f   : > { %1302 = vmatprep.mubr.bf16.mxu1 %v2250_v20  ;;  %2084 = vmatprep.mubr.msk.bf16.mxu0 %vm996_vm0, %v2252_v21 }
  0x86   : > { %1303 = vmatmul.mubr.bf16.gmra.mrb[48].mxu1 %v2253_v22  ;;  %2085 = vmatmul.mubr.msk.bf16.vlgmr.msra.gmra.mrb[48].mxu0 %vm996_vm0, %v2254_v23 }
  0x87   : > { %1310 = vmatprep.mubr.bf16.mxu1 %v2255_v24  ;;  %2088 = vmatprep.mubr.msk.bf16.mxu0 %vm996_vm0, %v2257_v25 }
  0x8e   : > { %1311 = vmatmul.mubr.bf16.gmra.mrb[52].mxu1 %v2258_v26  ;;  %2089 = vmatmul.mubr.msk.bf16.gmra.mrb[52].mxu0 %vm996_vm0, %v2259_v27 }
  0x8f   : > { %1318 = vmatprep.mubr.bf16.mxu1 %v2260_v28  ;;  %2092 = vmatprep.mubr.msk.bf16.mxu0 %vm996_vm0, %v2262_v29 }
  0x96   : > { %1319 = vmatmul.mubr.bf16.gmra.mrb[56].mxu1 %v2263_v30  ;;  %2093 = vmatmul.mubr.msk.bf16.gmra.mrb[56].mxu0 %vm996_vm0, %v2264_v31 }
  0x97   : > { %1326 = vmatprep.mubr.bf16.mxu1 %v2265_v32  ;;  %2096 = vmatprep.mubr.msk.bf16.mxu0 %vm996_vm0, %v2267_v33 }
  0x9e   : > { %1327 = vmatmul.mubr.bf16.gmra.mrb[60].mxu1 %v2268_v34  ;;  %2097 = vmatmul.mubr.msk.bf16.gmra.mrb[60].mxu0 %vm996_vm0, %v2269_v35 }
  0x9f   : > { %1334 = vmatprep.mubr.bf16.mxu1 %v2270_v36  ;;  %2100 = vmatprep.mubr.msk.bf16.mxu0 %vm996_vm0, %v2272_v37 }
  0xa6   : > { %1335 = vmatmul.mubr.bf16.gmra.mrb[64].mxu1 %v2273_v38  ;;  %2101 = vmatmul.mubr.msk.bf16.gmra.mrb[64].mxu0 %vm996_vm0, %v2274_v39  ;;  %v2563_v38 = vld [vmem:[%s2817_s2] ss:$0 sm:$0xff] }
  0xa7   : > { %1342 = vmatprep.mubr.bf16.mxu1 %v2275_v40  ;;  %2104 = vmatprep.mubr.msk.bf16.mxu0 %vm996_vm0, %v2277_v41 }
  0xae   : > { %1343 = vmatmul.mubr.bf16.gmra.mrb[68].mxu1 %v2278_v42  ;;  %2105 = vmatmul.mubr.msk.bf16.gmra.mrb[68].mxu0 %vm996_vm0, %v2279_v43 }
  0xaf   : > { %1350 = vmatprep.mubr.bf16.mxu1 %v2280_v44  ;;  %2108 = vmatprep.mubr.msk.bf16.mxu0 %vm996_vm0, %v2282_v45 }
  0xb6   : > { %1351 = vmatmul.mubr.bf16.gmra.mrb[72].mxu1 %v2283_v46  ;;  %2109 = vmatmul.mubr.msk.bf16.gmra.mrb[72].mxu0 %vm996_vm0, %v2284_v47 }
  0xb7   : > { %1358 = vmatprep.mubr.bf16.mxu1 %v2285_v48  ;;  %2112 = vmatprep.mubr.msk.bf16.mxu0 %vm996_vm0, %v2287_v49 }
  0xbe   : > { %1359 = vmatmul.mubr.bf16.gmra.mrb[76].mxu1 %v2288_v50  ;;  %2113 = vmatmul.mubr.msk.bf16.gmra.mrb[76].mxu0 %vm996_vm0, %v2289_v51 }
  0xf9   : > { %v1920_v52 = vpop.f32.mrb[0].mxu1  ;;  %v1848_v53 = vpop.f32.mrb[0].mxu0 }
  0xfa   : > { %v1921_v54 = vpop.f32.mrb[1].mxu1  ;;  %v1849_v55 = vpop.f32.mrb[1].mxu0 }
  0xfb   : > { %v2544_v56 = vadd.f32 %v1921_v54, %v1920_v52  ;;  %v1923_v57 = vpop.f32.mrb[2].mxu1  ;;  %v1850_v58 = vadd.f32 %v1849_v55, %v1848_v53  ;;  %v1851_v59 = vpop.f32.mrb[2].mxu0 }
  0xfc   : > { %v1924_v60 = vpop.f32.mrb[3].mxu1  ;;  %v1852_v61 = vpop.f32.mrb[3].mxu0 }
  0xfd   : > { %v2546_v62 = vadd.f32 %v1924_v60, %v1923_v57  ;;  %v1853_v63 = vadd.f32 %v1852_v61, %v1851_v59  ;;  %v1080_v41 = vadd.f32 %v1850_v58, %v2563_v38 }
  0xff   : > { %v1083_v48 = vadd.f32 %v1853_v63, %v2563_v38 }
 0x101   : > { %v1926_v0 = vpop.f32.mrb[4].mxu1  ;;  %v1854_v1 = vpop.f32.mrb[4].mxu0 }
 0x102   : > { %v1927_v2 = vpop.f32.mrb[5].mxu1  ;;  %v1855_v3 = vpop.f32.mrb[5].mxu0 }
 0x103   : > { %v2548_v4 = vadd.f32 %v1927_v2, %v1926_v0  ;;  %v1929_v5 = vpop.f32.mrb[6].mxu1  ;;  %v1856_v6 = vadd.f32 %v1855_v3, %v1854_v1  ;;  %v1857_v7 = vpop.f32.mrb[6].mxu0 }
 0x104   : > { %v1930_v8 = vpop.f32.mrb[7].mxu1  ;;  %v1858_v9 = vpop.f32.mrb[7].mxu0 }
 0x105   : > { %v2550_v10 = vadd.f32 %v1930_v8, %v1929_v5  ;;  %v1859_v11 = vadd.f32 %v1858_v9, %v1857_v7  ;;  %v1088_v58 = vadd.f32 %v1856_v6, %v2563_v38 }
 0x107   : > { %v1091_v63 = vadd.f32 %v1859_v11, %v2563_v38 }
 0x109   : > { %v1932_v12 = vpop.f32.mrb[8].mxu1  ;;  %v1860_v13 = vpop.f32.mrb[8].mxu0 }
 0x10a   : > { %v1933_v14 = vpop.f32.mrb[9].mxu1  ;;  %v1861_v15 = vpop.f32.mrb[9].mxu0 }
 0x10b   : > { %v2552_v16 = vadd.f32 %v1933_v14, %v1932_v12  ;;  %v1935_v17 = vpop.f32.mrb[10].mxu1  ;;  %v1862_v18 = vadd.f32 %v1861_v15, %v1860_v13  ;;  %v1863_v19 = vpop.f32.mrb[10].mxu0 }
 0x10c   : > { %v1936_v20 = vpop.f32.mrb[11].mxu1  ;;  %v1864_v21 = vpop.f32.mrb[11].mxu0 }
 0x10d   : > { %v2554_v22 = vadd.f32 %v1936_v20, %v1935_v17  ;;  %v1865_v23 = vadd.f32 %v1864_v21, %v1863_v19  ;;  %v1096_v6 = vadd.f32 %v1862_v18, %v2563_v38 }
 0x10f   : > { %v1099_v11 = vadd.f32 %v1865_v23, %v2563_v38 }
 0x111   : > { %v1938_v24 = vpop.f32.mrb[12].mxu1  ;;  %v1866_v25 = vpop.f32.mrb[12].mxu0 }
 0x112   : > { %v1939_v26 = vpop.f32.mrb[13].mxu1  ;;  %v1867_v27 = vpop.f32.mrb[13].mxu0 }
 0x113   : > { %v2556_v28 = vadd.f32 %v1939_v26, %v1938_v24  ;;  %v1941_v29 = vpop.f32.mrb[14].mxu1  ;;  %v1868_v30 = vadd.f32 %v1867_v27, %v1866_v25  ;;  %v1869_v31 = vpop.f32.mrb[14].mxu0 }
 0x114   : > { %v1942_v32 = vpop.f32.mrb[15].mxu1  ;;  %v1870_v33 = vpop.f32.mrb[15].mxu0 }
 0x115   : > { %v2558_v34 = vadd.f32 %v1942_v32, %v1941_v29  ;;  %v1871_v35 = vadd.f32 %v1870_v33, %v1869_v31  ;;  %v1104_v18 = vadd.f32 %v1868_v30, %v2563_v38 }
 0x119   : > { %v1960_v36 = vpop.f32.mrb[16].mxu1  ;;  %v1872_v37 = vpop.f32.mrb[16].mxu0 }
 0x11a   : > { %v1961_v39 = vpop.f32.mrb[17].mxu1  ;;  %v1873_v40 = vpop.f32.mrb[17].mxu0 }
 0x11b   : > { %v1962_v42 = vadd.f32 %v1961_v39, %v1960_v36  ;;  %v1963_v43 = vpop.f32.mrb[18].mxu1  ;;  %v1874_v44 = vadd.f32 %v1873_v40, %v1872_v37  ;;  %v1875_v45 = vpop.f32.mrb[18].mxu0 }
 0x11c   : > { %v1964_v46 = vpop.f32.mrb[19].mxu1  ;;  %v1876_v47 = vpop.f32.mrb[19].mxu0 }
 0x11d   : > { %v1965_v49 = vadd.f32 %v1964_v46, %v1963_v43  ;;  %v1877_v50 = vadd.f32 %v1876_v47, %v1875_v45  ;;  %v2567_v51 = vadd.f32 %v1962_v42, %v1080_v41  ;;  %v1107_v43 = vadd.f32 %v1871_v35, %v2563_v38 }
 0x11f   : > { %v2569_v52 = vadd.f32 %v1965_v49, %v1083_v48 }
 0x121   : > { %v1966_v53 = vpop.f32.mrb[20].mxu1  ;;  %v1878_v54 = vpop.f32.mrb[20].mxu0 }
 0x122   : > { %v1967_v55 = vpop.f32.mrb[21].mxu1  ;;  %v1879_v57 = vpop.f32.mrb[21].mxu0 }
 0x123   : > { %v1968_v59 = vadd.f32 %v1967_v55, %v1966_v53  ;;  %v1969_v60 = vpop.f32.mrb[22].mxu1  ;;  %v1880_v61 = vadd.f32 %v1879_v57, %v1878_v54  ;;  %v1881_v0 = vpop.f32.mrb[22].mxu0  ;;  %v1112_v55 = vadd.f32 %v1874_v44, %v2563_v38 }
 0x124   : > { %v1970_v1 = vpop.f32.mrb[23].mxu1  ;;  %v1882_v2 = vpop.f32.mrb[23].mxu0 }
 0x125   : > { %v1971_v3 = vadd.f32 %v1970_v1, %v1969_v60  ;;  %v1883_v5 = vadd.f32 %v1882_v2, %v1881_v0  ;;  %v2573_v7 = vadd.f32 %v1968_v59, %v1088_v58  ;;  %v1115_v1 = vadd.f32 %v1877_v50, %v2563_v38 }
 0x127   : > { %v2575_v8 = vadd.f32 %v1971_v3, %v1091_v63 }
 0x129   : > { %v1972_v9 = vpop.f32.mrb[24].mxu1  ;;  %v1884_v12 = vpop.f32.mrb[24].mxu0 }
 0x12a   : > { %v1973_v13 = vpop.f32.mrb[25].mxu1  ;;  %v1885_v14 = vpop.f32.mrb[25].mxu0 }
 0x12b   : > { %v1974_v15 = vadd.f32 %v1973_v13, %v1972_v9  ;;  %v1975_v17 = vpop.f32.mrb[26].mxu1  ;;  %v1886_v19 = vadd.f32 %v1885_v14, %v1884_v12  ;;  %v1887_v20 = vpop.f32.mrb[26].mxu0 }
 0x12c   : > { %v1976_v21 = vpop.f32.mrb[27].mxu1  ;;  %v1888_v24 = vpop.f32.mrb[27].mxu0 }
 0x12d   : > { %v1977_v25 = vadd.f32 %v1976_v21, %v1975_v17  ;;  %v2579_v26 = vadd.f32 %v1888_v24, %v1887_v20  ;;  %v2581_v27 = vadd.f32 %v1974_v15, %v1096_v6  ;;  %v1120_v6 = vadd.f32 %v1880_v61, %v2563_v38 }
 0x12f   : > { %v2583_v29 = vadd.f32 %v1977_v25, %v1099_v11  ;;  %v1123_v11 = vadd.f32 %v1883_v5, %v2563_v38 }
 0x131   : > { %v1978_v31 = vpop.f32.mrb[28].mxu1  ;;  %v1890_v32 = vpop.f32.mrb[28].mxu0 }
 0x132   : > { %v1979_v33 = vpop.f32.mrb[29].mxu1  ;;  %v1891_v36 = vpop.f32.mrb[29].mxu0 }
 0x133   : > { %v1980_v37 = vadd.f32 %v1979_v33, %v1978_v31  ;;  %v1981_v39 = vpop.f32.mrb[30].mxu1  ;;  %v2586_v40 = vadd.f32 %v1891_v36, %v1890_v32  ;;  %v1893_v41 = vpop.f32.mrb[30].mxu0 }
 0x134   : > { %v1982_v42 = vpop.f32.mrb[31].mxu1  ;;  %v1894_v23 = vpop.f32.mrb[31].mxu0 }
 0x135   : > { %v1983_v45 = vadd.f32 %v1982_v42, %v1981_v39  ;;  %v2589_v46 = vadd.f32 %v1894_v23, %v1893_v41  ;;  %v2591_v47 = vadd.f32 %v1980_v37, %v1104_v18  ;;  %v1128_v39 = vadd.f32 %v1886_v19, %v2563_v38  ;;  %v1528_v19 = vld [vmem:[%s2818_s3] sm:$0x1] }
 0x136   : > { %vm1529_vm1 = vcmp.gt.f32.partialorder %v1528_v19, 0.0 }
 0x137   : > { %v2593_v48 = vadd.f32 %v1983_v45, %v1107_v43  ;;  %v1563_v45 = vlaneseq }
 0x139   : > { %v1984_v49 = vpop.f32.mrb[32].mxu1  ;;  %v1896_v53 = vpop.f32.mrb[32].mxu0 }
 0x13a   : > { %v1985_v54 = vpop.f32.mrb[33].mxu1  ;;  %v1897_v30 = vpop.f32.mrb[33].mxu0 }
 0x13b   : > { %v1986_v57 = vadd.f32 %v1985_v54, %v1984_v49  ;;  %v1987_v58 = vpop.f32.mrb[34].mxu1  ;;  %v2596_v59 = vadd.f32 %v1897_v30, %v1896_v53  ;;  %v1899_v60 = vpop.f32.mrb[34].mxu0  ;;  %v1131_v53 = vadd.f32 %v2579_v26, %v2563_v38  ;;  %v1136_v26 = vadd.f32 %v2586_v40, %v2563_v38 }
 0x13c   : > { %v1988_v0 = vpop.f32.mrb[35].mxu1  ;;  %v1900_v35 = vpop.f32.mrb[35].mxu0 }
 0x13d   : > { %v1989_v2 = vadd.f32 %v1988_v0, %v1987_v58  ;;  %v2599_v63 = vadd.f32 %v1900_v35, %v1899_v60  ;;  %v2601_v3 = vadd.f32 %v1986_v57, %v1112_v55  ;;  %v1564_v57 = vshrl.u32 %v1563_v45, 7 }
 0x13f   : > { %v2603_v9 = vadd.f32 %v1989_v2, %v1115_v1 }
 0x141   : > { %v1990_v12 = vpop.f32.mrb[36].mxu1  ;;  %v1902_v13 = vpop.f32.mrb[36].mxu0 }
 0x142   : > { %v1991_v14 = vpop.f32.mrb[37].mxu1  ;;  %v1903_v44 = vpop.f32.mrb[37].mxu0 }
 0x143   : > { %v1992_v15 = vadd.f32 %v1991_v14, %v1990_v12  ;;  %v1993_v17 = vpop.f32.mrb[38].mxu1  ;;  %v2606_v20 = vadd.f32 %v1903_v44, %v1902_v13  ;;  %v1905_v21 = vpop.f32.mrb[38].mxu0  ;;  %v1565_v44 = vsub.s32 0, %v1564_v57 }
 0x144   : > { %v1994_v24 = vpop.f32.mrb[39].mxu1  ;;  %v1906_v50 = vpop.f32.mrb[39].mxu0 }
 0x145   : > { %v1995_v25 = vadd.f32 %v1994_v24, %v1993_v17  ;;  %v2609_v31 = vadd.f32 %v1906_v50, %v1905_v21  ;;  %v2611_v32 = vadd.f32 %v1992_v15, %v1120_v6  ;;  %v2298_v17 = vmov 0  }
 0x146   : > { %v1562_v21 = vsel %vm1529_vm1, 1, %v2298_v17  ;;  %v1139_v24 = vadd.f32 %v2589_v46, %v2563_v38 }
 0x147   : > { %v2613_v33 = vadd.f32 %v1995_v25, %v1123_v11  ;;  %v2639_v40 = vrot.slane %v1562_v21, %v1565_v44 }
 0x149   : > { %v1996_v36 = vpop.f32.mrb[40].mxu1  ;;  %v1908_v18 = vpop.f32.mrb[40].mxu0  ;;  %vm1567_vm2 = vcmp.eq.s32.totalorder %v2639_v40, 1 }
 0x14a   : > { %v1997_v37 = vpop.f32.mrb[41].mxu1  ;;  %v1909_v61 = vpop.f32.mrb[41].mxu0 }
 0x14b   : > { %v1998_v41 = vadd.f32 %v1997_v37, %v1996_v36  ;;  %v1999_v42 = vpop.f32.mrb[42].mxu1  ;;  %v2616_v23 = vadd.f32 %v1909_v61, %v1908_v18  ;;  %v1911_v43 = vpop.f32.mrb[42].mxu0 }
 0x14c   : > { %v2000_v5 = vpop.f32.mrb[43].mxu1  ;;  %v1912_v49 = vpop.f32.mrb[43].mxu0 }
 0x14d   : > { %v2001_v54 = vadd.f32 %v2000_v5, %v1999_v42  ;;  %v2620_v30 = vadd.f32 %v1912_v49, %v1911_v43  ;;  %v2622_v55 = vadd.f32 %v1998_v41, %v1128_v39  ;;  %v1144_v42 = vadd.f32 %v2596_v59, %v2563_v38 }
 0x14e   : > { %v1147_v49 = vadd.f32 %v2599_v63, %v2563_v38 }
 0x14f   : > { %v2627_v58 = vadd.f32 %v2001_v54, %v1131_v53 }
 0x151   : > { %v2002_v60 = vpop.f32.mrb[44].mxu1  ;;  %v1914_v0 = vpop.f32.mrb[44].mxu0 }
 0x152   : > { %v2003_v35 = vpop.f32.mrb[45].mxu1  ;;  %v1915_v1 = vpop.f32.mrb[45].mxu0 }
 0x153   : > { %v2004_v2 = vadd.f32 %v2003_v35, %v2002_v60  ;;  %v2005_v12 = vpop.f32.mrb[46].mxu1  ;;  %v2631_v13 = vadd.f32 %v1915_v1, %v1914_v0  ;;  %v1917_v14 = vpop.f32.mrb[46].mxu0 }
 0x154   : > { %v2006_v6 = vpop.f32.mrb[47].mxu1  ;;  %v1918_v15 = vpop.f32.mrb[47].mxu0 }
 0x155   : > { %v2007_v50 = vadd.f32 %v2006_v6, %v2005_v12  ;;  %v2635_v11 = vadd.f32 %v1918_v15, %v1917_v14  ;;  %v2637_v25 = vadd.f32 %v2004_v2, %v1136_v26  ;;  %v1152_v15 = vadd.f32 %v2606_v20, %v2563_v38 }
 0x157   : > { %v2641_v36 = vadd.f32 %v2007_v50, %v1139_v24 }
 0x159   : > { %v2008_v18 = vpop.f32.mrb[48].mxu1  ;;  %v2086_v37 = vpop.f32.mrb[48].mxu0 }
 0x15a   : > { %v1410_v61 = vadd.f32 %v2086_v37, %v2573_v7  ;;  %v2009_v39 = vpop.f32.mrb[49].mxu1  ;;  %v1401_v41 = vpop.f32.mrb[49].mxu0 }
 0x15b   : > { %v2010_v46 = vadd.f32 %v2009_v39, %v2008_v18  ;;  %v1402_v43 = vadd.f32 %v1401_v41, %v2567_v51  ;;  %v2011_v45 = vpop.f32.mrb[50].mxu1  ;;  %v2087_v5 = vpop.f32.mrb[50].mxu0  ;;  %v1155_v18 = vadd.f32 %v2609_v31, %v2563_v38 }
 0x15c   : > { %v1532_v7 = vmax.f32 %v1410_v61, 0.0  ;;  %v1413_v59 = vadd.f32 %v2087_v5, %v2575_v8  ;;  %v2012_v53 = vpop.f32.mrb[51].mxu1  ;;  %v1404_v54 = vpop.f32.mrb[51].mxu0 }
 0x15d   : > { %v1530_v19 = vmax.f32 %v1402_v43, 0.0  ;;  %v2013_v51 = vadd.f32 %v2012_v53, %v2011_v45  ;;  %v1405_v57 = vadd.f32 %v1404_v54, %v2569_v52  ;;  %v2658_v60 = vadd.f32 %v2010_v46, %v1144_v42 }
 0x15e   : > { %v1570_v63 = vsel %vm1567_vm2, %v1532_v7, %v1410_v61  ;;  %v1533_v0 = vmax.f32 %v1413_v59, 0.0 }
 0x15f   : > { %1602 = vst [vmem:[%s2654_s29 + $0x10] sm:$0xff] %v1570_v63  ;;  %v1568_v35 = vsel %vm1567_vm2, %v1530_v19, %v1402_v43  ;;  %v1531_v1 = vmax.f32 %v1405_v57, 0.0  ;;  %v2665_v26 = vadd.f32 %v2013_v51, %v1147_v49  ;;  %v1160_v19 = vadd.f32 %v2616_v23, %v2563_v38 }
 0x160   : > { %1600 = vst [vmem:[%s2654_s29] sm:$0xff] %v1568_v35  ;;  %v1571_v8 = vsel %vm1567_vm2, %v1533_v0, %v1413_v59  ;;  %v1163_v35 = vadd.f32 %v2620_v30, %v2563_v38 }
 0x161   : > { %1603 = vst [vmem:[%s2654_s29 + $0x18] sm:$0xff] %v1571_v8  ;;  %v1569_v52 = vsel %vm1567_vm2, %v1531_v1, %v1405_v57  ;;  %v2014_v2 = vpop.f32.mrb[52].mxu1  ;;  %v2090_v12 = vpop.f32.mrb[52].mxu0 }
 0x162   : > { %1601 = vst [vmem:[%s2654_s29 + $0x8] sm:$0xff] %v1569_v52  ;;  %v1426_v14 = vadd.f32 %v2090_v12, %v2591_v47  ;;  %v2015_v44 = vpop.f32.mrb[53].mxu1  ;;  %v1417_v6 = vpop.f32.mrb[53].mxu0 }
 0x163   : > { %v2016_v17 = vadd.f32 %v2015_v44, %v2014_v2  ;;  %v1418_v21 = vadd.f32 %v1417_v6, %v2581_v27  ;;  %v2017_v24 = vpop.f32.mrb[54].mxu1  ;;  %v2091_v50 = vpop.f32.mrb[54].mxu0 }
 0x164   : > { %v1536_v37 = vmax.f32 %v1426_v14, 0.0  ;;  %v1429_v61 = vadd.f32 %v2091_v50, %v2593_v48  ;;  %v2018_v47 = vpop.f32.mrb[55].mxu1  ;;  %v1420_v39 = vpop.f32.mrb[55].mxu0 }
 0x165   : > { %v1534_v41 = vmax.f32 %v1418_v21, 0.0  ;;  %v2019_v42 = vadd.f32 %v2018_v47, %v2017_v24  ;;  %v1421_v20 = vadd.f32 %v1420_v39, %v2583_v29  ;;  %v2682_v46 = vadd.f32 %v2016_v17, %v1152_v15 }
 0x166   : > { %v1574_v27 = vsel %vm1567_vm2, %v1536_v37, %v1426_v14  ;;  %v1537_v43 = vmax.f32 %v1429_v61, 0.0  ;;  %v1168_v37 = vadd.f32 %v2631_v13, %v2563_v38 }
 0x167   : > { %1606 = vst [vmem:[%s2654_s29 + $0x30] sm:$0xff] %v1574_v27  ;;  %v1572_v31 = vsel %vm1567_vm2, %v1534_v41, %v1418_v21  ;;  %v1535_v45 = vmax.f32 %v1421_v20, 0.0  ;;  %v2689_v5 = vadd.f32 %v2019_v42, %v1155_v18  ;;  %v1171_v42 = vadd.f32 %v2635_v11, %v2563_v38 }
 0x168   : > { %1604 = vst [vmem:[%s2654_s29 + $0x20] sm:$0xff] %v1572_v31  ;;  %v1575_v48 = vsel %vm1567_vm2, %v1537_v43, %v1429_v61 }
 0x169   : > { %1607 = vst [vmem:[%s2654_s29 + $0x38] sm:$0xff] %v1575_v48  ;;  %v1573_v29 = vsel %vm1567_vm2, %v1535_v45, %v1421_v20  ;;  %v2020_v49 = vpop.f32.mrb[56].mxu1  ;;  %v2094_v7 = vpop.f32.mrb[56].mxu0 }
 0x16a   : > { %1605 = vst [vmem:[%s2654_s29 + $0x28] sm:$0xff] %v1573_v29  ;;  %v1442_v59 = vadd.f32 %v2094_v7, %v2611_v32  ;;  %v2021_v53 = vpop.f32.mrb[57].mxu1  ;;  %v1433_v54 = vpop.f32.mrb[57].mxu0 }
 0x16b   : > { %v2022_v51 = vadd.f32 %v2021_v53, %v2020_v49  ;;  %v1434_v57 = vadd.f32 %v1433_v54, %v2601_v3  ;;  %v2023_v63 = vpop.f32.mrb[58].mxu1  ;;  %v2095_v0 = vpop.f32.mrb[58].mxu0 }
 0x16c   : > { %v1540_v1 = vmax.f32 %v1442_v59, 0.0  ;;  %v1445_v8 = vadd.f32 %v2095_v0, %v2613_v33  ;;  %v2024_v32 = vpop.f32.mrb[59].mxu1  ;;  %v1436_v52 = vpop.f32.mrb[59].mxu0 }
 0x16d   : > { %v1538_v2 = vmax.f32 %v1434_v57, 0.0  ;;  %v2025_v12 = vadd.f32 %v2024_v32, %v2023_v63  ;;  %v1437_v23 = vadd.f32 %v1436_v52, %v2603_v9  ;;  %v2706_v14 = vadd.f32 %v2022_v51, %v1160_v19 }
 0x16e   : > { %v1578_v3 = vsel %vm1567_vm2, %v1540_v1, %v1442_v59  ;;  %v1541_v44 = vmax.f32 %v1445_v8, 0.0 }
 0x16f   : > { %1610 = vst [vmem:[%s2654_s29 + $0x50] sm:$0xff] %v1578_v3  ;;  %v1576_v30 = vsel %vm1567_vm2, %v1538_v2, %v1434_v57  ;;  %v1539_v6 = vmax.f32 %v1437_v23, 0.0  ;;  %v2713_v15 = vadd.f32 %v2025_v12, %v1163_v35  ;;  %v1176_v57 = vadd.f32 %v2544_v56, %v2563_v38 }
 0x170   : > { %1608 = vst [vmem:[%s2654_s29 + $0x40] sm:$0xff] %v1576_v30  ;;  %v1579_v33 = vsel %vm1567_vm2, %v1541_v44, %v1445_v8  ;;  %v1179_v8 = vadd.f32 %v2546_v62, %v2563_v38 }
 0x171   : > { %1611 = vst [vmem:[%s2654_s29 + $0x58] sm:$0xff] %v1579_v33  ;;  %v1577_v9 = vsel %vm1567_vm2, %v1539_v6, %v1437_v23  ;;  %v2026_v17 = vpop.f32.mrb[60].mxu1  ;;  %v2098_v21 = vpop.f32.mrb[60].mxu0 }
 0x172   : > { %1609 = vst [vmem:[%s2654_s29 + $0x48] sm:$0xff] %v1577_v9  ;;  %v1458_v24 = vadd.f32 %v2098_v21, %v2637_v25  ;;  %v2027_v50 = vpop.f32.mrb[61].mxu1  ;;  %v1449_v18 = vpop.f32.mrb[61].mxu0 }
 0x173   : > { %v2028_v61 = vadd.f32 %v2027_v50, %v2026_v17  ;;  %v1450_v47 = vadd.f32 %v1449_v18, %v2622_v55  ;;  %v2029_v39 = vpop.f32.mrb[62].mxu1  ;;  %v2099_v41 = vpop.f32.mrb[62].mxu0  ;;  %v1184_v50 = vadd.f32 %v2548_v4, %v2563_v38 }
 0x174   : > { %v1544_v20 = vmax.f32 %v1458_v24, 0.0  ;;  %v1461_v27 = vadd.f32 %v2099_v41, %v2641_v36  ;;  %v2030_v25 = vpop.f32.mrb[63].mxu1  ;;  %v1452_v43 = vpop.f32.mrb[63].mxu0 }
 0x175   : > { %v1542_v31 = vmax.f32 %v1450_v47, 0.0  ;;  %v2031_v45 = vadd.f32 %v2030_v25, %v2029_v39  ;;  %v1453_v13 = vadd.f32 %v1452_v43, %v2627_v58  ;;  %v1329_v48 = vadd.f32 %v2028_v61, %v1168_v37 }
 0x176   : > { %v1582_v55 = vsel %vm1567_vm2, %v1544_v20, %v1458_v24  ;;  %v1545_v29 = vmax.f32 %v1461_v27, 0.0  ;;  %v1187_v39 = vadd.f32 %v2550_v10, %v2563_v38 }
 0x177   : > { %1614 = vst [vmem:[%s2654_s29 + $0x70] sm:$0xff] %v1582_v55  ;;  %v1580_v11 = vsel %vm1567_vm2, %v1542_v31, %v1450_v47  ;;  %v1543_v49 = vmax.f32 %v1453_v13, 0.0  ;;  %v1332_v7 = vadd.f32 %v2031_v45, %v1171_v42 }
 0x178   : > { %1612 = vst [vmem:[%s2654_s29 + $0x60] sm:$0xff] %v1580_v11  ;;  %v1583_v36 = vsel %vm1567_vm2, %v1545_v29, %v1461_v27 }
 0x179   : > { %1615 = vst [vmem:[%s2654_s29 + $0x78] sm:$0xff] %v1583_v36  ;;  %v1581_v59 = vsel %vm1567_vm2, %v1543_v49, %v1453_v13  ;;  %v2032_v58 = vpop.f32.mrb[64].mxu1  ;;  %v2102_v53 = vpop.f32.mrb[64].mxu0 }
 0x17a   : > { %1613 = vst [vmem:[%s2654_s29 + $0x68] sm:$0xff] %v1581_v59  ;;  %v1474_v54 = vadd.f32 %v2102_v53, %v2682_v46  ;;  %v2033_v19 = vpop.f32.mrb[65].mxu1  ;;  %v1465_v51 = vpop.f32.mrb[65].mxu0  ;;  %v1192_v59 = vadd.f32 %v2552_v16, %v2563_v38 }
 0x17b   : > { %v2034_v63 = vadd.f32 %v2033_v19, %v2032_v58  ;;  %v1466_v0 = vadd.f32 %v1465_v51, %v2658_v60  ;;  %v2035_v35 = vpop.f32.mrb[66].mxu1  ;;  %v2103_v1 = vpop.f32.mrb[66].mxu0  ;;  %v1195_v51 = vadd.f32 %v2554_v22, %v2563_v38 }
 0x17c   : > { %v1548_v32 = vmax.f32 %v1474_v54, 0.0  ;;  %v1477_v52 = vadd.f32 %v2103_v1, %v2689_v5  ;;  %v2036_v46 = vpop.f32.mrb[67].mxu1  ;;  %v1468_v2 = vpop.f32.mrb[67].mxu0 }
 0x17d   : > { %v1546_v12 = vmax.f32 %v1466_v0, 0.0  ;;  %v2037_v23 = vadd.f32 %v2036_v46, %v2035_v35  ;;  %v1469_v56 = vadd.f32 %v1468_v2, %v2665_v26  ;;  %v1337_v3 = vadd.f32 %v2034_v63, %v1176_v57 }
 0x17e   : > { %v1586_v60 = vsel %vm1567_vm2, %v1548_v32, %v1474_v54  ;;  %v1549_v44 = vmax.f32 %v1477_v52, 0.0 }
 0x17f   : > { %1618 = vst [vmem:[%s2654_s29 + $0x90] sm:$0xff] %v1586_v60  ;;  %v1584_v62 = vsel %vm1567_vm2, %v1546_v12, %v1466_v0  ;;  %v1547_v30 = vmax.f32 %v1469_v56, 0.0  ;;  %v1340_v6 = vadd.f32 %v2037_v23, %v1179_v8 }
 0x180   : > { %1616 = vst [vmem:[%s2654_s29 + $0x80] sm:$0xff] %v1584_v62  ;;  %v1587_v5 = vsel %vm1567_vm2, %v1549_v44, %v1477_v52 }
 0x181   : > { %1619 = vst [vmem:[%s2654_s29 + $0x98] sm:$0xff] %v1587_v5  ;;  %v1585_v33 = vsel %vm1567_vm2, %v1547_v30, %v1469_v56  ;;  %v2038_v26 = vpop.f32.mrb[68].mxu1  ;;  %v2106_v9 = vpop.f32.mrb[68].mxu0  ;;  %v1200_v30 = vadd.f32 %v2556_v28, %v2563_v38 }
 0x182   : > { %1617 = vst [vmem:[%s2654_s29 + $0x88] sm:$0xff] %v1585_v33  ;;  %v1490_v17 = vadd.f32 %v2106_v9, %v1329_v48  ;;  %v2039_v21 = vpop.f32.mrb[69].mxu1  ;;  %v1481_v24 = vpop.f32.mrb[69].mxu0  ;;  %v1203_v9 = vadd.f32 %v2558_v34, %v2563_v38 }
 0x183   : > { %v2040_v18 = vadd.f32 %v2039_v21, %v2038_v26  ;;  %v1482_v37 = vadd.f32 %v1481_v24, %v2706_v14  ;;  %v2041_v61 = vpop.f32.mrb[70].mxu1  ;;  %v2107_v47 = vpop.f32.mrb[70].mxu0 }
 0x184   : > { %v1552_v41 = vmax.f32 %v1490_v17, 0.0  ;;  %v1493_v42 = vadd.f32 %v2107_v47, %v1332_v7  ;;  %v2042_v20 = vpop.f32.mrb[71].mxu1  ;;  %v1484_v27 = vpop.f32.mrb[71].mxu0 }
 0x185   : > { %v1550_v25 = vmax.f32 %v1482_v37, 0.0  ;;  %v2043_v43 = vadd.f32 %v2042_v20, %v2041_v61  ;;  %v1485_v4 = vadd.f32 %v1484_v27, %v2713_v15  ;;  %v1345_v31 = vadd.f32 %v2040_v18, %v1184_v50 }
 0x186   : > { %v1590_v14 = vsel %vm1567_vm2, %v1552_v41, %v1490_v17  ;;  %v1553_v45 = vmax.f32 %v1493_v42, 0.0 }
 0x187   : > { %1622 = vst [vmem:[%s2654_s29 + $0xb0] sm:$0xff] %v1590_v14  ;;  %v1588_v13 = vsel %vm1567_vm2, %v1550_v25, %v1482_v37  ;;  %v1551_v10 = vmax.f32 %v1485_v4, 0.0  ;;  %v1348_v48 = vadd.f32 %v2043_v43, %v1187_v39 }
 0x188   : > { %1620 = vst [vmem:[%s2654_s29 + $0xa0] sm:$0xff] %v1588_v13  ;;  %v1591_v55 = vsel %vm1567_vm2, %v1553_v45, %v1493_v42 }
 0x189   : > { %1623 = vst [vmem:[%s2654_s29 + $0xb8] sm:$0xff] %v1591_v55  ;;  %v1589_v29 = vsel %vm1567_vm2, %v1551_v10, %v1485_v4  ;;  %v2044_v15 = vpop.f32.mrb[72].mxu1  ;;  %v2110_v11 = vpop.f32.mrb[72].mxu0 }
 0x18a   : > { %1621 = vst [vmem:[%s2654_s29 + $0xa8] sm:$0xff] %v1589_v29  ;;  %v1506_v49 = vadd.f32 %v2110_v11, %v1345_v31  ;;  %v2045_v7 = vpop.f32.mrb[73].mxu1  ;;  %v1497_v36 = vpop.f32.mrb[73].mxu0 }
 0x18b   : > { %v2046_v58 = vadd.f32 %v2045_v7, %v2044_v15  ;;  %v1498_v53 = vadd.f32 %v1497_v36, %v1337_v3  ;;  %v2047_v54 = vpop.f32.mrb[74].mxu1  ;;  %v2111_v19 = vpop.f32.mrb[74].mxu0 }
 0x18c   : > { %v1556_v57 = vmax.f32 %v1506_v49, 0.0  ;;  %v1509_v63 = vadd.f32 %v2111_v19, %v1348_v48  ;;  %v2048_v0 = vpop.f32.mrb[75].mxu1  ;;  %v1500_v35 = vpop.f32.mrb[75].mxu0 }
 0x18d   : > { %v1554_v1 = vmax.f32 %v1498_v53, 0.0  ;;  %v2049_v8 = vadd.f32 %v2048_v0, %v2047_v54  ;;  %v1501_v32 = vadd.f32 %v1500_v35, %v1340_v6  ;;  %v1353_v52 = vadd.f32 %v2046_v58, %v1192_v59 }
 0x18e   : > { %v1594_v16 = vsel %vm1567_vm2, %v1556_v57, %v1506_v49  ;;  %v1557_v46 = vmax.f32 %v1509_v63, 0.0 }
 0x18f   : > { %1626 = vst [vmem:[%s2654_s29 + $0xd0] sm:$0xff] %v1594_v16  ;;  %v1592_v2 = vsel %vm1567_vm2, %v1554_v1, %v1498_v53  ;;  %v1555_v12 = vmax.f32 %v1501_v32, 0.0  ;;  %v1356_v22 = vadd.f32 %v2049_v8, %v1195_v51 }
 0x190   : > { %1624 = vst [vmem:[%s2654_s29 + $0xc0] sm:$0xff] %v1592_v2  ;;  %v1595_v23 = vsel %vm1567_vm2, %v1557_v46, %v1509_v63 }
 0x191   : > { %1627 = vst [vmem:[%s2654_s29 + $0xd8] sm:$0xff] %v1595_v23  ;;  %v1593_v56 = vsel %vm1567_vm2, %v1555_v12, %v1501_v32  ;;  %v2050_v3 = vpop.f32.mrb[76].mxu1  ;;  %v2114_v60 = vpop.f32.mrb[76].mxu0 }
 0x192   : > { %1625 = vst [vmem:[%s2654_s29 + $0xc8] sm:$0xff] %v1593_v56  ;;  %v2051_v44 = vpop.f32.mrb[77].mxu1  ;;  %v1513_v62 = vpop.f32.mrb[77].mxu0 }
 0x193   : > { %v2052_v6 = vadd.f32 %v2051_v44, %v2050_v3  ;;  %v1514_v5 = vadd.f32 %v1513_v62, %v1353_v52  ;;  %v2053_v33 = vpop.f32.mrb[78].mxu1  ;;  %v2115_v26 = vpop.f32.mrb[78].mxu0 }
 0x194   : > { %v2054_v17 = vpop.f32.mrb[79].mxu1  ;;  %v1516_v21 = vpop.f32.mrb[79].mxu0 }
 0x195   : > { %v1361_v24 = vadd.f32 %v2052_v6, %v1200_v30  ;;  %v1558_v50 = vmax.f32 %v1514_v5, 0.0  ;;  %v2055_v18 = vadd.f32 %v2054_v17, %v2053_v33  ;;  %v1517_v37 = vadd.f32 %v1516_v21, %v1356_v22 }
 0x197   : > { %v1522_v61 = vadd.f32 %v2114_v60, %v1361_v24  ;;  %v1596_v28 = vsel %vm1567_vm2, %v1558_v50, %v1514_v5  ;;  %v1364_v47 = vadd.f32 %v2055_v18, %v1203_v9  ;;  %v1559_v39 = vmax.f32 %v1517_v37, 0.0 }
 0x198   : > { %1628 = vst [vmem:[%s2654_s29 + $0xe0] sm:$0xff] %v1596_v28 }
 0x199   : > { %v1560_v41 = vmax.f32 %v1522_v61, 0.0  ;;  %v1525_v42 = vadd.f32 %v2115_v26, %v1364_v47  ;;  %v1597_v34 = vsel %vm1567_vm2, %v1559_v39, %v1517_v37 }
 0x19a   : > { %1629 = vst [vmem:[%s2654_s29 + $0xe8] sm:$0xff] %v1597_v34 }
 0x19b   : > { %v1598_v38 = vsel %vm1567_vm2, %v1560_v41, %v1522_v61  ;;  %v1561_v20 = vmax.f32 %v1525_v42, 0.0 }
 0x19c   : > { %1630 = vst [vmem:[%s2654_s29 + $0xf0] sm:$0xff] %v1598_v38 }
 0x19d   : > { %v1599_v27 = vsel %vm1567_vm2, %v1561_v20, %v1525_v42 }
 0x19e   : > { %1631 = vst [vmem:[%s2654_s29 + $0xf8] sm:$0xff] %v1599_v27 }
 0x19f PF: > { %s14_s15 = sadd.s32 1, %s2296_s15  }
 0x1a0   : > { %p11_p4 = scmp.ge.s32.totalorder %s14_s15, 4  }
 0x1a2   :  { %13 = sbr.rel (!%p11_p4) target bundleno = 1 (0x1), region = 66 }

// kernel: net_forward.6
= control target key start
LH: loop header
LB: loop body
LE: loop exit
PB: predicated region body
PF: predicated region fallthrough
CT: control target
= control target key end

     0   :  { %s2382_s15 = smov 0   ;;  %s2866_s0 = inlined_call_operand.vmem [shape: bf16[512,576], index: 0, kind: input, shape index: {}]   ;;  %s2867_s1 = inlined_call_operand.vmem [shape: bf16[576,64], index: 1, kind: input, shape index: {}]   ;;  %s2868_s2 = inlined_call_operand.vmem [shape: f32[1,64], index: 2, kind: input, shape index: {}]   ;;  %s2869_s3 = inlined_call_operand.vmem [shape: f32[512,64], index: 3, kind: input, shape index: {}]   ;;  %s2870_s4 = inlined_call_operand.vmem [shape: f32[512,64], index: 4, kind: output, shape index: {}]  }
   0x1 LB: > { %s1746_s16 = sadd.s32 4294967295, %s2355_s15   ;;  %p1750_p0 = scmp.ge.s32.totalorder %s2355_s15, 1  ;;  %s2355_s15 = sphi %s2382_s15, %s14_s15  }
   0x2   : > { %p175_p1 = scmp.lt.s32.totalorder %s2355_s15, 3 }
   0x4   : > { %p176_p2 = pnand %p1750_p0, %p175_p1 }
   0x5   : > { %v2201_v0 = vld [vmem:[%s2867_s1 + $0x40] sm:$0xff] (!%p176_p2)   ;;  %s1751_s19 = sshll.u32 (!%p176_p2), %s1746_s16, 5  ;;  %v2203_v2 = vld [vmem:[%s2867_s1 + $0x48] sm:$0xff] (!%p176_p2)   ;;  %v2205_v4 = vld [vmem:[%s2867_s1 + $0x50] sm:$0xff] (!%p176_p2)   ;;  %vm1018_vm0 = vcmask (!%p176_p2), 523264  }
   0x6   : > { %179 = sbr.rel (%p176_p2) target bundleno = 416 (0x1a0), region = 36  ;;  %v2202_v1 = vld [vmem:[%s2867_s1] sm:$0xff] (!%p176_p2)   ;;  %1892 = vmatprep.subr.bf16.mxu0 (!%p176_p2), %v2201_v0  ;;  %2176 = vmatprep.subr.bf16.mxu1 (!%p176_p2), %v2201_v0  ;;  %p208_p3 = scmp.lt.s32.totalorder (!%p176_p2), %s1751_s19, 63  ;;  %v2204_v3 = vld [vmem:[%s2867_s1 + $0x8] sm:$0xff] (!%p176_p2)   ;;  %v2206_v5 = vld [vmem:[%s2867_s1 + $0x10] sm:$0xff] (!%p176_p2)  }
   0x7   : > { %1893 = vmatpush3.bf16.msra.mxu0 (!%p176_p2), %v2202_v1  ;;  %2184 = vmatpush3.bf16.msra.mxu1 (!%p176_p2), %v2202_v1  ;;  %v2207_v6 = vld [vmem:[%s2867_s1 + $0x58] sm:$0xff] (!%p176_p2)   ;;  %v2209_v8 = vld [vmem:[%s2867_s1 + $0x60] sm:$0xff] (!%p176_p2)   ;;  %v2211_v10 = vld [vmem:[%s2867_s1 + $0x68] sm:$0xff] (!%p176_p2)  }
   0x8   : > { %1894 = vmatprep.subr.bf16.mxu0 (!%p176_p2), %v2203_v2  ;;  %2177 = vmatprep.subr.bf16.mxu1 (!%p176_p2), %v2203_v2  ;;  %v2208_v7 = vld [vmem:[%s2867_s1 + $0x18] sm:$0xff] (!%p176_p2)   ;;  %v2210_v9 = vld [vmem:[%s2867_s1 + $0x20] sm:$0xff] (!%p176_p2)   ;;  %v2212_v13 = vld [vmem:[%s2867_s1 + $0x28] sm:$0xff] (!%p176_p2)  }
   0x9   : > { %v2213_v14 = vld [vmem:[%s2867_s1 + $0x70] sm:$0xff] (!%p176_p2)   ;;  %v2215_v16 = vld [vmem:[%s2867_s1 + $0x78] sm:$0xff] (!%p176_p2)   ;;  %v2223_v18 = vld [vmem:[%s2867_s1 + $0xc0] sm:$0xff] (!%p176_p2)  }
   0xa   : > { %v2214_v15 = vld [vmem:[%s2867_s1 + $0x30] sm:$0xff] (!%p176_p2)   ;;  %v2216_v17 = vld [vmem:[%s2867_s1 + $0x38] sm:$0xff] (!%p176_p2)   ;;  %v2226_v19 = vld [vmem:[%s2867_s1 + $0x100] sm:$0xff] (!%p176_p2)  }
   0xb   : > { %1895 = vmatpush3.bf16.msra.mxu0 (!%p176_p2), %v2204_v3  ;;  %2185 = vmatpush3.bf16.msra.mxu1 (!%p176_p2), %v2204_v3  ;;  %v2224_v22 = vld [vmem:[%s2867_s1 + $0x80] sm:$0xff] (!%p176_p2)   ;;  %v2225_v23 = vld [vmem:[%s2867_s1 + $0xc8] sm:$0xff] (!%p176_p2)   ;;  %v2234_v28 = vld [vmem:[%s2867_s1 + $0xd0] sm:$0xff] (!%p176_p2)  }
   0xc   : > { %1896 = vmatprep.subr.bf16.mxu0 (!%p176_p2), %v2205_v4  ;;  %2178 = vmatprep.subr.bf16.mxu1 (!%p176_p2), %v2205_v4  ;;  %v2227_v26 = vld [vmem:[%s2867_s1 + $0x88] sm:$0xff] (!%p176_p2)   ;;  %v2235_v30 = vld [vmem:[%s2867_s1 + $0x90] sm:$0xff] (!%p176_p2)   ;;  %v2236_v31 = vld [vmem:[%s2867_s1 + $0xd8] sm:$0xff] (!%p176_p2)  }
   0xd   : > { %s2872_s19 = smov (!%p208_p3, %s1751_s19), 63  ;;  %v2237_v34 = vld [vmem:[%s2867_s1 + $0x98] sm:$0xff]   ;;  %v2257_v35 = vld [vmem:[%s2867_s1 + $0x108] sm:$0xff]   ;;  %v2244_v37 = vld [vmem:[%s2867_s1 + $0xe0] sm:$0xff]  }
   0xe   : > { %s2192_s6 = smul.u32 20, %s2872_s19  ;;  %v2245_v39 = vld [vmem:[%s2867_s1 + $0xa0] sm:$0xff]   ;;  %v2246_v40 = vld [vmem:[%s2867_s1 + $0xe8] sm:$0xff]   ;;  %v2254_v46 = vld [vmem:[%s2867_s1 + $0xf0] sm:$0xff]   ;;  %s1754_s25 = sshll.u32 %s2872_s19, 3 }
   0xf   : > { %1897 = vmatpush3.bf16.msra.mxu0 %v2206_v5  ;;  %2186 = vmatpush3.bf16.msra.mxu1 %v2206_v5  ;;  %v2247_v43 = vld [vmem:[%s2867_s1 + $0xa8] sm:$0xff]   ;;  %v2277_v47 = vld [vmem:[%s2867_s1 + $0x110] sm:$0xff]   ;;  %v2256_v49 = vld [vmem:[%s2867_s1 + $0xf8] sm:$0xff]   ;;  %s2692_s28 = scalar_lea.vmem %s2869_s3, %s1754_s25  ;;  %s2710_s30 = scalar_lea.vmem %s2870_s4, %s1754_s25 }
  0x10   : > { %1898 = vmatprep.subr.bf16.mxu0 %v2207_v6  ;;  %2179 = vmatprep.subr.bf16.mxu1 %v2207_v6  ;;  %s2423_s13 = scalar_lea.vmem %s2866_s0, %s2192_s6  ;;  %v2255_v48 = vld [vmem:[%s2867_s1 + $0xb0] sm:$0xff]   ;;  %v2258_v52 = vld [vmem:[%s2867_s1 + $0xb8] sm:$0xff]  }
  0x11   : > { %v2219_v11 = vld [vmem:[%s2423_s13 + $0x4] ss:$20 sps:$4 sm:$0xff]   ;;  %v2217_v20 = vld [vmem:[%s2423_s13] ss:$20 sps:$4 sm:$0xff]   ;;  %v2232_v27 = vld [vmem:[%s2423_s13 + $0x28] ss:$20 sps:$4 sm:$0xff]  }
  0x12   : > { %v2222_v12 = vld [vmem:[%s2423_s13 + $0x1e4] ss:$20 sps:$4 sm:$0xff]   ;;  %1099 = vmatprep.mubr.bf16.mxu0 %v2219_v11  ;;  %v2220_v21 = vld [vmem:[%s2423_s13 + $0x1e0] ss:$20 sps:$4 sm:$0xff]   ;;  %v2233_v29 = vld [vmem:[%s2423_s13 + $0x208] ss:$20 sps:$4 sm:$0xff]  }
  0x13   : > { %1899 = vmatpush3.bf16.msra.mxu0 %v2208_v7  ;;  %2187 = vmatpush3.bf16.msra.mxu1 %v2208_v7  ;;  %v2228_v24 = vld [vmem:[%s2423_s13 + $0x2c] ss:$20 sps:$4 sm:$0xff]   ;;  %v2238_v32 = vld [vmem:[%s2423_s13 + $0x54] ss:$20 sps:$4 sm:$0xff]   ;;  %v2242_v36 = vld [vmem:[%s2423_s13 + $0x50] ss:$20 sps:$4 sm:$0xff]  }
  0x14   : > { %1900 = vmatprep.subr.bf16.mxu0 %v2209_v8  ;;  %2180 = vmatprep.subr.bf16.mxu1 %v2209_v8  ;;  %v2230_v25 = vld [vmem:[%s2423_s13 + $0x20c] ss:$20 sps:$4 sm:$0xff]   ;;  %v2240_v33 = vld [vmem:[%s2423_s13 + $0x234] ss:$20 sps:$4 sm:$0xff]   ;;  %v2243_v38 = vld [vmem:[%s2423_s13 + $0x230] ss:$20 sps:$4 sm:$0xff]  }
  0x15   : > { %1195 = vmatprep.mubr.bf16.mxu1 %v2222_v12  ;;  %v2248_v41 = vld [vmem:[%s2423_s13 + $0x7c] ss:$20 sps:$4 sm:$0xff]   ;;  %v2252_v44 = vld [vmem:[%s2423_s13 + $0x78] ss:$20 sps:$4 sm:$0xff]   ;;  %v2264_v54 = vld [vmem:[%s2423_s13 + $0xa0] ss:$20 sps:$4 sm:$0xff]  }
  0x16   : > { %v2250_v42 = vld [vmem:[%s2423_s13 + $0x25c] ss:$20 sps:$4 sm:$0xff]   ;;  %v2253_v45 = vld [vmem:[%s2423_s13 + $0x258] ss:$20 sps:$4 sm:$0xff]   ;;  %v2267_v57 = vld [vmem:[%s2423_s13 + $0x34] ss:$20 sps:$4 sm:$0xff]  }
  0x17   : > { %1901 = vmatpush3.bf16.msra.mxu0 %v2210_v9  ;;  %2188 = vmatpush3.bf16.msra.mxu1 %v2210_v9  ;;  %v2259_v50 = vld [vmem:[%s2423_s13 + $0xa4] ss:$20 sps:$4 sm:$0xff]   ;;  %v2263_v51 = vld [vmem:[%s2423_s13 + $0xc] ss:$20 sps:$4 sm:$0xff]   ;;  %v2261_v53 = vld [vmem:[%s2423_s13 + $0x8] ss:$20 sps:$4 sm:$0xff]  }
  0x18   : > { %1902 = vmatprep.subr.bf16.mxu0 %v2211_v10  ;;  %2181 = vmatprep.subr.bf16.mxu1 %v2211_v10  ;;  %v2265_v55 = vld [vmem:[%s2423_s13 + $0xcc] ss:$20 sps:$4 sm:$0xff]   ;;  %v2296_v56 = vld [vmem:[%s2867_s1 + $0x118] sm:$0xff]   ;;  %v2270_v59 = vld [vmem:[%s2423_s13 + $0x30] ss:$20 sps:$4 sm:$0xff]  }
  0x19   : > { %v2269_v58 = vld [vmem:[%s2423_s13 + $0xc8] ss:$20 sps:$4 sm:$0xff]   ;;  %v2275_v62 = vld [vmem:[%s2423_s13 + $0xf0] ss:$20 sps:$4 sm:$0xff]   ;;  %v2276_v63 = vld [vmem:[%s2423_s13 + $0x58] ss:$20 sps:$4 sm:$0xff]  }
  0x1a   : > { %v2271_v60 = vld [vmem:[%s2423_s13 + $0xf4] ss:$20 sps:$4 sm:$0xff]   ;;  %v2273_v61 = vld [vmem:[%s2423_s13 + $0x5c] ss:$20 sps:$4 sm:$0xff]   ;;  %v2280_v1 = vld [vmem:[%s2423_s13 + $0x84] ss:$20 sps:$4 sm:$0xff]  }
  0x1b   : > { %1903 = vmatpush3.bf16.msra.mxu0 %v2212_v13  ;;  %2189 = vmatpush3.bf16.msra.mxu1 %v2212_v13  ;;  %v2278_v0 = vld [vmem:[%s2423_s13 + $0x11c] ss:$20 sps:$4 sm:$0xff]   ;;  %v2282_v2 = vld [vmem:[%s2423_s13 + $0x118] ss:$20 sps:$4 sm:$0xff]   ;;  %v2283_v3 = vld [vmem:[%s2423_s13 + $0x80] ss:$20 sps:$4 sm:$0xff]  }
  0x1c   : > { %1904 = vmatprep.subr.bf16.mxu0 %v2213_v14  ;;  %2182 = vmatprep.subr.bf16.mxu1 %v2213_v14  ;;  %v2284_v4 = vld [vmem:[%s2423_s13 + $0x144] ss:$20 sps:$4 sm:$0xff]   ;;  %v2286_v5 = vld [vmem:[%s2423_s13 + $0xac] ss:$20 sps:$4 sm:$0xff]   ;;  %v2289_v7 = vld [vmem:[%s2423_s13 + $0xa8] ss:$20 sps:$4 sm:$0xff]  }
  0x1d   : > { %v2288_v6 = vld [vmem:[%s2423_s13 + $0x140] ss:$20 sps:$4 sm:$0xff]   ;;  %v2294_v10 = vld [vmem:[%s2423_s13 + $0x168] ss:$20 sps:$4 sm:$0xff]   ;;  %v2295_v11 = vld [vmem:[%s2423_s13 + $0xd0] ss:$20 sps:$4 sm:$0xff]  }
  0x1e   : > { %v2290_v8 = vld [vmem:[%s2423_s13 + $0x16c] ss:$20 sps:$4 sm:$0xff]   ;;  %v2292_v9 = vld [vmem:[%s2423_s13 + $0xd4] ss:$20 sps:$4 sm:$0xff]   ;;  %v2299_v13 = vld [vmem:[%s2423_s13 + $0xfc] ss:$20 sps:$4 sm:$0xff]  }
  0x1f   : > { %1905 = vmatpush3.bf16.msra.mxu0 %v2214_v15  ;;  %2190 = vmatpush3.bf16.msra.mxu1 %v2214_v15  ;;  %v2297_v12 = vld [vmem:[%s2423_s13 + $0x194] ss:$20 sps:$4 sm:$0xff]   ;;  %v2301_v14 = vld [vmem:[%s2423_s13 + $0x190] ss:$20 sps:$4 sm:$0xff]   ;;  %v2302_v15 = vld [vmem:[%s2423_s13 + $0xf8] ss:$20 sps:$4 sm:$0xff]  }
  0x20   : > { %1906 = vmatprep.subr.bf16.mxu0 %v2215_v16  ;;  %2183 = vmatprep.subr.bf16.mxu1 %v2215_v16  ;;  %v2303_v16 = vld [vmem:[%s2423_s13 + $0x1bc] ss:$20 sps:$4 sm:$0xff]  }
  0x23   : > { %1907 = vmatpush3.bf16.msra.mxu0 %v2216_v17  ;;  %2191 = vmatpush3.bf16.msra.mxu1 %v2216_v17  ;;  %v2305_v17 = vld [vmem:[%s2423_s13 + $0x124] ss:$20 sps:$4 sm:$0xff]  }
  0x24   : > { %2004 = vmatprep.subr.bf16.mxu1 %v2223_v18  ;;  %2136 = vmatprep.subr.bf16.mxu0 %v2226_v19  ;;  %v2307_v18 = vld [vmem:[%s2423_s13 + $0x1b8] ss:$20 sps:$4 sm:$0xff]  }
  0x26   : > { %1100 = vmatmul.mubr.bf16.vlgmr.msra.gmra.mrb[0].mxu0 %v2217_v20  ;;  %1196 = vmatmul.mubr.bf16.vlgmr.msra.gmra.mrb[0].mxu1 %v2220_v21  ;;  %v2309_v20 = vld [vmem:[%s2423_s13 + $0x14c] ss:$20 sps:$4 sm:$0xff]   ;;  %v2311_v21 = vld [vmem:[%s2423_s13 + $0x10] ss:$20 sps:$4 sm:$0xff]  }
  0x27   : > { %2005 = vmatpush3.bf16.msra.mxu1 %v2224_v22  ;;  %2137 = vmatpush3.bf16.msra.mxu0 %v2226_v19  ;;  %v2308_v19 = vld [vmem:[%s2423_s13 + $0x120] ss:$20 sps:$4 sm:$0xff]   ;;  %v2312_v22 = vld [vmem:[%s2423_s13 + $0x148] ss:$20 sps:$4 sm:$0xff]  }
  0x28   : > { %2006 = vmatprep.subr.bf16.mxu1 %v2225_v23  ;;  %1107 = vmatprep.mubr.bf16.mxu0 %v2228_v24  ;;  %v2313_v23 = vld [vmem:[%s2423_s13 + $0x38] ss:$20 sps:$4 sm:$0xff]   ;;  %v2314_v24 = vld [vmem:[%s2423_s13 + $0x174] ss:$20 sps:$4 sm:$0xff]  }
  0x29   : > { %1203 = vmatprep.mubr.bf16.mxu1 %v2230_v25  ;;  %2138 = vmatprep.subr.bf16.mxu0 %v2257_v35  ;;  %v2316_v25 = vld [vmem:[%s2423_s13 + $0x60] ss:$20 sps:$4 sm:$0xff]  }
  0x2b   : > { %2007 = vmatpush3.bf16.msra.mxu1 %v2227_v26  ;;  %2139 = vmatpush3.bf16.msra.mxu0 %v2257_v35  ;;  %v2317_v26 = vld [vmem:[%s2423_s13 + $0x170] ss:$20 sps:$4 sm:$0xff]   ;;  %v2328_v35 = vld [vmem:[%s2423_s13 + $0x128] ss:$20 sps:$4 sm:$0xff]  }
  0x2c   : > { %2008 = vmatprep.subr.bf16.mxu1 %v2234_v28  ;;  %2140 = vmatprep.subr.bf16.mxu0 %v2277_v47  ;;  %v2319_v28 = vld [vmem:[%s2423_s13 + $0x19c] ss:$20 sps:$4 sm:$0xff]  }
  0x2e   : > { %1108 = vmatmul.mubr.bf16.gmra.mrb[4].mxu0 %v2232_v27  ;;  %1204 = vmatmul.mubr.bf16.gmra.mrb[4].mxu1 %v2233_v29  ;;  %v2318_v27 = vld [vmem:[%s2423_s13 + $0x88] ss:$20 sps:$4 sm:$0xff]   ;;  %v2321_v29 = vld [vmem:[%s2423_s13 + $0xb0] ss:$20 sps:$4 sm:$0xff]  }
  0x2f   : > { %2009 = vmatpush3.bf16.msra.mxu1 %v2235_v30  ;;  %1115 = vmatprep.mubr.bf16.mxu0 %v2238_v32  ;;  %v2322_v30 = vld [vmem:[%s2423_s13 + $0x198] ss:$20 sps:$4 sm:$0xff]  }
  0x30   : > { %2010 = vmatprep.subr.bf16.mxu1 %v2236_v31  ;;  %1211 = vmatprep.mubr.bf16.mxu1 %v2240_v33  ;;  %v2323_v31 = vld [vmem:[%s2423_s13 + $0xd8] ss:$20 sps:$4 sm:$0xff]   ;;  %v2326_v33 = vld [vmem:[%s2423_s13 + $0x100] ss:$20 sps:$4 sm:$0xff]  }
  0x31   : > { %2141 = vmatpush3.bf16.msra.mxu0 %v2277_v47  ;;  %v2324_v32 = vld [vmem:[%s2423_s13 + $0x1c4] ss:$20 sps:$4 sm:$0xff]  }
  0x32   : > { %2142 = vmatprep.subr.bf16.mxu0 %v2296_v56  ;;  %v2343_v47 = vld [vmem:[%s2423_s13 + $0x218] ss:$20 sps:$4 sm:$0xff]  }
  0x33   : > { %2011 = vmatpush3.bf16.msra.mxu1 %v2237_v34  ;;  %v2327_v34 = vld [vmem:[%s2423_s13 + $0x1c0] ss:$20 sps:$4 sm:$0xff]  }
  0x34   : > { %2012 = vmatprep.subr.bf16.mxu1 %v2244_v37  ;;  %v2331_v37 = vld [vmem:[%s2423_s13 + $0x150] ss:$20 sps:$4 sm:$0xff]  }
  0x35   : > { %2143 = vmatpush3.bf16.msra.mxu0 %v2296_v56 }
  0x36   : > { %1116 = vmatmul.mubr.bf16.gmra.mrb[8].mxu0 %v2242_v36  ;;  %1212 = vmatmul.mubr.bf16.gmra.mrb[8].mxu1 %v2243_v38  ;;  %v2329_v36 = vld [vmem:[%s2423_s13 + $0x1ec] ss:$20 sps:$4 sm:$0xff]   ;;  %v2332_v38 = vld [vmem:[%s2423_s13 + $0x1e8] ss:$20 sps:$4 sm:$0xff]  }
  0x37   : > { %2013 = vmatpush3.bf16.msra.mxu1 %v2245_v39  ;;  %1123 = vmatprep.mubr.bf16.mxu0 %v2248_v41  ;;  %v2333_v39 = vld [vmem:[%s2423_s13 + $0x178] ss:$20 sps:$4 sm:$0xff]   ;;  %v2336_v41 = vld [vmem:[%s2423_s13 + $0x1a0] ss:$20 sps:$4 sm:$0xff]  }
  0x38   : > { %2014 = vmatprep.subr.bf16.mxu1 %v2246_v40  ;;  %1219 = vmatprep.mubr.bf16.mxu1 %v2250_v42  ;;  %v2334_v40 = vld [vmem:[%s2423_s13 + $0x214] ss:$20 sps:$4 sm:$0xff]   ;;  %v2337_v42 = vld [vmem:[%s2423_s13 + $0x210] ss:$20 sps:$4 sm:$0xff]  }
  0x3b   : > { %2015 = vmatpush3.bf16.msra.mxu1 %v2247_v43  ;;  %v2338_v43 = vld [vmem:[%s2423_s13 + $0x1c8] ss:$20 sps:$4 sm:$0xff]  }
  0x3c   : > { %2016 = vmatprep.subr.bf16.mxu1 %v2254_v46  ;;  %v2342_v46 = vld [vmem:[%s2423_s13 + $0x238] ss:$20 sps:$4 sm:$0xff]  }
  0x3e   : > { %1124 = vmatmul.mubr.bf16.gmra.mrb[12].mxu0 %v2252_v44  ;;  %1220 = vmatmul.mubr.bf16.gmra.mrb[12].mxu1 %v2253_v45  ;;  %v2339_v44 = vld [vmem:[%s2423_s13 + $0x23c] ss:$20 sps:$4 sm:$0xff]  }
  0x3f   : > { %2017 = vmatpush3.bf16.msra.mxu1 %v2255_v48  ;;  %1131 = vmatprep.mubr.bf16.mxu0 %v2259_v50  ;;  %v2341_v45 = vld [vmem:[%s2423_s13 + $0x1f0] ss:$20 sps:$4 sm:$0xff]   ;;  %v2347_v50 = vld [vmem:[%s2423_s13 + $0x260] ss:$20 sps:$4 sm:$0xff]  }
  0x40   : > { %2018 = vmatprep.subr.bf16.mxu1 %v2256_v49  ;;  %1260 = vmatprep.mubr.bf16.mxu1 %v2263_v51  ;;  %v2344_v48 = vld [vmem:[%s2423_s13 + $0x264] ss:$20 sps:$4 sm:$0xff]   ;;  %v2346_v49 = vld [vmem:[%s2423_s13 + $0x240] ss:$20 sps:$4 sm:$0xff]   ;;  %v2348_v51 = vld [vmem:[%s2423_s13 + $0x268] ss:$20 sps:$4 sm:$0xff]  }
  0x43   : > { %2019 = vmatpush3.bf16.msra.mxu1 %v2258_v52 }
  0x46   : > { %1132 = vmatmul.mubr.bf16.gmra.mrb[16].mxu0 %v2264_v54  ;;  %1261 = vmatmul.mubr.bf16.vlgmr.msra.gmra.mrb[16].mxu1 %v2261_v53 }
  0x47   : > { %1139 = vmatprep.mubr.bf16.mxu0 %v2265_v55  ;;  %1268 = vmatprep.mubr.bf16.mxu1 %v2267_v57 }
  0x4e   : > { %1140 = vmatmul.mubr.bf16.gmra.mrb[20].mxu0 %v2269_v58  ;;  %1269 = vmatmul.mubr.bf16.gmra.mrb[20].mxu1 %v2270_v59 }
  0x4f   : > { %1147 = vmatprep.mubr.bf16.mxu0 %v2271_v60  ;;  %1276 = vmatprep.mubr.bf16.mxu1 %v2273_v61 }
  0x56   : > { %1148 = vmatmul.mubr.bf16.gmra.mrb[24].mxu0 %v2275_v62  ;;  %1277 = vmatmul.mubr.bf16.gmra.mrb[24].mxu1 %v2276_v63 }
  0x57   : > { %1155 = vmatprep.mubr.bf16.mxu0 %v2278_v0  ;;  %1284 = vmatprep.mubr.bf16.mxu1 %v2280_v1 }
  0x5e   : > { %1156 = vmatmul.mubr.bf16.gmra.mrb[28].mxu0 %v2282_v2  ;;  %1285 = vmatmul.mubr.bf16.gmra.mrb[28].mxu1 %v2283_v3 }
  0x5f   : > { %1163 = vmatprep.mubr.bf16.mxu0 %v2284_v4  ;;  %1292 = vmatprep.mubr.bf16.mxu1 %v2286_v5 }
  0x66   : > { %1164 = vmatmul.mubr.bf16.gmra.mrb[32].mxu0 %v2288_v6  ;;  %1293 = vmatmul.mubr.bf16.gmra.mrb[32].mxu1 %v2289_v7 }
  0x67   : > { %1171 = vmatprep.mubr.bf16.mxu0 %v2290_v8  ;;  %1300 = vmatprep.mubr.bf16.mxu1 %v2292_v9 }
  0x6e   : > { %1172 = vmatmul.mubr.bf16.gmra.mrb[36].mxu0 %v2294_v10  ;;  %1301 = vmatmul.mubr.bf16.gmra.mrb[36].mxu1 %v2295_v11 }
  0x6f   : > { %1179 = vmatprep.mubr.bf16.mxu0 %v2297_v12  ;;  %1308 = vmatprep.mubr.bf16.mxu1 %v2299_v13 }
  0x76   : > { %1180 = vmatmul.mubr.bf16.gmra.mrb[40].mxu0 %v2301_v14  ;;  %1309 = vmatmul.mubr.bf16.gmra.mrb[40].mxu1 %v2302_v15 }
  0x77   : > { %1187 = vmatprep.mubr.bf16.mxu0 %v2303_v16  ;;  %1316 = vmatprep.mubr.bf16.mxu1 %v2305_v17 }
  0x7e   : > { %1188 = vmatmul.mubr.bf16.gmra.mrb[44].mxu0 %v2307_v18  ;;  %1317 = vmatmul.mubr.bf16.gmra.mrb[44].mxu1 %v2308_v19 }
  0x7f   : > { %1324 = vmatprep.mubr.bf16.mxu1 %v2309_v20  ;;  %2144 = vmatprep.mubr.msk.bf16.mxu0 %vm1018_vm0, %v2311_v21 }
  0x86   : > { %1325 = vmatmul.mubr.bf16.gmra.mrb[48].mxu1 %v2312_v22  ;;  %2145 = vmatmul.mubr.msk.bf16.vlgmr.msra.gmra.mrb[48].mxu0 %vm1018_vm0, %v2313_v23 }
  0x87   : > { %1332 = vmatprep.mubr.bf16.mxu1 %v2314_v24  ;;  %2148 = vmatprep.mubr.msk.bf16.mxu0 %vm1018_vm0, %v2316_v25 }
  0x8e   : > { %1333 = vmatmul.mubr.bf16.gmra.mrb[52].mxu1 %v2317_v26  ;;  %2149 = vmatmul.mubr.msk.bf16.gmra.mrb[52].mxu0 %vm1018_vm0, %v2318_v27 }
  0x8f   : > { %1340 = vmatprep.mubr.bf16.mxu1 %v2319_v28  ;;  %2152 = vmatprep.mubr.msk.bf16.mxu0 %vm1018_vm0, %v2321_v29 }
  0x96   : > { %1341 = vmatmul.mubr.bf16.gmra.mrb[56].mxu1 %v2322_v30  ;;  %2153 = vmatmul.mubr.msk.bf16.gmra.mrb[56].mxu0 %vm1018_vm0, %v2323_v31 }
  0x97   : > { %1348 = vmatprep.mubr.bf16.mxu1 %v2324_v32  ;;  %2156 = vmatprep.mubr.msk.bf16.mxu0 %vm1018_vm0, %v2326_v33 }
  0x9e   : > { %1349 = vmatmul.mubr.bf16.gmra.mrb[60].mxu1 %v2327_v34  ;;  %2157 = vmatmul.mubr.msk.bf16.gmra.mrb[60].mxu0 %vm1018_vm0, %v2328_v35 }
  0x9f   : > { %1356 = vmatprep.mubr.bf16.mxu1 %v2329_v36  ;;  %2160 = vmatprep.mubr.msk.bf16.mxu0 %vm1018_vm0, %v2331_v37 }
  0xa6   : > { %1357 = vmatmul.mubr.bf16.gmra.mrb[64].mxu1 %v2332_v38  ;;  %2161 = vmatmul.mubr.msk.bf16.gmra.mrb[64].mxu0 %vm1018_vm0, %v2333_v39  ;;  %v2621_v38 = vld [vmem:[%s2868_s2] ss:$0 sm:$0xff] }
  0xa7   : > { %1364 = vmatprep.mubr.bf16.mxu1 %v2334_v40  ;;  %2164 = vmatprep.mubr.msk.bf16.mxu0 %vm1018_vm0, %v2336_v41 }
  0xae   : > { %1365 = vmatmul.mubr.bf16.gmra.mrb[68].mxu1 %v2337_v42  ;;  %2165 = vmatmul.mubr.msk.bf16.gmra.mrb[68].mxu0 %vm1018_vm0, %v2338_v43 }
  0xaf   : > { %1372 = vmatprep.mubr.bf16.mxu1 %v2339_v44  ;;  %2168 = vmatprep.mubr.msk.bf16.mxu0 %vm1018_vm0, %v2341_v45 }
  0xb6   : > { %1373 = vmatmul.mubr.bf16.gmra.mrb[72].mxu1 %v2342_v46  ;;  %2169 = vmatmul.mubr.msk.bf16.gmra.mrb[72].mxu0 %vm1018_vm0, %v2343_v47 }
  0xb7   : > { %1380 = vmatprep.mubr.bf16.mxu1 %v2344_v48  ;;  %2172 = vmatprep.mubr.msk.bf16.mxu0 %vm1018_vm0, %v2346_v49 }
  0xbe   : > { %1381 = vmatmul.mubr.bf16.gmra.mrb[76].mxu1 %v2347_v50  ;;  %2173 = vmatmul.mubr.msk.bf16.gmra.mrb[76].mxu0 %vm1018_vm0, %v2348_v51 }
  0xf9   : > { %v1980_v52 = vpop.f32.mrb[0].mxu1  ;;  %v1908_v53 = vpop.f32.mrb[0].mxu0 }
  0xfa   : > { %v1981_v54 = vpop.f32.mrb[1].mxu1  ;;  %v1909_v55 = vpop.f32.mrb[1].mxu0 }
  0xfb   : > { %v2602_v56 = vadd.f32 %v1981_v54, %v1980_v52  ;;  %v1983_v57 = vpop.f32.mrb[2].mxu1  ;;  %v1910_v58 = vadd.f32 %v1909_v55, %v1908_v53  ;;  %v1911_v59 = vpop.f32.mrb[2].mxu0 }
  0xfc   : > { %v1984_v60 = vpop.f32.mrb[3].mxu1  ;;  %v1912_v61 = vpop.f32.mrb[3].mxu0 }
  0xfd   : > { %v2604_v62 = vadd.f32 %v1984_v60, %v1983_v57  ;;  %v1913_v63 = vadd.f32 %v1912_v61, %v1911_v59  ;;  %v1102_v41 = vadd.f32 %v1910_v58, %v2621_v38 }
  0xff   : > { %v1105_v48 = vadd.f32 %v1913_v63, %v2621_v38 }
 0x101   : > { %v1986_v0 = vpop.f32.mrb[4].mxu1  ;;  %v1914_v1 = vpop.f32.mrb[4].mxu0 }
 0x102   : > { %v1987_v2 = vpop.f32.mrb[5].mxu1  ;;  %v1915_v3 = vpop.f32.mrb[5].mxu0 }
 0x103   : > { %v2606_v4 = vadd.f32 %v1987_v2, %v1986_v0  ;;  %v1989_v5 = vpop.f32.mrb[6].mxu1  ;;  %v1916_v6 = vadd.f32 %v1915_v3, %v1914_v1  ;;  %v1917_v7 = vpop.f32.mrb[6].mxu0 }
 0x104   : > { %v1990_v8 = vpop.f32.mrb[7].mxu1  ;;  %v1918_v9 = vpop.f32.mrb[7].mxu0 }
 0x105   : > { %v2608_v10 = vadd.f32 %v1990_v8, %v1989_v5  ;;  %v1919_v11 = vadd.f32 %v1918_v9, %v1917_v7  ;;  %v1110_v58 = vadd.f32 %v1916_v6, %v2621_v38 }
 0x107   : > { %v1113_v63 = vadd.f32 %v1919_v11, %v2621_v38 }
 0x109   : > { %v1992_v12 = vpop.f32.mrb[8].mxu1  ;;  %v1920_v13 = vpop.f32.mrb[8].mxu0 }
 0x10a   : > { %v1993_v14 = vpop.f32.mrb[9].mxu1  ;;  %v1921_v15 = vpop.f32.mrb[9].mxu0 }
 0x10b   : > { %v2610_v16 = vadd.f32 %v1993_v14, %v1992_v12  ;;  %v1995_v17 = vpop.f32.mrb[10].mxu1  ;;  %v1922_v18 = vadd.f32 %v1921_v15, %v1920_v13  ;;  %v1923_v19 = vpop.f32.mrb[10].mxu0 }
 0x10c   : > { %v1996_v20 = vpop.f32.mrb[11].mxu1  ;;  %v1924_v21 = vpop.f32.mrb[11].mxu0 }
 0x10d   : > { %v2612_v22 = vadd.f32 %v1996_v20, %v1995_v17  ;;  %v1925_v23 = vadd.f32 %v1924_v21, %v1923_v19  ;;  %v1118_v6 = vadd.f32 %v1922_v18, %v2621_v38 }
 0x10f   : > { %v1121_v11 = vadd.f32 %v1925_v23, %v2621_v38 }
 0x111   : > { %v1998_v24 = vpop.f32.mrb[12].mxu1  ;;  %v1926_v25 = vpop.f32.mrb[12].mxu0 }
 0x112   : > { %v1999_v26 = vpop.f32.mrb[13].mxu1  ;;  %v1927_v27 = vpop.f32.mrb[13].mxu0 }
 0x113   : > { %v2614_v28 = vadd.f32 %v1999_v26, %v1998_v24  ;;  %v2001_v29 = vpop.f32.mrb[14].mxu1  ;;  %v1928_v30 = vadd.f32 %v1927_v27, %v1926_v25  ;;  %v1929_v31 = vpop.f32.mrb[14].mxu0 }
 0x114   : > { %v2002_v32 = vpop.f32.mrb[15].mxu1  ;;  %v1930_v33 = vpop.f32.mrb[15].mxu0 }
 0x115   : > { %v2616_v34 = vadd.f32 %v2002_v32, %v2001_v29  ;;  %v1931_v35 = vadd.f32 %v1930_v33, %v1929_v31  ;;  %v1126_v18 = vadd.f32 %v1928_v30, %v2621_v38 }
 0x117   : > { %v1129_v23 = vadd.f32 %v1931_v35, %v2621_v38 }
 0x119   : > { %v2020_v36 = vpop.f32.mrb[16].mxu1  ;;  %v1932_v37 = vpop.f32.mrb[16].mxu0 }
 0x11a   : > { %v2021_v39 = vpop.f32.mrb[17].mxu1  ;;  %v1933_v40 = vpop.f32.mrb[17].mxu0 }
 0x11b   : > { %v2022_v42 = vadd.f32 %v2021_v39, %v2020_v36  ;;  %v2023_v43 = vpop.f32.mrb[18].mxu1  ;;  %v1934_v44 = vadd.f32 %v1933_v40, %v1932_v37  ;;  %v1935_v45 = vpop.f32.mrb[18].mxu0 }
 0x11c   : > { %v2024_v46 = vpop.f32.mrb[19].mxu1  ;;  %v1936_v47 = vpop.f32.mrb[19].mxu0 }
 0x11d   : > { %v2025_v49 = vadd.f32 %v2024_v46, %v2023_v43  ;;  %v1937_v50 = vadd.f32 %v1936_v47, %v1935_v45  ;;  %v2625_v51 = vadd.f32 %v2022_v42, %v1102_v41  ;;  %v1134_v30 = vadd.f32 %v1934_v44, %v2621_v38 }
 0x11f   : > { %v2627_v52 = vadd.f32 %v2025_v49, %v1105_v48 }
 0x121   : > { %v2026_v53 = vpop.f32.mrb[20].mxu1  ;;  %v1938_v54 = vpop.f32.mrb[20].mxu0 }
 0x122   : > { %v2027_v55 = vpop.f32.mrb[21].mxu1  ;;  %v1939_v57 = vpop.f32.mrb[21].mxu0 }
 0x123   : > { %v2028_v59 = vadd.f32 %v2027_v55, %v2026_v53  ;;  %v2029_v60 = vpop.f32.mrb[22].mxu1  ;;  %v1940_v61 = vadd.f32 %v1939_v57, %v1938_v54  ;;  %v1941_v0 = vpop.f32.mrb[22].mxu0 }
 0x124   : > { %v2030_v1 = vpop.f32.mrb[23].mxu1  ;;  %v1942_v2 = vpop.f32.mrb[23].mxu0 }
 0x125   : > { %v2031_v3 = vadd.f32 %v2030_v1, %v2029_v60  ;;  %v1943_v5 = vadd.f32 %v1942_v2, %v1941_v0  ;;  %v2631_v7 = vadd.f32 %v2028_v59, %v1110_v58  ;;  %v1137_v1 = vadd.f32 %v1937_v50, %v2621_v38 }
 0x127   : > { %v2633_v8 = vadd.f32 %v2031_v3, %v1113_v63 }
 0x129   : > { %v2032_v9 = vpop.f32.mrb[24].mxu1  ;;  %v1944_v12 = vpop.f32.mrb[24].mxu0 }
 0x12a   : > { %v2033_v13 = vpop.f32.mrb[25].mxu1  ;;  %v1945_v14 = vpop.f32.mrb[25].mxu0 }
 0x12b   : > { %v2034_v15 = vadd.f32 %v2033_v13, %v2032_v9  ;;  %v2035_v17 = vpop.f32.mrb[26].mxu1  ;;  %v1946_v19 = vadd.f32 %v1945_v14, %v1944_v12  ;;  %v1947_v20 = vpop.f32.mrb[26].mxu0 }
 0x12c   : > { %v2036_v21 = vpop.f32.mrb[27].mxu1  ;;  %v1948_v24 = vpop.f32.mrb[27].mxu0 }
 0x12d   : > { %v2037_v25 = vadd.f32 %v2036_v21, %v2035_v17  ;;  %v1949_v26 = vadd.f32 %v1948_v24, %v1947_v20  ;;  %v2637_v27 = vadd.f32 %v2034_v15, %v1118_v6  ;;  %v1142_v6 = vadd.f32 %v1940_v61, %v2621_v38 }
 0x12f   : > { %v2639_v29 = vadd.f32 %v2037_v25, %v1121_v11  ;;  %v1145_v11 = vadd.f32 %v1943_v5, %v2621_v38 }
 0x131   : > { %v2038_v31 = vpop.f32.mrb[28].mxu1  ;;  %v1950_v32 = vpop.f32.mrb[28].mxu0 }
 0x132   : > { %v2039_v33 = vpop.f32.mrb[29].mxu1  ;;  %v1951_v36 = vpop.f32.mrb[29].mxu0 }
 0x133   : > { %v2040_v37 = vadd.f32 %v2039_v33, %v2038_v31  ;;  %v2041_v39 = vpop.f32.mrb[30].mxu1  ;;  %v1952_v40 = vadd.f32 %v1951_v36, %v1950_v32  ;;  %v1953_v41 = vpop.f32.mrb[30].mxu0 }
 0x134   : > { %v2042_v42 = vpop.f32.mrb[31].mxu1  ;;  %v1954_v43 = vpop.f32.mrb[31].mxu0 }
 0x135   : > { %v2043_v45 = vadd.f32 %v2042_v42, %v2041_v39  ;;  %v2643_v46 = vadd.f32 %v1954_v43, %v1953_v41  ;;  %v2645_v47 = vadd.f32 %v2040_v37, %v1126_v18  ;;  %v1150_v39 = vadd.f32 %v1946_v19, %v2621_v38 }
 0x137   : > { %v2647_v48 = vadd.f32 %v2043_v45, %v1129_v23 }
 0x139   : > { %v2044_v49 = vpop.f32.mrb[32].mxu1  ;;  %v1956_v53 = vpop.f32.mrb[32].mxu0 }
 0x13a   : > { %v2045_v54 = vpop.f32.mrb[33].mxu1  ;;  %v1957_v55 = vpop.f32.mrb[33].mxu0 }
 0x13b   : > { %v2046_v57 = vadd.f32 %v2045_v54, %v2044_v49  ;;  %v2047_v58 = vpop.f32.mrb[34].mxu1  ;;  %v2650_v59 = vadd.f32 %v1957_v55, %v1956_v53  ;;  %v1959_v60 = vpop.f32.mrb[34].mxu0  ;;  %v1153_v49 = vadd.f32 %v1949_v26, %v2621_v38 }
 0x13c   : > { %v2048_v0 = vpop.f32.mrb[35].mxu1  ;;  %v1960_v35 = vpop.f32.mrb[35].mxu0 }
 0x13d   : > { %v2049_v2 = vadd.f32 %v2048_v0, %v2047_v58  ;;  %v2653_v63 = vadd.f32 %v1960_v35, %v1959_v60  ;;  %v2655_v3 = vadd.f32 %v2046_v57, %v1134_v30  ;;  %v1158_v0 = vadd.f32 %v1952_v40, %v2621_v38 }
 0x13f   : > { %v2657_v9 = vadd.f32 %v2049_v2, %v1137_v1 }
 0x141   : > { %v2050_v12 = vpop.f32.mrb[36].mxu1  ;;  %v1962_v13 = vpop.f32.mrb[36].mxu0 }
 0x142   : > { %v2051_v14 = vpop.f32.mrb[37].mxu1  ;;  %v1963_v44 = vpop.f32.mrb[37].mxu0 }
 0x143   : > { %v2052_v15 = vadd.f32 %v2051_v14, %v2050_v12  ;;  %v2053_v17 = vpop.f32.mrb[38].mxu1  ;;  %v2660_v20 = vadd.f32 %v1963_v44, %v1962_v13  ;;  %v1965_v21 = vpop.f32.mrb[38].mxu0  ;;  %v1161_v14 = vadd.f32 %v2643_v46, %v2621_v38 }
 0x144   : > { %v2054_v24 = vpop.f32.mrb[39].mxu1  ;;  %v1966_v50 = vpop.f32.mrb[39].mxu0 }
 0x145   : > { %v2055_v25 = vadd.f32 %v2054_v24, %v2053_v17  ;;  %v2663_v31 = vadd.f32 %v1966_v50, %v1965_v21  ;;  %v2665_v32 = vadd.f32 %v2052_v15, %v1142_v6  ;;  %v1552_v24 = vld [vmem:[%s2692_s28 + $0x10] sm:$0xff] }
 0x147   : > { %v2667_v33 = vadd.f32 %v2055_v25, %v1145_v11  ;;  %v1550_v25 = vld [vmem:[%s2692_s28] sm:$0xff] }
 0x149   : > { %v2056_v36 = vpop.f32.mrb[40].mxu1  ;;  %v1968_v18 = vpop.f32.mrb[40].mxu0 }
 0x14a   : > { %v2057_v37 = vpop.f32.mrb[41].mxu1  ;;  %v1969_v61 = vpop.f32.mrb[41].mxu0 }
 0x14b   : > { %v2058_v41 = vadd.f32 %v2057_v37, %v2056_v36  ;;  %v2059_v42 = vpop.f32.mrb[42].mxu1  ;;  %v2670_v43 = vadd.f32 %v1969_v61, %v1968_v18  ;;  %v1971_v23 = vpop.f32.mrb[42].mxu0  ;;  %v1166_v36 = vadd.f32 %v2650_v59, %v2621_v38 }
 0x14c   : > { %v2060_v45 = vpop.f32.mrb[43].mxu1  ;;  %v1972_v5 = vpop.f32.mrb[43].mxu0 }
 0x14d   : > { %v2061_v53 = vadd.f32 %v2060_v45, %v2059_v42  ;;  %v2673_v54 = vadd.f32 %v1972_v5, %v1971_v23  ;;  %v2675_v55 = vadd.f32 %v2058_v41, %v1150_v39  ;;  %v1553_v41 = vld [vmem:[%s2692_s28 + $0x18] sm:$0xff]  ;;  %v1169_v42 = vadd.f32 %v2653_v63, %v2621_v38 }
 0x14f   : > { %v2677_v30 = vadd.f32 %v2061_v53, %v1153_v49  ;;  %v1551_v49 = vld [vmem:[%s2692_s28 + $0x8] sm:$0xff] }
 0x151   : > { %v2062_v57 = vpop.f32.mrb[44].mxu1  ;;  %v1974_v58 = vpop.f32.mrb[44].mxu0 }
 0x152   : > { %v2063_v19 = vpop.f32.mrb[45].mxu1  ;;  %v1975_v60 = vpop.f32.mrb[45].mxu0 }
 0x153   : > { %v2064_v35 = vadd.f32 %v2063_v19, %v2062_v57  ;;  %v2065_v1 = vpop.f32.mrb[46].mxu1  ;;  %v2680_v2 = vadd.f32 %v1975_v60, %v1974_v58  ;;  %v1977_v12 = vpop.f32.mrb[46].mxu0 }
 0x154   : > { %v2066_v26 = vpop.f32.mrb[47].mxu1  ;;  %v1978_v13 = vpop.f32.mrb[47].mxu0 }
 0x155   : > { %v2067_v44 = vadd.f32 %v2066_v26, %v2065_v1  ;;  %v2685_v6 = vadd.f32 %v1978_v13, %v1977_v12  ;;  %v2687_v15 = vadd.f32 %v2064_v35, %v1158_v0 }
 0x157   : > { %v2694_v40 = vadd.f32 %v2067_v44, %v1161_v14  ;;  %v1554_v44 = vld [vmem:[%s2692_s28 + $0x20] sm:$0xff] }
 0x159   : > { %v2068_v17 = vpop.f32.mrb[48].mxu1  ;;  %v2146_v21 = vpop.f32.mrb[48].mxu0 }
 0x15a   : > { %v1432_v46 = vadd.f32 %v2146_v21, %v2631_v7  ;;  %v2069_v50 = vpop.f32.mrb[49].mxu1  ;;  %v1423_v11 = vpop.f32.mrb[49].mxu0 }
 0x15b   : > { %v2070_v18 = vadd.f32 %v2069_v50, %v2068_v17  ;;  %v1424_v37 = vadd.f32 %v1423_v11, %v2625_v51  ;;  %v2071_v61 = vpop.f32.mrb[50].mxu1  ;;  %v2147_v39 = vpop.f32.mrb[50].mxu0  ;;  %v1174_v17 = vadd.f32 %v2660_v20, %v2621_v38  ;;  %v1557_v11 = vld [vmem:[%s2692_s28 + $0x38] sm:$0xff] }
 0x15c   : > { %v1584_v23 = vadd.f32 %v1552_v24, %v1432_v46  ;;  %v1435_v45 = vadd.f32 %v2147_v39, %v2633_v8  ;;  %v2072_v5 = vpop.f32.mrb[51].mxu1  ;;  %v1426_v7 = vpop.f32.mrb[51].mxu0 }
 0x15d   : > { %v1582_v51 = vadd.f32 %v1550_v25, %v1424_v37  ;;  %v2073_v59 = vadd.f32 %v2072_v5, %v2071_v61  ;;  %v1427_v53 = vadd.f32 %v1426_v7, %v2627_v52  ;;  %v2713_v63 = vadd.f32 %v2070_v18, %v1166_v36  ;;  %v1556_v52 = vld [vmem:[%s2692_s28 + $0x30] sm:$0xff]  ;;  %v1555_v61 = vld [vmem:[%s2692_s28 + $0x28] sm:$0xff] }
 0x15e   : > { %v1616_v57 = vmax.f32 %v1584_v23, 0.0  ;;  %v1585_v8 = vadd.f32 %v1553_v41, %v1435_v45  ;;  %v1177_v25 = vadd.f32 %v2663_v31, %v2621_v38 }
 0x15f   : > { %v1614_v58 = vmax.f32 %v1582_v51, 0.0  ;;  %v1583_v19 = vadd.f32 %v1551_v49, %v1427_v53  ;;  %v2715_v60 = vadd.f32 %v2073_v59, %v1169_v42 }
 0x160   : > { %1648 = vst.msk [vmem:[%s2710_s30 + $0x10] sm:$0xff] %vm1018_vm0, %v1616_v57  ;;  %v1617_v0 = vmax.f32 %v1585_v8, 0.0  ;;  %v1558_v8 = vld [vmem:[%s2692_s28 + $0x40] sm:$0xff] }
 0x161   : > { %1646 = vst.msk [vmem:[%s2710_s30] sm:$0xff] %vm1018_vm0, %v1614_v58  ;;  %v1615_v35 = vmax.f32 %v1583_v19, 0.0  ;;  %v2074_v1 = vpop.f32.mrb[52].mxu1  ;;  %v2150_v12 = vpop.f32.mrb[52].mxu0  ;;  %v1182_v58 = vadd.f32 %v2670_v43, %v2621_v38 }
 0x162   : > { %1649 = vst.msk [vmem:[%s2710_s30 + $0x18] sm:$0xff] %vm1018_vm0, %v1617_v0  ;;  %v1448_v26 = vadd.f32 %v2150_v12, %v2645_v47  ;;  %v2075_v13 = vpop.f32.mrb[53].mxu1  ;;  %v1439_v14 = vpop.f32.mrb[53].mxu0  ;;  %v1561_v12 = vld [vmem:[%s2692_s28 + $0x58] sm:$0xff] }
 0x163   : > { %1647 = vst.msk [vmem:[%s2710_s30 + $0x8] sm:$0xff] %vm1018_vm0, %v1615_v35  ;;  %v2076_v21 = vadd.f32 %v2075_v13, %v2074_v1  ;;  %v1440_v24 = vadd.f32 %v1439_v14, %v2637_v27  ;;  %v2077_v46 = vpop.f32.mrb[54].mxu1  ;;  %v2151_v50 = vpop.f32.mrb[54].mxu0 }
 0x164   : > { %v1588_v47 = vadd.f32 %v1556_v52, %v1448_v26  ;;  %v1451_v36 = vadd.f32 %v2151_v50, %v2647_v48  ;;  %v2078_v18 = vpop.f32.mrb[55].mxu1  ;;  %v1442_v37 = vpop.f32.mrb[55].mxu0  ;;  %v1185_v52 = vadd.f32 %v2673_v54, %v2621_v38 }
 0x165   : > { %v1586_v20 = vadd.f32 %v1554_v44, %v1440_v24  ;;  %v2079_v39 = vadd.f32 %v2078_v18, %v2077_v46  ;;  %v1443_v27 = vadd.f32 %v1442_v37, %v2639_v29  ;;  %v2737_v41 = vadd.f32 %v2076_v21, %v1174_v17  ;;  %v1560_v29 = vld [vmem:[%s2692_s28 + $0x50] sm:$0xff]  ;;  %v1559_v44 = vld [vmem:[%s2692_s28 + $0x48] sm:$0xff] }
 0x166   : > { %v1620_v42 = vmax.f32 %v1588_v47, 0.0  ;;  %v1589_v23 = vadd.f32 %v1557_v11, %v1451_v36 }
 0x167   : > { %v1618_v45 = vmax.f32 %v1586_v20, 0.0  ;;  %v1587_v31 = vadd.f32 %v1555_v61, %v1443_v27  ;;  %v2739_v5 = vadd.f32 %v2079_v39, %v1177_v25  ;;  %v1562_v20 = vld [vmem:[%s2692_s28 + $0x60] sm:$0xff]  ;;  %v1190_v39 = vadd.f32 %v2680_v2, %v2621_v38 }
 0x168   : > { %1652 = vst.msk [vmem:[%s2710_s30 + $0x30] sm:$0xff] %vm1018_vm0, %v1620_v42  ;;  %v1621_v48 = vmax.f32 %v1589_v23, 0.0 }
 0x169   : > { %1650 = vst.msk [vmem:[%s2710_s30 + $0x20] sm:$0xff] %vm1018_vm0, %v1618_v45  ;;  %v1619_v7 = vmax.f32 %v1587_v31, 0.0  ;;  %v2080_v49 = vpop.f32.mrb[56].mxu1  ;;  %v2154_v51 = vpop.f32.mrb[56].mxu0  ;;  %v1565_v31 = vld [vmem:[%s2692_s28 + $0x78] sm:$0xff] }
 0x16a   : > { %1653 = vst.msk [vmem:[%s2710_s30 + $0x38] sm:$0xff] %vm1018_vm0, %v1621_v48  ;;  %v1464_v59 = vadd.f32 %v2154_v51, %v2665_v32  ;;  %v2081_v53 = vpop.f32.mrb[57].mxu1  ;;  %v1455_v57 = vpop.f32.mrb[57].mxu0  ;;  %v1193_v48 = vadd.f32 %v2685_v6, %v2621_v38 }
 0x16b   : > { %1651 = vst.msk [vmem:[%s2710_s30 + $0x28] sm:$0xff] %vm1018_vm0, %v1619_v7  ;;  %v2082_v19 = vadd.f32 %v2081_v53, %v2080_v49  ;;  %v1456_v0 = vadd.f32 %v1455_v57, %v2655_v3  ;;  %v2083_v35 = vpop.f32.mrb[58].mxu1  ;;  %v2155_v1 = vpop.f32.mrb[58].mxu0 }
 0x16c   : > { %v1592_v32 = vadd.f32 %v1560_v29, %v1464_v59  ;;  %v1467_v26 = vadd.f32 %v2155_v1, %v2667_v33  ;;  %v2084_v13 = vpop.f32.mrb[59].mxu1  ;;  %v1458_v14 = vpop.f32.mrb[59].mxu0  ;;  %v1563_v29 = vld [vmem:[%s2692_s28 + $0x68] sm:$0xff] }
 0x16d   : > { %v1590_v43 = vadd.f32 %v1558_v8, %v1456_v0  ;;  %v2085_v17 = vadd.f32 %v2084_v13, %v2083_v35  ;;  %v1459_v3 = vadd.f32 %v1458_v14, %v2657_v9  ;;  %v2761_v21 = vadd.f32 %v2082_v19, %v1182_v58  ;;  %v1564_v9 = vld [vmem:[%s2692_s28 + $0x70] sm:$0xff] }
 0x16e   : > { %v1624_v24 = vmax.f32 %v1592_v32, 0.0  ;;  %v1593_v46 = vadd.f32 %v1561_v12, %v1467_v26  ;;  %v1568_v12 = vld [vmem:[%s2692_s28 + $0x90] sm:$0xff]  ;;  %v1566_v26 = vld [vmem:[%s2692_s28 + $0x80] sm:$0xff]  ;;  %v1198_v13 = vadd.f32 %v2602_v56, %v2621_v38 }
 0x16f   : > { %v1622_v50 = vmax.f32 %v1590_v43, 0.0  ;;  %v1591_v54 = vadd.f32 %v1559_v44, %v1459_v3  ;;  %v2763_v11 = vadd.f32 %v2085_v17, %v1185_v52  ;;  %v1569_v3 = vld [vmem:[%s2692_s28 + $0x98] sm:$0xff] }
 0x170   : > { %1656 = vst.msk [vmem:[%s2710_s30 + $0x50] sm:$0xff] %vm1018_vm0, %v1624_v24  ;;  %v1625_v33 = vmax.f32 %v1593_v46, 0.0  ;;  %v1201_v24 = vadd.f32 %v2604_v62, %v2621_v38 }
 0x171   : > { %1654 = vst.msk [vmem:[%s2710_s30 + $0x40] sm:$0xff] %vm1018_vm0, %v1622_v50  ;;  %v1623_v25 = vmax.f32 %v1591_v54, 0.0  ;;  %v2086_v47 = vpop.f32.mrb[60].mxu1  ;;  %v2158_v36 = vpop.f32.mrb[60].mxu0 }
 0x172   : > { %1657 = vst.msk [vmem:[%s2710_s30 + $0x58] sm:$0xff] %vm1018_vm0, %v1625_v33  ;;  %v1480_v18 = vadd.f32 %v2158_v36, %v2687_v15  ;;  %v2087_v37 = vpop.f32.mrb[61].mxu1  ;;  %v1471_v61 = vpop.f32.mrb[61].mxu0  ;;  %v1567_v33 = vld [vmem:[%s2692_s28 + $0x88] sm:$0xff] }
 0x173   : > { %1655 = vst.msk [vmem:[%s2710_s30 + $0x48] sm:$0xff] %vm1018_vm0, %v1623_v25  ;;  %v2088_v27 = vadd.f32 %v2087_v37, %v2086_v47  ;;  %v1472_v42 = vadd.f32 %v1471_v61, %v2675_v55  ;;  %v2089_v23 = vpop.f32.mrb[62].mxu1  ;;  %v2159_v45 = vpop.f32.mrb[62].mxu0 }
 0x174   : > { %v1596_v15 = vadd.f32 %v1564_v9, %v1480_v18  ;;  %v1483_v7 = vadd.f32 %v2159_v45, %v2694_v40  ;;  %v2090_v49 = vpop.f32.mrb[63].mxu1  ;;  %v1474_v51 = vpop.f32.mrb[63].mxu0  ;;  %v1570_v45 = vld [vmem:[%s2692_s28 + $0xa0] sm:$0xff] }
 0x175   : > { %v1594_v2 = vadd.f32 %v1562_v20, %v1472_v42  ;;  %v2091_v59 = vadd.f32 %v2090_v49, %v2089_v23  ;;  %v1475_v55 = vadd.f32 %v1474_v51, %v2677_v30  ;;  %v1351_v53 = vadd.f32 %v2088_v27, %v1190_v39  ;;  %v1572_v27 = vld [vmem:[%s2692_s28 + $0xb0] sm:$0xff]  ;;  %v1573_v51 = vld [vmem:[%s2692_s28 + $0xb8] sm:$0xff] }
 0x176   : > { %v1628_v57 = vmax.f32 %v1596_v15, 0.0  ;;  %v1597_v8 = vadd.f32 %v1565_v31, %v1483_v7  ;;  %v1206_v31 = vadd.f32 %v2606_v4, %v2621_v38 }
 0x177   : > { %v1626_v58 = vmax.f32 %v1594_v2, 0.0  ;;  %v1595_v6 = vadd.f32 %v1563_v29, %v1475_v55  ;;  %v1354_v19 = vadd.f32 %v2091_v59, %v1193_v48  ;;  %v1209_v29 = vadd.f32 %v2608_v10, %v2621_v38 }
 0x178   : > { %1660 = vst.msk [vmem:[%s2710_s30 + $0x70] sm:$0xff] %vm1018_vm0, %v1628_v57  ;;  %v1629_v40 = vmax.f32 %v1597_v8, 0.0  ;;  %v1571_v57 = vld [vmem:[%s2692_s28 + $0xa8] sm:$0xff] }
 0x179   : > { %1658 = vst.msk [vmem:[%s2710_s30 + $0x60] sm:$0xff] %vm1018_vm0, %v1626_v58  ;;  %v1627_v0 = vmax.f32 %v1595_v6, 0.0  ;;  %v2092_v35 = vpop.f32.mrb[64].mxu1  ;;  %v2162_v1 = vpop.f32.mrb[64].mxu0 }
 0x17a   : > { %1661 = vst.msk [vmem:[%s2710_s30 + $0x78] sm:$0xff] %vm1018_vm0, %v1629_v40  ;;  %v1496_v30 = vadd.f32 %v2162_v1, %v2737_v41  ;;  %v2093_v52 = vpop.f32.mrb[65].mxu1  ;;  %v1487_v32 = vpop.f32.mrb[65].mxu0 }
 0x17b   : > { %1659 = vst.msk [vmem:[%s2710_s30 + $0x68] sm:$0xff] %vm1018_vm0, %v1627_v0  ;;  %v2094_v14 = vadd.f32 %v2093_v52, %v2092_v35  ;;  %v1488_v44 = vadd.f32 %v1487_v32, %v2713_v63  ;;  %v2095_v43 = vpop.f32.mrb[66].mxu1  ;;  %v2163_v17 = vpop.f32.mrb[66].mxu0  ;;  %v1576_v52 = vld [vmem:[%s2692_s28 + $0xd0] sm:$0xff] }
 0x17c   : > { %v1600_v41 = vadd.f32 %v1568_v12, %v1496_v30  ;;  %v1499_v46 = vadd.f32 %v2163_v17, %v2739_v5  ;;  %v2096_v50 = vpop.f32.mrb[67].mxu1  ;;  %v1490_v54 = vpop.f32.mrb[67].mxu0 }
 0x17d   : > { %v1598_v56 = vadd.f32 %v1566_v26, %v1488_v44  ;;  %v2097_v25 = vadd.f32 %v2096_v50, %v2095_v43  ;;  %v1491_v63 = vadd.f32 %v1490_v54, %v2715_v60  ;;  %v1359_v47 = vadd.f32 %v2094_v14, %v1198_v13  ;;  %v1574_v13 = vld [vmem:[%s2692_s28 + $0xc0] sm:$0xff] }
 0x17e   : > { %v1632_v36 = vmax.f32 %v1600_v41, 0.0  ;;  %v1601_v9 = vadd.f32 %v1569_v3, %v1499_v46  ;;  %v1214_v14 = vadd.f32 %v2610_v16, %v2621_v38  ;;  %v1217_v41 = vadd.f32 %v2612_v22, %v2621_v38 }
 0x17f   : > { %v1630_v18 = vmax.f32 %v1598_v56, 0.0  ;;  %v1599_v62 = vadd.f32 %v1567_v33, %v1491_v63  ;;  %v1362_v37 = vadd.f32 %v2097_v25, %v1201_v24  ;;  %v1577_v24 = vld [vmem:[%s2692_s28 + $0xd8] sm:$0xff]  ;;  %v1575_v56 = vld [vmem:[%s2692_s28 + $0xc8] sm:$0xff] }
 0x180   : > { %1664 = vst.msk [vmem:[%s2710_s30 + $0x90] sm:$0xff] %vm1018_vm0, %v1632_v36  ;;  %v1633_v5 = vmax.f32 %v1601_v9, 0.0 }
 0x181   : > { %1662 = vst.msk [vmem:[%s2710_s30 + $0x80] sm:$0xff] %vm1018_vm0, %v1630_v18  ;;  %v1631_v61 = vmax.f32 %v1599_v62, 0.0  ;;  %v2098_v20 = vpop.f32.mrb[68].mxu1  ;;  %v2166_v39 = vpop.f32.mrb[68].mxu0 }
 0x182   : > { %1665 = vst.msk [vmem:[%s2710_s30 + $0x98] sm:$0xff] %vm1018_vm0, %v1633_v5  ;;  %v1512_v60 = vadd.f32 %v2166_v39, %v1351_v53  ;;  %v2099_v42 = vpop.f32.mrb[69].mxu1  ;;  %v1503_v23 = vpop.f32.mrb[69].mxu0 }
 0x183   : > { %1663 = vst.msk [vmem:[%s2710_s30 + $0x88] sm:$0xff] %vm1018_vm0, %v1631_v61  ;;  %v2100_v48 = vadd.f32 %v2099_v42, %v2098_v20  ;;  %v1504_v15 = vadd.f32 %v1503_v23, %v2761_v21  ;;  %v2101_v7 = vpop.f32.mrb[70].mxu1  ;;  %v2167_v49 = vpop.f32.mrb[70].mxu0  ;;  %v1222_v42 = vadd.f32 %v2614_v28, %v2621_v38 }
 0x184   : > { %v1604_v2 = vadd.f32 %v1572_v27, %v1512_v60  ;;  %v1515_v59 = vadd.f32 %v2167_v49, %v1354_v19  ;;  %v2102_v55 = vpop.f32.mrb[71].mxu1  ;;  %v1506_v53 = vpop.f32.mrb[71].mxu0  ;;  %v1578_v60 = vld [vmem:[%s2692_s28 + $0xe0] sm:$0xff] }
 0x185   : > { %v1602_v4 = vadd.f32 %v1570_v45, %v1504_v15  ;;  %v2103_v8 = vadd.f32 %v2102_v55, %v2101_v7  ;;  %v1507_v58 = vadd.f32 %v1506_v53, %v2763_v11  ;;  %v1367_v21 = vadd.f32 %v2100_v48, %v1206_v31  ;;  %v1580_v55 = vld [vmem:[%s2692_s28 + $0xf0] sm:$0xff] }
 0x186   : > { %v1636_v6 = vmax.f32 %v1604_v2, 0.0  ;;  %v1605_v40 = vadd.f32 %v1573_v51, %v1515_v59  ;;  %v1225_v15 = vadd.f32 %v2616_v34, %v2621_v38  ;;  %v1579_v51 = vld [vmem:[%s2692_s28 + $0xe8] sm:$0xff] }
 0x187   : > { %v1634_v0 = vmax.f32 %v1602_v4, 0.0  ;;  %v1603_v35 = vadd.f32 %v1571_v57, %v1507_v58  ;;  %v1370_v10 = vadd.f32 %v2103_v8, %v1209_v29  ;;  %v1581_v58 = vld [vmem:[%s2692_s28 + $0xf8] sm:$0xff] }
 0x188   : > { %1668 = vst.msk [vmem:[%s2710_s30 + $0xb0] sm:$0xff] %vm1018_vm0, %v1636_v6  ;;  %v1637_v19 = vmax.f32 %v1605_v40, 0.0 }
 0x189   : > { %1666 = vst.msk [vmem:[%s2710_s30 + $0xa0] sm:$0xff] %vm1018_vm0, %v1634_v0  ;;  %v1635_v1 = vmax.f32 %v1603_v35, 0.0  ;;  %v2104_v12 = vpop.f32.mrb[72].mxu1  ;;  %v2170_v30 = vpop.f32.mrb[72].mxu0 }
 0x18a   : > { %1669 = vst.msk [vmem:[%s2710_s30 + $0xb8] sm:$0xff] %vm1018_vm0, %v1637_v19  ;;  %v1528_v11 = vadd.f32 %v2170_v30, %v1367_v21  ;;  %v2105_v32 = vpop.f32.mrb[73].mxu1  ;;  %v1519_v26 = vpop.f32.mrb[73].mxu0 }
 0x18b   : > { %1667 = vst.msk [vmem:[%s2710_s30 + $0xa8] sm:$0xff] %vm1018_vm0, %v1635_v1  ;;  %v2106_v44 = vadd.f32 %v2105_v32, %v2104_v12  ;;  %v1520_v43 = vadd.f32 %v1519_v26, %v1359_v47  ;;  %v2107_v17 = vpop.f32.mrb[74].mxu1  ;;  %v2171_v3 = vpop.f32.mrb[74].mxu0 }
 0x18c   : > { %v1608_v46 = vadd.f32 %v1576_v52, %v1528_v11  ;;  %v1531_v50 = vadd.f32 %v2171_v3, %v1370_v10  ;;  %v2108_v54 = vpop.f32.mrb[75].mxu1  ;;  %v1522_v33 = vpop.f32.mrb[75].mxu0 }
 0x18d   : > { %v1606_v25 = vadd.f32 %v1574_v13, %v1520_v43  ;;  %v2109_v16 = vadd.f32 %v2108_v54, %v2107_v17  ;;  %v1523_v63 = vadd.f32 %v1522_v33, %v1362_v37  ;;  %v1375_v36 = vadd.f32 %v2106_v44, %v1214_v14 }
 0x18e   : > { %v1640_v47 = vmax.f32 %v1608_v46, 0.0  ;;  %v1609_v9 = vadd.f32 %v1577_v24, %v1531_v50 }
 0x18f   : > { %v1638_v18 = vmax.f32 %v1606_v25, 0.0  ;;  %v1607_v62 = vadd.f32 %v1575_v56, %v1523_v63  ;;  %v1378_v5 = vadd.f32 %v2109_v16, %v1217_v41 }
 0x190   : > { %1672 = vst.msk [vmem:[%s2710_s30 + $0xd0] sm:$0xff] %vm1018_vm0, %v1640_v47  ;;  %v1641_v22 = vmax.f32 %v1609_v9, 0.0 }
 0x191   : > { %1670 = vst.msk [vmem:[%s2710_s30 + $0xc0] sm:$0xff] %vm1018_vm0, %v1638_v18  ;;  %v1639_v61 = vmax.f32 %v1607_v62, 0.0  ;;  %v2110_v20 = vpop.f32.mrb[76].mxu1  ;;  %v2174_v39 = vpop.f32.mrb[76].mxu0 }
 0x192   : > { %1673 = vst.msk [vmem:[%s2710_s30 + $0xd8] sm:$0xff] %vm1018_vm0, %v1641_v22  ;;  %v2111_v37 = vpop.f32.mrb[77].mxu1  ;;  %v1535_v27 = vpop.f32.mrb[77].mxu0 }
 0x193   : > { %1671 = vst.msk [vmem:[%s2710_s30 + $0xc8] sm:$0xff] %vm1018_vm0, %v1639_v61  ;;  %v2112_v23 = vadd.f32 %v2111_v37, %v2110_v20  ;;  %v1536_v45 = vadd.f32 %v1535_v27, %v1375_v36  ;;  %v2113_v31 = vpop.f32.mrb[78].mxu1  ;;  %v2175_v48 = vpop.f32.mrb[78].mxu0 }
 0x194   : > { %v2114_v7 = vpop.f32.mrb[79].mxu1  ;;  %v1538_v49 = vpop.f32.mrb[79].mxu0 }
 0x195   : > { %v1383_v29 = vadd.f32 %v2112_v23, %v1222_v42  ;;  %v1610_v2 = vadd.f32 %v1578_v60, %v1536_v45  ;;  %v2115_v59 = vadd.f32 %v2114_v7, %v2113_v31  ;;  %v1539_v28 = vadd.f32 %v1538_v49, %v1378_v5 }
 0x197   : > { %v1544_v53 = vadd.f32 %v2174_v39, %v1383_v29  ;;  %v1642_v57 = vmax.f32 %v1610_v2, 0.0  ;;  %v1386_v4 = vadd.f32 %v2115_v59, %v1225_v15  ;;  %v1611_v8 = vadd.f32 %v1579_v51, %v1539_v28 }
 0x199   : > { %v1612_v21 = vadd.f32 %v1580_v55, %v1544_v53  ;;  %1674 = vst.msk [vmem:[%s2710_s30 + $0xe0] sm:$0xff] %vm1018_vm0, %v1642_v57  ;;  %v1547_v34 = vadd.f32 %v2175_v48, %v1386_v4  ;;  %v1643_v38 = vmax.f32 %v1611_v8, 0.0 }
 0x19b   : > { %v1644_v6 = vmax.f32 %v1612_v21, 0.0  ;;  %v1613_v40 = vadd.f32 %v1581_v58, %v1547_v34  ;;  %1675 = vst.msk [vmem:[%s2710_s30 + $0xe8] sm:$0xff] %vm1018_vm0, %v1643_v38 }
 0x19d   : > { %1676 = vst.msk [vmem:[%s2710_s30 + $0xf0] sm:$0xff] %vm1018_vm0, %v1644_v6  ;;  %v1645_v0 = vmax.f32 %v1613_v40, 0.0 }
 0x19f   : > { %1677 = vst.msk [vmem:[%s2710_s30 + $0xf8] sm:$0xff] %vm1018_vm0, %v1645_v0 }
 0x1a0 PF: > { %s14_s15 = sadd.s32 1, %s2355_s15  }
 0x1a1   : > { %p11_p4 = scmp.ge.s32.totalorder %s14_s15, 4  }
 0x1a3   :  { %13 = sbr.rel (!%p11_p4) target bundleno = 1 (0x1), region = 69 }

// kernel: net_forward.7
= control target key start
LH: loop header
LB: loop body
LE: loop exit
PB: predicated region body
PF: predicated region fallthrough
CT: control target
= control target key end

     0   :  { %v157_v28 = vlaneseq  ;;  %v1014_v36 = vmov 1966171168   ;;  %s1259_s0 = inlined_call_operand.vmem [shape: bf16[2,1024], index: 0, kind: input, shape index: {}]   ;;  %s1260_s1 = inlined_call_operand.vmem [shape: bf16[1024,10], index: 1, kind: input, shape index: {}]   ;;  %s1261_s2 = inlined_call_operand.vmem [shape: f32[1,10], index: 2, kind: input, shape index: {}]   ;;  %s1262_s3 = inlined_call_operand.hbm [shape: f32[2,10], index: 3, kind: output, shape index: {}]  }
   0x1   :  { %v925_v0 = vld [vmem:[%s1260_s1 + $0x40] sm:$0xff]   ;;  %v929_v4 = vld [vmem:[%s1260_s1 + $0x48] sm:$0xff]   ;;  %v933_v8 = vld [vmem:[%s1260_s1 + $0x50] sm:$0xff]   ;;  %v155_v37 = vunpack.c.l.s4 %v1014_v36 }
   0x2   :  { %v926_v1 = vld [vmem:[%s1260_s1 + $0xc0] sm:$0xff]   ;;  %835 = vmatprep.subr.bf16.mxu0 %v925_v0  ;;  %v930_v5 = vld [vmem:[%s1260_s1 + $0xc8] sm:$0xff]   ;;  %v934_v9 = vld [vmem:[%s1260_s1 + $0xd0] sm:$0xff]   ;;  %v158_v33 = vshrl.u32 %v157_v28, 7 }
   0x3   :  { %v927_v2 = vld [vmem:[%s1260_s1] sm:$0xff]   ;;  %857 = vmatprep.subr.bf16.mxu1 %v926_v1  ;;  %v931_v6 = vld [vmem:[%s1260_s1 + $0x8] sm:$0xff]   ;;  %v935_v10 = vld [vmem:[%s1260_s1 + $0x10] sm:$0xff]   ;;  %v156_v40 = vunpack.c.0.s8 %v155_v37 }
   0x4   :  { %v928_v3 = vld [vmem:[%s1260_s1 + $0x80] sm:$0xff]   ;;  %836 = vmatpush3.bf16.msra.mxu0 %v927_v2  ;;  %v932_v7 = vld [vmem:[%s1260_s1 + $0x88] sm:$0xff]   ;;  %v936_v11 = vld [vmem:[%s1260_s1 + $0x90] sm:$0xff]  }
   0x5   :  { %858 = vmatpush3.bf16.msra.mxu1 %v928_v3  ;;  %837 = vmatprep.subr.bf16.mxu0 %v929_v4  ;;  %v937_v12 = vld [vmem:[%s1260_s1 + $0x58] sm:$0xff]   ;;  %v941_v16 = vld [vmem:[%s1260_s1 + $0x60] sm:$0xff]   ;;  %v945_v20 = vld [vmem:[%s1260_s1 + $0x68] sm:$0xff]   ;;  %v1141_v41 = vsub.s32 %v156_v40, %v158_v33 }
   0x6   :  { %859 = vmatprep.subr.bf16.mxu1 %v930_v5  ;;  %v938_v13 = vld [vmem:[%s1260_s1 + $0xd8] sm:$0xff]   ;;  %v942_v17 = vld [vmem:[%s1260_s1 + $0xe0] sm:$0xff]   ;;  %v946_v21 = vld [vmem:[%s1260_s1 + $0xe8] sm:$0xff]  }
   0x7   :  { %v939_v14 = vld [vmem:[%s1260_s1 + $0x18] sm:$0xff]   ;;  %v943_v18 = vld [vmem:[%s1260_s1 + $0x20] sm:$0xff]   ;;  %v947_v22 = vld [vmem:[%s1260_s1 + $0x28] sm:$0xff]  }
   0x8   :  { %838 = vmatpush3.bf16.msra.mxu0 %v931_v6  ;;  %v940_v15 = vld [vmem:[%s1260_s1 + $0x98] sm:$0xff]   ;;  %v944_v19 = vld [vmem:[%s1260_s1 + $0xa0] sm:$0xff]   ;;  %v948_v23 = vld [vmem:[%s1260_s1 + $0xa8] sm:$0xff]  }
   0x9   :  { %860 = vmatpush3.bf16.msra.mxu1 %v932_v7  ;;  %839 = vmatprep.subr.bf16.mxu0 %v933_v8  ;;  %v949_v24 = vld [vmem:[%s1260_s1 + $0x70] sm:$0xff]   ;;  %v953_v29 = vld [vmem:[%s1260_s1 + $0x78] sm:$0xff]   ;;  %v16_v34 = vld [vmem:[%s1259_s0] sm:$0xff] }
   0xa   :  { %861 = vmatprep.subr.bf16.mxu1 %v934_v9  ;;  %v950_v25 = vld [vmem:[%s1260_s1 + $0xf0] sm:$0xff]   ;;  %v954_v30 = vld [vmem:[%s1260_s1 + $0xf8] sm:$0xff]   ;;  %v958_v35 = vld [vmem:[%s1260_s1 + $0x140] sm:$0xff]   ;;  %v153_v39 = vcombine.high %v16_v34, %v16_v34  ;;  %v160_v42 = vrot.slane %v16_v34, %v1141_v41 }
   0xb   :  { %v951_v26 = vld [vmem:[%s1260_s1 + $0x30] sm:$0xff]   ;;  %v955_v31 = vld [vmem:[%s1260_s1 + $0x38] sm:$0xff]   ;;  %v959_v38 = vld [vmem:[%s1260_s1 + $0x1c0] sm:$0xff]  }
   0xc   :  { %840 = vmatpush3.bf16.msra.mxu0 %v935_v10  ;;  %v952_v27 = vld [vmem:[%s1260_s1 + $0xb0] sm:$0xff]   ;;  %v956_v32 = vld [vmem:[%s1260_s1 + $0xb8] sm:$0xff]   ;;  %v1145_v43 = vrot.slane %v153_v39, %v1141_v41  ;;  %v168_v44 = vcombine.high %v160_v42, %v160_v42  ;;  %v176_v45 = vrot.slane %v160_v42, %v1141_v41  ;;  %v960_v48 = vld [vmem:[%s1260_s1 + $0x100] sm:$0xff]  }
   0xd   :  { %862 = vmatpush3.bf16.msra.mxu1 %v936_v11  ;;  %841 = vmatprep.subr.bf16.mxu0 %v937_v12  ;;  %v962_v51 = vld [vmem:[%s1260_s1 + $0x148] sm:$0xff]   ;;  %v961_v53 = vld [vmem:[%s1260_s1 + $0x180] sm:$0xff]   ;;  %v966_v57 = vld [vmem:[%s1260_s1 + $0x150] sm:$0xff]  }
   0xe   :  { %863 = vmatprep.subr.bf16.mxu1 %v938_v13  ;;  %v169_v46 = vcombine.high %v1145_v43, %v1145_v43  ;;  %v190_v47 = vrot.slane %v168_v44, %v1141_v41  ;;  %v198_v50 = vcombine.high %v176_v45, %v176_v45  ;;  %v963_v54 = vld [vmem:[%s1260_s1 + $0x1c8] sm:$0xff]   ;;  %v967_v59 = vld [vmem:[%s1260_s1 + $0x1d0] sm:$0xff]   ;;  %v970_v61 = vld [vmem:[%s1260_s1 + $0x158] sm:$0xff]  }
   0xf   :  { %v964_v56 = vld [vmem:[%s1260_s1 + $0x108] sm:$0xff]   ;;  %v968_v60 = vld [vmem:[%s1260_s1 + $0x110] sm:$0xff]   ;;  %v971_v63 = vld [vmem:[%s1260_s1 + $0x1d8] sm:$0xff]  }
  0x10   :  { %842 = vmatpush3.bf16.msra.mxu0 %v939_v14  ;;  %v197_v49 = vrot.slane %v169_v46, %v1141_v41  ;;  %626 = vmatprep.mubr.bf16.mxu0 %v190_v47  ;;  %v200_v52 = vcombine.high %v190_v47, %v190_v47  ;;  %v965_v58 = vld [vmem:[%s1260_s1 + $0x188] sm:$0xff]   ;;  %v969_v62 = vld [vmem:[%s1260_s1 + $0x190] sm:$0xff]   ;;  %v972_v0 = vld [vmem:[%s1260_s1 + $0x118] sm:$0xff]  }
  0x11   :  { %864 = vmatpush3.bf16.msra.mxu1 %v940_v15  ;;  %843 = vmatprep.subr.bf16.mxu0 %v941_v16  ;;  %v974_v1 = vld [vmem:[%s1260_s1 + $0x160] sm:$0xff]   ;;  %v973_v2 = vld [vmem:[%s1260_s1 + $0x198] sm:$0xff]   ;;  %v978_v5 = vld [vmem:[%s1260_s1 + $0x168] sm:$0xff]  }
  0x12   :  { %865 = vmatprep.subr.bf16.mxu1 %v942_v17  ;;  %v201_v55 = vcombine.high %v197_v49, %v197_v49  ;;  %666 = vmatprep.mubr.bf16.mxu1 %v200_v52  ;;  %v975_v3 = vld [vmem:[%s1260_s1 + $0x1e0] sm:$0xff]   ;;  %v979_v7 = vld [vmem:[%s1260_s1 + $0x1e8] sm:$0xff]   ;;  %v982_v9 = vld [vmem:[%s1260_s1 + $0x170] sm:$0xff]  }
  0x13   :  { %v976_v4 = vld [vmem:[%s1260_s1 + $0x120] sm:$0xff]   ;;  %v980_v8 = vld [vmem:[%s1260_s1 + $0x128] sm:$0xff]  }
  0x14   :  { %844 = vmatpush3.bf16.msra.mxu0 %v943_v18  ;;  %v977_v6 = vld [vmem:[%s1260_s1 + $0x1a0] sm:$0xff]  }
  0x15   :  { %866 = vmatpush3.bf16.msra.mxu1 %v944_v19  ;;  %845 = vmatprep.subr.bf16.mxu0 %v945_v20 }
  0x16   :  { %867 = vmatprep.subr.bf16.mxu1 %v946_v21 }
  0x18   :  { %846 = vmatpush3.bf16.msra.mxu0 %v947_v22 }
  0x19   :  { %868 = vmatpush3.bf16.msra.mxu1 %v948_v23  ;;  %847 = vmatprep.subr.bf16.mxu0 %v949_v24 }
  0x1a   :  { %869 = vmatprep.subr.bf16.mxu1 %v950_v25 }
  0x1c   :  { %848 = vmatpush3.bf16.msra.mxu0 %v951_v26 }
  0x1d   :  { %870 = vmatpush3.bf16.msra.mxu1 %v952_v27  ;;  %849 = vmatprep.subr.bf16.mxu0 %v953_v29 }
  0x1e   :  { %871 = vmatprep.subr.bf16.mxu1 %v954_v30 }
  0x20   :  { %850 = vmatpush3.bf16.msra.mxu0 %v955_v31 }
  0x21   :  { %872 = vmatpush3.bf16.msra.mxu1 %v956_v32  ;;  %879 = vmatprep.subr.bf16.mxu0 %v958_v35 }
  0x22   :  { %901 = vmatprep.subr.bf16.mxu1 %v959_v38 }
  0x23   :  { %627 = vmatmul.mubr.bf16.vlgmr.msra.gmra.mrb[0].mxu0 %v176_v45 }
  0x24   :  { %880 = vmatpush3.bf16.msra.mxu0 %v960_v48  ;;  %667 = vmatmul.mubr.bf16.vlgmr.msra.gmra.mrb[0].mxu1 %v198_v50 }
  0x25   :  { %881 = vmatprep.subr.bf16.mxu0 %v962_v51  ;;  %902 = vmatpush3.bf16.msra.mxu1 %v961_v53 }
  0x26   :  { %706 = vmatprep.mubr.bf16.mxu0 %v197_v49  ;;  %903 = vmatprep.subr.bf16.mxu1 %v963_v54 }
  0x27   :  { %746 = vmatprep.mubr.bf16.mxu1 %v201_v55 }
  0x28   :  { %882 = vmatpush3.bf16.msra.mxu0 %v964_v56 }
  0x29   :  { %883 = vmatprep.subr.bf16.mxu0 %v966_v57  ;;  %904 = vmatpush3.bf16.msra.mxu1 %v965_v58 }
  0x2a   :  { %905 = vmatprep.subr.bf16.mxu1 %v967_v59 }
  0x2c   :  { %884 = vmatpush3.bf16.msra.mxu0 %v968_v60 }
  0x2d   :  { %885 = vmatprep.subr.bf16.mxu0 %v970_v61  ;;  %906 = vmatpush3.bf16.msra.mxu1 %v969_v62 }
  0x2e   :  { %907 = vmatprep.subr.bf16.mxu1 %v971_v63 }
  0x30   :  { %886 = vmatpush3.bf16.msra.mxu0 %v972_v0 }
  0x31   :  { %887 = vmatprep.subr.bf16.mxu0 %v974_v1  ;;  %908 = vmatpush3.bf16.msra.mxu1 %v973_v2 }
  0x32   :  { %909 = vmatprep.subr.bf16.mxu1 %v975_v3 }
  0x34   :  { %888 = vmatpush3.bf16.msra.mxu0 %v976_v4 }
  0x35   :  { %889 = vmatprep.subr.bf16.mxu0 %v978_v5 }
  0x36   :  { %8 = vsyncpa [#allocation3], 0  ;;  %910 = vmatpush3.bf16.msra.mxu1 %v977_v6  ;;  %v981_v10 = vld [vmem:[%s1260_s1 + $0x1a8] sm:$0xff]   ;;  %v983_v11 = vld [vmem:[%s1260_s1 + $0x1f0] sm:$0xff]   ;;  %v183_v17 = vrot.slane %v1145_v43, %v1141_v41  ;;  %vm754_vm0 = vcmask 74752  }
  0x37   :  { %911 = vmatprep.subr.bf16.mxu1 %v979_v7  ;;  %v984_v12 = vld [vmem:[%s1260_s1 + $0x130] sm:$0xff]   ;;  %v986_v13 = vld [vmem:[%s1260_s1 + $0x178] sm:$0xff]   ;;  %v770_v21 = vld [vmem:[%s1261_s2] ss:$0 sm:$0xff] }
  0x38   :  { %890 = vmatpush3.bf16.msra.mxu0 %v980_v8  ;;  %v985_v14 = vld [vmem:[%s1260_s1 + $0x1b0] sm:$0xff]   ;;  %v987_v15 = vld [vmem:[%s1260_s1 + $0x1f8] sm:$0xff]   ;;  %v199_v19 = vcombine.high %v183_v17, %v183_v17 }
  0x39   :  { %891 = vmatprep.subr.bf16.mxu0 %v982_v9  ;;  %v988_v16 = vld [vmem:[%s1260_s1 + $0x138] sm:$0xff]  }
  0x3a   :  { %912 = vmatpush3.bf16.msra.mxu1 %v981_v10  ;;  %v989_v18 = vld [vmem:[%s1260_s1 + $0x1b8] sm:$0xff]   ;;  %s1015_s1 = smov [#allocation2]  }
  0x3b   :  { %913 = vmatprep.subr.bf16.mxu1 %v983_v11  ;;  %s762_s2 = sshll.u32 %s1015_s1, 4  ;;  %s763_s2 = int_to_ptr.vmem [resolvable:$true] %s762_s2 }
  0x3c   :  { %892 = vmatpush3.bf16.msra.mxu0 %v984_v12  ;;  %s990_s6 = scalar_lea.vmem %s763_s2, 32  ;;  %p995_p1 = scmp.lt.s32.totalorder %s763_s2, %s763_s2 }
  0x3d   :  { %893 = vmatprep.subr.bf16.mxu0 %v986_v13  ;;  %p991_p0 = scmp.ne.s32.totalorder %s763_s2, %s990_s6  ;;  %p996_p2 = scmp.lt.s32.totalorder %s990_s6, %s990_s6 }
  0x3e   :  { %914 = vmatpush3.bf16.msra.mxu1 %v985_v14 }
  0x3f   :  { %915 = vmatprep.subr.bf16.mxu1 %v987_v15  ;;  %p997_p3 = por %p996_p2, %p995_p1 }
  0x40   :  { %894 = vmatpush3.bf16.msra.mxu0 %v988_v16 }
  0x41   :  { %p998_p4 = pnand %p997_p3, %p991_p0 }
  0x42   :  { %916 = vmatpush3.bf16.msra.mxu1 %v989_v18 }
  0x43   :  { %707 = vmatmul.mubr.bf16.vlgmr.msra.gmra.mrb[4].mxu0 %v183_v17 }
  0x45   :  { %747 = vmatmul.mubr.bf16.vlgmr.msra.gmra.mrb[4].mxu1 %v199_v19 }
  0xf6   :  { %v851_v20 = vpop.f32.mrb[0].mxu0 }
  0xf7   :  { %v852_v22 = vpop.f32.mrb[1].mxu0  ;;  %v873_v23 = vpop.f32.mrb[0].mxu1 }
  0xf8   :  { %v853_v24 = vadd.f32 %v852_v22, %v851_v20  ;;  %v854_v25 = vpop.f32.mrb[2].mxu0  ;;  %v874_v26 = vpop.f32.mrb[1].mxu1 }
  0xf9   :  { %v855_v27 = vpop.f32.mrb[3].mxu0  ;;  %v875_v29 = vadd.f32 %v874_v26, %v873_v23  ;;  %v876_v30 = vpop.f32.mrb[2].mxu1 }
  0xfa   :  { %v629_v28 = vadd.f32 %v853_v24, %v770_v21  ;;  %v877_v31 = vpop.f32.mrb[3].mxu1 }
  0xfc   :  { %v669_v32 = vadd.f32 %v875_v29, %v629_v28 }
 0x116   :  { %v895_v33 = vpop.f32.mrb[4].mxu0 }
 0x117   :  { %v896_v34 = vpop.f32.mrb[5].mxu0 }
 0x118   :  { %v917_v35 = vpop.f32.mrb[4].mxu1  ;;  %v897_v36 = vadd.f32 %v896_v34, %v895_v33  ;;  %v898_v37 = vpop.f32.mrb[6].mxu0 }
 0x119   :  { %v918_v38 = vpop.f32.mrb[5].mxu1  ;;  %v899_v39 = vpop.f32.mrb[7].mxu0 }
 0x11a   :  { %v709_v40 = vadd.f32 %v897_v36, %v669_v32  ;;  %v919_v41 = vadd.f32 %v918_v38, %v917_v35  ;;  %v920_v42 = vpop.f32.mrb[6].mxu1 }
 0x11b   :  { %v921_v43 = vpop.f32.mrb[7].mxu1 }
 0x11c   :  { %v749_v44 = vadd.f32 %v919_v41, %v709_v40 }
 0x11e   :  { %755 = vst.msk [vmem:[#allocation2] sm:$0x3] %vm754_vm0, %v749_v44 }
 0x11f   :  { %1001 = shalt.err (!%p998_p4)
}
 0x120   :  { %s1002_s9 = scalar_lea.hbm %s1262_s3, 32 }
 0x121   :  { %p1003_p5 = scmp.ne.s32.totalorder %s1262_s3, %s1002_s9  ;;  %p1006_p6 = scmp.lt.u32.totalorder %s1002_s9, %s1262_s3 }
 0x123   :  { %p1008_p7 = pnand %p1006_p6, %p1003_p5 }
 0x125   :  { %1011 = shalt.err (!%p1008_p7)
}
 0x126   :  { %765 = dma.vmem_to_hbm [thread:$0]  %s763_s2, 32, %s1262_s3, [#allocation3]  }
 0x127   :  { %1012 = dma.done.wait [#allocation3], 32  }
 0x128   :  { %1013 = vsyncadd [#allocation3], 4294967264 }
 0x129   :  { %769 = vsyncpa [#allocation3], 1 }

</bundles_post_ra>
